<compile_context>
chip_gen: v5e
topology: v5e:2x2
jax: 0.10.0
libtpu: 0.0.40
codegen_flags: <defaults>
</compile_context>

<pallas_src>
import functools

import jax
import jax.numpy as jnp
from jax.experimental import pallas as pl
from jax.experimental.pallas import tpu as pltpu

LANES = 128


def _round_up(x, m):
    return (x + m - 1) // m * m


# -----------------------------------------------------------------------------
# Pallas kernels
# -----------------------------------------------------------------------------
def _conv_relu_pool_kernel(a00_ref, a01_ref, a10_ref, a11_ref, w_ref, b_ref,
                           o_ref):
    """Fused im2col-GEMM + bias + ReLU + 2x2 max-pool.

    Each a*_ref holds the im2col rows of one pooling-window quadrant; the 2x2
    max-pool is the elementwise max of the four relu(GEMM + bias) results.
    """
    w = w_ref[...]
    b = b_ref[...]          # (1, N_pad) f32, broadcast hoisted (single block)

    def branch(a_ref):
        acc = jnp.dot(a_ref[...], w, preferred_element_type=jnp.float32)
        return jnp.maximum(acc + b, 0.0)          # bias + ReLU in f32 (VPU)

    pooled = jnp.maximum(jnp.maximum(branch(a00_ref), branch(a01_ref)),
                         jnp.maximum(branch(a10_ref), branch(a11_ref)))
    o_ref[...] = pooled.astype(o_ref.dtype)


def _fc_head_kernel(x_ref, w1_ref, b1_ref, w2_ref, b2_ref, w3_ref, b3_ref,
                    o_ref):
    """Fused fc1 + ReLU + fc2 + ReLU + fc3 (all weights resident in VMEM)."""
    h = jnp.dot(x_ref[...], w1_ref[...],
                preferred_element_type=jnp.float32) + b1_ref[...]
    h = jnp.maximum(h, 0.0)
    h = jnp.dot(h.astype(w2_ref.dtype), w2_ref[...],
                preferred_element_type=jnp.float32) + b2_ref[...]
    h = jnp.maximum(h, 0.0)
    h = jnp.dot(h.astype(w3_ref.dtype), w3_ref[...],
                preferred_element_type=jnp.float32) + b3_ref[...]
    o_ref[...] = h.astype(o_ref.dtype)


# -----------------------------------------------------------------------------
# pallas_call wrappers
# -----------------------------------------------------------------------------
def _conv_relu_pool(quads, w_mat, bias_row, *, batch, pooled_rows_per_image,
                    out_dtype):
    """quads: 4 arrays of shape (batch*pooled_rows_per_image, K_pad)."""
    m4, kp = quads[0].shape
    npad = w_mat.shape[1]

    # Images per grid step: biggest divisor of batch keeping the M tile large
    # but comfortably under the per-step VMEM budget.
    ipt = 1
    for d in range(1, batch + 1):
        if batch % d == 0 and d * pooled_rows_per_image <= 2048:
            ipt = d
    mt = ipt * pooled_rows_per_image          # multiple of 8 by construction
    grid = (m4 // mt,)

    quad_spec = pl.BlockSpec((mt, kp), lambda i: (i, 0))
    return pl.pallas_call(
        _conv_relu_pool_kernel,
        out_shape=jax.ShapeDtypeStruct((m4, npad), out_dtype),
        grid_spec=pltpu.PrefetchScalarGridSpec(
            num_scalar_prefetch=0,
            grid=grid,
            in_specs=[
                quad_spec, quad_spec, quad_spec, quad_spec,
                pl.BlockSpec((kp, npad), lambda i: (0, 0)),
                pl.BlockSpec((1, npad), lambda i: (0, 0)),
            ],
            out_specs=pl.BlockSpec((mt, npad), lambda i: (i, 0)),
        ),
        compiler_params=pltpu.CompilerParams(
            dimension_semantics=("parallel",),
            vmem_limit_bytes=32 * 1024 * 1024,
        ),
    )(*quads, w_mat, bias_row)


def _fc_head(x2d, w1, b1, w2, b2, w3, b3, *, out_dtype):
    bsz, k = x2d.shape
    n1, n2, n3 = w1.shape[1], w2.shape[1], w3.shape[1]

    # Batch tile: full batch when small; otherwise the largest divisor of the
    # batch that is a multiple of 8 and <= 512 rows (keeps x-tile + weights
    # well inside the scoped VMEM limit).
    bt = bsz
    if bsz > 512:
        for d in range(1, bsz + 1):
            if bsz % d == 0 and d % 8 == 0 and d <= 512:
                bt = d

    return pl.pallas_call(
        _fc_head_kernel,
        out_shape=jax.ShapeDtypeStruct((bsz, n3), out_dtype),
        grid_spec=pltpu.PrefetchScalarGridSpec(
            num_scalar_prefetch=0,
            grid=(bsz // bt,),
            in_specs=[
                pl.BlockSpec((bt, k), lambda i: (i, 0)),
                pl.BlockSpec((k, n1), lambda i: (0, 0)),
                pl.BlockSpec((1, n1), lambda i: (0, 0)),
                pl.BlockSpec((n1, n2), lambda i: (0, 0)),
                pl.BlockSpec((1, n2), lambda i: (0, 0)),
                pl.BlockSpec((n2, n3), lambda i: (0, 0)),
                pl.BlockSpec((1, n3), lambda i: (0, 0)),
            ],
            out_specs=pl.BlockSpec((bt, n3), lambda i: (i, 0)),
        ),
        compiler_params=pltpu.CompilerParams(
            dimension_semantics=("parallel",),
            vmem_limit_bytes=32 * 1024 * 1024,
        ),
    )(x2d, w1, b1, w2, b2, w3, b3)


# -----------------------------------------------------------------------------
# Glue: im2col (per pooling quadrant) and weight/bias packing
# -----------------------------------------------------------------------------
def _im2col_quadrant(x_nhwc, kh, kw, ph, pw, k_pad, dtype):
    """Patches for conv output positions (2*hp + ph, 2*wp + pw).

    x_nhwc: (B, H, W, C). Returns (B * (Ho//2) * (Wo//2), k_pad) with columns
    ordered (dh, dw, c) and zero padding up to k_pad.
    """
    b, h, w, c = x_nhwc.shape
    ho, wo = h - kh + 1, w - kw + 1
    hp_, wp_ = ho // 2, wo // 2
    cols = []
    for dh in range(kh):
        for dw in range(kw):
            sl = x_nhwc[:, ph + dh: ph + dh + 2 * hp_: 2,
                        pw + dw: pw + dw + 2 * wp_: 2, :]      # (B, hp_, wp_, C)
            cols.append(sl)
    patches = jnp.stack(cols, axis=3).reshape(b * hp_ * wp_, kh * kw * c)
    k = kh * kw * c
    if k_pad > k:
        patches = jnp.pad(patches, ((0, 0), (0, k_pad - k)))
    return patches.astype(dtype)


def _conv_weight_matrix(w, b, k_pad, n_pad, dtype):
    """w: (O, C, kh, kw) torch layout -> (k_pad, n_pad), columns (dh, dw, c)."""
    o, c, kh, kw = w.shape
    wm = jnp.transpose(w, (2, 3, 1, 0)).reshape(kh * kw * c, o)
    wm = jnp.pad(wm, ((0, k_pad - kh * kw * c), (0, n_pad - o)))
    br = jnp.pad(b.reshape(1, o), ((0, 0), (0, n_pad - o)))
    return wm.astype(dtype), br.astype(jnp.float32)


def _fc_weight_matrix(w, b, k_pad, n_pad, dtype):
    """w: (out, in) torch Linear layout -> padded (k_pad, n_pad) = pad(w.T)."""
    o, k = w.shape
    wm = jnp.pad(w.T, ((0, k_pad - k), (0, n_pad - o)))
    br = jnp.pad(b.reshape(1, o), ((0, 0), (0, n_pad - o)))
    return wm.astype(dtype), br.astype(jnp.float32)


def _fc1_weight_from_pooled_slab(w, b, *, channels, positions, lane_pad, n_pad,
                                 dtype):
    """Pack fc1 so it consumes the conv2 pooled slab directly.

    PyTorch flatten order of the fc1 input is (c, hp, wp) -> column c*P + p
    (P = positions). The Pallas conv2 output slab, reshaped row-major to
    (B, P*lane_pad), has column p*lane_pad + c (c < channels valid, rest
    exactly zero). Fold that permutation + channel padding into the weight.
    """
    o, _ = w.shape                                     # (out, channels*positions)
    wt = w.reshape(o, channels, positions)             # (o, c, p)
    wt = jnp.transpose(wt, (2, 1, 0))                  # (p, c, o)
    wt = jnp.pad(wt, ((0, 0), (0, lane_pad - channels), (0, n_pad - o)))
    wm = wt.reshape(positions * lane_pad, n_pad)
    br = jnp.pad(b.reshape(1, o), ((0, 0), (0, n_pad - o)))
    return wm.astype(dtype), br.astype(jnp.float32)


# -----------------------------------------------------------------------------
# Full forward pass
# -----------------------------------------------------------------------------
def lenet_forward(x, params, *, num_classes, compute_dtype=jnp.float32):
    """x: (B, 1, 28, 28) NCHW float32. Returns (B, num_classes) float32."""
    w1, b1, w2, b2, wf1, bf1, wf2, bf2, wf3, bf3 = params
    bsz = x.shape[0]

    # ---- conv1 (1->6, 5x5) + ReLU + 2x2 max-pool --------------------------
    x_nhwc = jnp.transpose(x, (0, 2, 3, 1))                       # (B,28,28,1)
    k1 = _round_up(1 * 5 * 5, 8)                                  # 25 -> 32
    quads1 = [_im2col_quadrant(x_nhwc, 5, 5, ph, pw, k1, compute_dtype)
              for ph in (0, 1) for pw in (0, 1)]                  # 4x (B*144,32)
    wm1, br1 = _conv_weight_matrix(w1, b1, k1, LANES, compute_dtype)
    p1 = _conv_relu_pool(quads1, wm1, br1, batch=bsz,
                         pooled_rows_per_image=12 * 12,
                         out_dtype=compute_dtype)                 # (B*144, 128)

    # ---- conv2 (6->16, 5x5) + ReLU + 2x2 max-pool --------------------------
    h1 = p1.reshape(bsz, 12, 12, LANES)[:, :, :, :6]              # (B,12,12,6)
    k2 = _round_up(6 * 5 * 5, 8)                                  # 150 -> 160
    quads2 = [_im2col_quadrant(h1, 5, 5, ph, pw, k2, compute_dtype)
              for ph in (0, 1) for pw in (0, 1)]                  # 4x (B*16,160)
    wm2, br2 = _conv_weight_matrix(w2, b2, k2, LANES, compute_dtype)
    p2 = _conv_relu_pool(quads2, wm2, br2, batch=bsz,
                         pooled_rows_per_image=4 * 4,
                         out_dtype=compute_dtype)                 # (B*16, 128)

    # ---- fused FC head, fed by the pooled slab directly --------------------
    # Row-major reshape only (no transpose / channel slice): flatten order and
    # the zero-padded lanes are folded into the fc1 weight packing.
    flat_big = p2.reshape(bsz, 16 * LANES)                        # (B, 2048)

    n1p = _round_up(120, LANES)
    n2p = _round_up(84, LANES)
    n3p = _round_up(num_classes, LANES)
    fm1, fb1 = _fc1_weight_from_pooled_slab(
        wf1, bf1, channels=16, positions=16, lane_pad=LANES, n_pad=n1p,
        dtype=compute_dtype)                                      # (2048, n1p)
    fm2, fb2 = _fc_weight_matrix(wf2, bf2, n1p, n2p, compute_dtype)
    fm3, fb3 = _fc_weight_matrix(wf3, bf3, n2p, n3p, compute_dtype)
    logits_pad = _fc_head(flat_big, fm1, fb1, fm2, fb2, fm3, fb3,
                          out_dtype=jnp.float32)                  # (B, n3p)
    return logits_pad[:, :num_classes]


# -----------------------------------------------------------------------------
# Parameters, pure-JAX reference, and test harness
# -----------------------------------------------------------------------------
def init_lenet_params(key, num_classes):
    ks = jax.random.split(key, 10)

    def u(k, shape, fan_in):
        bound = 1.0 / (fan_in ** 0.5)
        return jax.random.uniform(k, shape, jnp.float32, -bound, bound)

    w1 = u(ks[0], (6, 1, 5, 5), 25)
    b1 = u(ks[1], (6,), 25)
    w2 = u(ks[2], (16, 6, 5, 5), 150)
    b2 = u(ks[3], (16,), 150)
    wf1 = u(ks[4], (120, 256), 256)
    bf1 = u(ks[5], (120,), 256)
    wf2 = u(ks[6], (84, 120), 120)
    bf2 = u(ks[7], (84,), 120)
    wf3 = u(ks[8], (num_classes, 84), 84)
    bf3 = u(ks[9], (num_classes,), 84)
    return (w1, b1, w2, b2, wf1, bf1, wf2, bf2, wf3, bf3)


def lenet_reference(x, params):
    w1, b1, w2, b2, wf1, bf1, wf2, bf2, wf3, bf3 = params

    def conv(inp, w, b):
        y = jax.lax.conv_general_dilated(
            inp, w, window_strides=(1, 1), padding="VALID",
            dimension_numbers=("NCHW", "OIHW", "NCHW"))
        return y + b[None, :, None, None]

    def pool(inp):
        return jax.lax.reduce_window(inp, -jnp.inf, jax.lax.max,
                                     (1, 1, 2, 2), (1, 1, 2, 2), "VALID")

    h = pool(jax.nn.relu(conv(x, w1, b1)))
    h = pool(jax.nn.relu(conv(h, w2, b2)))
    h = h.reshape(h.shape[0], -1)
    h = jax.nn.relu(h @ wf1.T + bf1)
    h = jax.nn.relu(h @ wf2.T + bf2)
    return h @ wf3.T + bf3


if __name__ == "__main__":
    key = jax.random.PRNGKey(0)
    k_x, k_p = jax.random.split(key)
    batch, num_classes = 2, 10

    x = jax.random.normal(k_x, (batch, 1, 28, 28), jnp.float32)
    params = init_lenet_params(k_p, num_classes)

    fwd = jax.jit(functools.partial(lenet_forward, num_classes=num_classes))
    out = jax.block_until_ready(fwd(x, params))
    assert out.shape == (batch, num_classes), out.shape

    ref = jax.block_until_ready(lenet_reference(x, params))
    if not bool(jnp.allclose(out, ref, rtol=3e-2, atol=3e-2)):
        max_err = float(jnp.max(jnp.abs(out - ref)))
        raise AssertionError(f"mismatch vs reference, max abs err = {max_err}")

    print("KERNEL_OK")
</pallas_src>

<mosaic_0001>
module attributes {stable_mosaic.version = 11 : i64} {
  func.func @_conv_relu_pool_kernel(%arg0: i32, %arg1: memref<288x32xf32, #tpu.memory_space<vmem>>, %arg2: memref<288x32xf32, #tpu.memory_space<vmem>>, %arg3: memref<288x32xf32, #tpu.memory_space<vmem>>, %arg4: memref<288x32xf32, #tpu.memory_space<vmem>>, %arg5: memref<32x128xf32, #tpu.memory_space<vmem>>, %arg6: memref<1x128xf32, #tpu.memory_space<vmem>>, %arg7: memref<288x128xf32, #tpu.memory_space<vmem>>) attributes {dimension_semantics = [#tpu.dimension_semantics<parallel>], iteration_bounds = array<i64: 1>, scalar_prefetch = 0 : i64, scratch_operands = 0 : i64, tpu.core_type = #tpu.core_type<tc>, window_params = [{transform_indices = @transform_0, window_bounds = array<i64: 288, 32>}, {transform_indices = @transform_1, window_bounds = array<i64: 288, 32>}, {transform_indices = @transform_2, window_bounds = array<i64: 288, 32>}, {transform_indices = @transform_3, window_bounds = array<i64: 288, 32>}, {pipeline_mode = #tpu.pipeline_mode<synchronous>, transform_indices = @transform_4, window_bounds = array<i64: 32, 128>}, {pipeline_mode = #tpu.pipeline_mode<synchronous>, transform_indices = @transform_5, window_bounds = array<i64: 1, 128>}, {transform_indices = @transform_6, window_bounds = array<i64: 288, 128>}]} {
    %c0 = arith.constant 0 : index
    %c0_0 = arith.constant 0 : index
    %0 = vector.load %arg5[%c0, %c0_0] : memref<32x128xf32, #tpu.memory_space<vmem>>, vector<32x128xf32>
    %c0_1 = arith.constant 0 : index
    %c0_2 = arith.constant 0 : index
    %1 = vector.load %arg6[%c0_1, %c0_2] : memref<1x128xf32, #tpu.memory_space<vmem>>, vector<1x128xf32>
    %c0_3 = arith.constant 0 : index
    %c0_4 = arith.constant 0 : index
    %2 = vector.load %arg1[%c0_3, %c0_4] : memref<288x32xf32, #tpu.memory_space<vmem>>, vector<288x32xf32>
    %cst = arith.constant dense<0.000000e+00> : vector<288x128xf32>
    %3 = tpu.matmul %2, %0, %cst {dimension_numbers = #tpu.dot_dimension_numbers<[1], [0], [0], [1], [0, 0, 1, 1], [], []>} : vector<288x32xf32>, vector<32x128xf32>, vector<288x128xf32> -> vector<288x128xf32>
    %4 = vector.broadcast %1 : vector<1x128xf32> to vector<288x128xf32>
    %5 = arith.addf %3, %4 : vector<288x128xf32>
    %cst_5 = arith.constant 0.000000e+00 : f32
    %6 = vector.broadcast %cst_5 : f32 to vector<288x128xf32>
    %7 = arith.maximumf %5, %6 : vector<288x128xf32>
    %c0_6 = arith.constant 0 : index
    %c0_7 = arith.constant 0 : index
    %8 = vector.load %arg2[%c0_6, %c0_7] : memref<288x32xf32, #tpu.memory_space<vmem>>, vector<288x32xf32>
    %cst_8 = arith.constant dense<0.000000e+00> : vector<288x128xf32>
    %9 = tpu.matmul %8, %0, %cst_8 {dimension_numbers = #tpu.dot_dimension_numbers<[1], [0], [0], [1], [0, 0, 1, 1], [], []>} : vector<288x32xf32>, vector<32x128xf32>, vector<288x128xf32> -> vector<288x128xf32>
    %10 = vector.broadcast %1 : vector<1x128xf32> to vector<288x128xf32>
    %11 = arith.addf %9, %10 : vector<288x128xf32>
    %cst_9 = arith.constant 0.000000e+00 : f32
    %12 = vector.broadcast %cst_9 : f32 to vector<288x128xf32>
    %13 = arith.maximumf %11, %12 : vector<288x128xf32>
    %14 = arith.maximumf %7, %13 : vector<288x128xf32>
    %c0_10 = arith.constant 0 : index
    %c0_11 = arith.constant 0 : index
    %15 = vector.load %arg3[%c0_10, %c0_11] : memref<288x32xf32, #tpu.memory_space<vmem>>, vector<288x32xf32>
    %cst_12 = arith.constant dense<0.000000e+00> : vector<288x128xf32>
    %16 = tpu.matmul %15, %0, %cst_12 {dimension_numbers = #tpu.dot_dimension_numbers<[1], [0], [0], [1], [0, 0, 1, 1], [], []>} : vector<288x32xf32>, vector<32x128xf32>, vector<288x128xf32> -> vector<288x128xf32>
    %17 = vector.broadcast %1 : vector<1x128xf32> to vector<288x128xf32>
    %18 = arith.addf %16, %17 : vector<288x128xf32>
    %cst_13 = arith.constant 0.000000e+00 : f32
    %19 = vector.broadcast %cst_13 : f32 to vector<288x128xf32>
    %20 = arith.maximumf %18, %19 : vector<288x128xf32>
    %c0_14 = arith.constant 0 : index
    %c0_15 = arith.constant 0 : index
    %21 = vector.load %arg4[%c0_14, %c0_15] : memref<288x32xf32, #tpu.memory_space<vmem>>, vector<288x32xf32>
    %cst_16 = arith.constant dense<0.000000e+00> : vector<288x128xf32>
    %22 = tpu.matmul %21, %0, %cst_16 {dimension_numbers = #tpu.dot_dimension_numbers<[1], [0], [0], [1], [0, 0, 1, 1], [], []>} : vector<288x32xf32>, vector<32x128xf32>, vector<288x128xf32> -> vector<288x128xf32>
    %23 = vector.broadcast %1 : vector<1x128xf32> to vector<288x128xf32>
    %24 = arith.addf %22, %23 : vector<288x128xf32>
    %cst_17 = arith.constant 0.000000e+00 : f32
    %25 = vector.broadcast %cst_17 : f32 to vector<288x128xf32>
    %26 = arith.maximumf %24, %25 : vector<288x128xf32>
    %27 = arith.maximumf %20, %26 : vector<288x128xf32>
    %28 = arith.maximumf %14, %27 : vector<288x128xf32>
    %c0_18 = arith.constant 0 : index
    %c0_19 = arith.constant 0 : index
    %29 = vector.load %arg7[%c0_18, %c0_19] : memref<288x128xf32, #tpu.memory_space<vmem>>, vector<288x128xf32>
    tpu.vector_store %arg7[%c0_18, %c0_19], %28 {strides = array<i32>} : memref<288x128xf32, #tpu.memory_space<vmem>>, vector<288x128xf32>,
    return
  }
  func.func @transform_0(%arg0: i32) -> (i32, i32) {
    %c0_i32 = arith.constant 0 : i32
    %c0_i32_0 = arith.constant 0 : i32
    return %arg0, %c0_i32 : i32, i32
  }
  func.func @transform_1(%arg0: i32) -> (i32, i32) {
    %c0_i32 = arith.constant 0 : i32
    %c0_i32_0 = arith.constant 0 : i32
    return %arg0, %c0_i32 : i32, i32
  }
  func.func @transform_2(%arg0: i32) -> (i32, i32) {
    %c0_i32 = arith.constant 0 : i32
    %c0_i32_0 = arith.constant 0 : i32
    return %arg0, %c0_i32 : i32, i32
  }
  func.func @transform_3(%arg0: i32) -> (i32, i32) {
    %c0_i32 = arith.constant 0 : i32
    %c0_i32_0 = arith.constant 0 : i32
    return %arg0, %c0_i32 : i32, i32
  }
  func.func @transform_4(%arg0: i32) -> (i32, i32) {
    %c0_i32 = arith.constant 0 : i32
    %c0_i32_0 = arith.constant 0 : i32
    %c0_i32_1 = arith.constant 0 : i32
    return %c0_i32, %c0_i32_0 : i32, i32
  }
  func.func @transform_5(%arg0: i32) -> (i32, i32) {
    %c0_i32 = arith.constant 0 : i32
    %c0_i32_0 = arith.constant 0 : i32
    %c0_i32_1 = arith.constant 0 : i32
    return %c0_i32, %c0_i32_0 : i32, i32
  }
  func.func @transform_6(%arg0: i32) -> (i32, i32) {
    %c0_i32 = arith.constant 0 : i32
    %c0_i32_0 = arith.constant 0 : i32
    return %arg0, %c0_i32 : i32, i32
  }
}

module attributes {stable_mosaic.version = 11 : i64} {
  func.func @_conv_relu_pool_kernel(%arg0: i32, %arg1: memref<32x152xf32, #tpu.memory_space<vmem>>, %arg2: memref<32x152xf32, #tpu.memory_space<vmem>>, %arg3: memref<32x152xf32, #tpu.memory_space<vmem>>, %arg4: memref<32x152xf32, #tpu.memory_space<vmem>>, %arg5: memref<152x128xf32, #tpu.memory_space<vmem>>, %arg6: memref<1x128xf32, #tpu.memory_space<vmem>>, %arg7: memref<32x128xf32, #tpu.memory_space<vmem>>) attributes {dimension_semantics = [#tpu.dimension_semantics<parallel>], iteration_bounds = array<i64: 1>, scalar_prefetch = 0 : i64, scratch_operands = 0 : i64, tpu.core_type = #tpu.core_type<tc>, window_params = [{transform_indices = @transform_0, window_bounds = array<i64: 32, 152>}, {transform_indices = @transform_1, window_bounds = array<i64: 32, 152>}, {transform_indices = @transform_2, window_bounds = array<i64: 32, 152>}, {transform_indices = @transform_3, window_bounds = array<i64: 32, 152>}, {pipeline_mode = #tpu.pipeline_mode<synchronous>, transform_indices = @transform_4, window_bounds = array<i64: 152, 128>}, {pipeline_mode = #tpu.pipeline_mode<synchronous>, transform_indices = @transform_5, window_bounds = array<i64: 1, 128>}, {transform_indices = @transform_6, window_bounds = array<i64: 32, 128>}]} {
    %c0 = arith.constant 0 : index
    %c0_0 = arith.constant 0 : index
    %0 = vector.load %arg5[%c0, %c0_0] : memref<152x128xf32, #tpu.memory_space<vmem>>, vector<152x128xf32>
    %c0_1 = arith.constant 0 : index
    %c0_2 = arith.constant 0 : index
    %1 = vector.load %arg6[%c0_1, %c0_2] : memref<1x128xf32, #tpu.memory_space<vmem>>, vector<1x128xf32>
    %c0_3 = arith.constant 0 : index
    %c0_4 = arith.constant 0 : index
    %2 = vector.load %arg1[%c0_3, %c0_4] : memref<32x152xf32, #tpu.memory_space<vmem>>, vector<32x152xf32>
    %cst = arith.constant dense<0.000000e+00> : vector<32x128xf32>
    %3 = tpu.matmul %2, %0, %cst {dimension_numbers = #tpu.dot_dimension_numbers<[1], [0], [0], [1], [0, 0, 1, 1], [], []>} : vector<32x152xf32>, vector<152x128xf32>, vector<32x128xf32> -> vector<32x128xf32>
    %4 = vector.broadcast %1 : vector<1x128xf32> to vector<32x128xf32>
    %5 = arith.addf %3, %4 : vector<32x128xf32>
    %cst_5 = arith.constant 0.000000e+00 : f32
    %6 = vector.broadcast %cst_5 : f32 to vector<32x128xf32>
    %7 = arith.maximumf %5, %6 : vector<32x128xf32>
    %c0_6 = arith.constant 0 : index
    %c0_7 = arith.constant 0 : index
    %8 = vector.load %arg2[%c0_6, %c0_7] : memref<32x152xf32, #tpu.memory_space<vmem>>, vector<32x152xf32>
    %cst_8 = arith.constant dense<0.000000e+00> : vector<32x128xf32>
    %9 = tpu.matmul %8, %0, %cst_8 {dimension_numbers = #tpu.dot_dimension_numbers<[1], [0], [0], [1], [0, 0, 1, 1], [], []>} : vector<32x152xf32>, vector<152x128xf32>, vector<32x128xf32> -> vector<32x128xf32>
    %10 = vector.broadcast %1 : vector<1x128xf32> to vector<32x128xf32>
    %11 = arith.addf %9, %10 : vector<32x128xf32>
    %cst_9 = arith.constant 0.000000e+00 : f32
    %12 = vector.broadcast %cst_9 : f32 to vector<32x128xf32>
    %13 = arith.maximumf %11, %12 : vector<32x128xf32>
    %14 = arith.maximumf %7, %13 : vector<32x128xf32>
    %c0_10 = arith.constant 0 : index
    %c0_11 = arith.constant 0 : index
    %15 = vector.load %arg3[%c0_10, %c0_11] : memref<32x152xf32, #tpu.memory_space<vmem>>, vector<32x152xf32>
    %cst_12 = arith.constant dense<0.000000e+00> : vector<32x128xf32>
    %16 = tpu.matmul %15, %0, %cst_12 {dimension_numbers = #tpu.dot_dimension_numbers<[1], [0], [0], [1], [0, 0, 1, 1], [], []>} : vector<32x152xf32>, vector<152x128xf32>, vector<32x128xf32> -> vector<32x128xf32>
    %17 = vector.broadcast %1 : vector<1x128xf32> to vector<32x128xf32>
    %18 = arith.addf %16, %17 : vector<32x128xf32>
    %cst_13 = arith.constant 0.000000e+00 : f32
    %19 = vector.broadcast %cst_13 : f32 to vector<32x128xf32>
    %20 = arith.maximumf %18, %19 : vector<32x128xf32>
    %c0_14 = arith.constant 0 : index
    %c0_15 = arith.constant 0 : index
    %21 = vector.load %arg4[%c0_14, %c0_15] : memref<32x152xf32, #tpu.memory_space<vmem>>, vector<32x152xf32>
    %cst_16 = arith.constant dense<0.000000e+00> : vector<32x128xf32>
    %22 = tpu.matmul %21, %0, %cst_16 {dimension_numbers = #tpu.dot_dimension_numbers<[1], [0], [0], [1], [0, 0, 1, 1], [], []>} : vector<32x152xf32>, vector<152x128xf32>, vector<32x128xf32> -> vector<32x128xf32>
    %23 = vector.broadcast %1 : vector<1x128xf32> to vector<32x128xf32>
    %24 = arith.addf %22, %23 : vector<32x128xf32>
    %cst_17 = arith.constant 0.000000e+00 : f32
    %25 = vector.broadcast %cst_17 : f32 to vector<32x128xf32>
    %26 = arith.maximumf %24, %25 : vector<32x128xf32>
    %27 = arith.maximumf %20, %26 : vector<32x128xf32>
    %28 = arith.maximumf %14, %27 : vector<32x128xf32>
    %c0_18 = arith.constant 0 : index
    %c0_19 = arith.constant 0 : index
    %29 = vector.load %arg7[%c0_18, %c0_19] : memref<32x128xf32, #tpu.memory_space<vmem>>, vector<32x128xf32>
    tpu.vector_store %arg7[%c0_18, %c0_19], %28 {strides = array<i32>} : memref<32x128xf32, #tpu.memory_space<vmem>>, vector<32x128xf32>,
    return
  }
  func.func @transform_0(%arg0: i32) -> (i32, i32) {
    %c0_i32 = arith.constant 0 : i32
    %c0_i32_0 = arith.constant 0 : i32
    return %arg0, %c0_i32 : i32, i32
  }
  func.func @transform_1(%arg0: i32) -> (i32, i32) {
    %c0_i32 = arith.constant 0 : i32
    %c0_i32_0 = arith.constant 0 : i32
    return %arg0, %c0_i32 : i32, i32
  }
  func.func @transform_2(%arg0: i32) -> (i32, i32) {
    %c0_i32 = arith.constant 0 : i32
    %c0_i32_0 = arith.constant 0 : i32
    return %arg0, %c0_i32 : i32, i32
  }
  func.func @transform_3(%arg0: i32) -> (i32, i32) {
    %c0_i32 = arith.constant 0 : i32
    %c0_i32_0 = arith.constant 0 : i32
    return %arg0, %c0_i32 : i32, i32
  }
  func.func @transform_4(%arg0: i32) -> (i32, i32) {
    %c0_i32 = arith.constant 0 : i32
    %c0_i32_0 = arith.constant 0 : i32
    %c0_i32_1 = arith.constant 0 : i32
    return %c0_i32, %c0_i32_0 : i32, i32
  }
  func.func @transform_5(%arg0: i32) -> (i32, i32) {
    %c0_i32 = arith.constant 0 : i32
    %c0_i32_0 = arith.constant 0 : i32
    %c0_i32_1 = arith.constant 0 : i32
    return %c0_i32, %c0_i32_0 : i32, i32
  }
  func.func @transform_6(%arg0: i32) -> (i32, i32) {
    %c0_i32 = arith.constant 0 : i32
    %c0_i32_0 = arith.constant 0 : i32
    return %arg0, %c0_i32 : i32, i32
  }
}

module attributes {stable_mosaic.version = 11 : i64} {
  func.func @_fc_head_kernel(%arg0: i32, %arg1: memref<2x2048xf32, #tpu.memory_space<vmem>>, %arg2: memref<2048x128xf32, #tpu.memory_space<vmem>>, %arg3: memref<1x128xf32, #tpu.memory_space<vmem>>, %arg4: memref<128x128xf32, #tpu.memory_space<vmem>>, %arg5: memref<1x128xf32, #tpu.memory_space<vmem>>, %arg6: memref<128x128xf32, #tpu.memory_space<vmem>>, %arg7: memref<1x128xf32, #tpu.memory_space<vmem>>, %arg8: memref<2x128xf32, #tpu.memory_space<vmem>>) attributes {dimension_semantics = [#tpu.dimension_semantics<parallel>], iteration_bounds = array<i64: 1>, scalar_prefetch = 0 : i64, scratch_operands = 0 : i64, tpu.core_type = #tpu.core_type<tc>, window_params = [{transform_indices = @transform_0, window_bounds = array<i64: 2, 2048>}, {pipeline_mode = #tpu.pipeline_mode<synchronous>, transform_indices = @transform_1, window_bounds = array<i64: 2048, 128>}, {pipeline_mode = #tpu.pipeline_mode<synchronous>, transform_indices = @transform_2, window_bounds = array<i64: 1, 128>}, {pipeline_mode = #tpu.pipeline_mode<synchronous>, transform_indices = @transform_3, window_bounds = array<i64: 128, 128>}, {pipeline_mode = #tpu.pipeline_mode<synchronous>, transform_indices = @transform_4, window_bounds = array<i64: 1, 128>}, {pipeline_mode = #tpu.pipeline_mode<synchronous>, transform_indices = @transform_5, window_bounds = array<i64: 128, 128>}, {pipeline_mode = #tpu.pipeline_mode<synchronous>, transform_indices = @transform_6, window_bounds = array<i64: 1, 128>}, {transform_indices = @transform_7, window_bounds = array<i64: 2, 128>}]} {
    %c0 = arith.constant 0 : index
    %c0_0 = arith.constant 0 : index
    %0 = vector.load %arg1[%c0, %c0_0] : memref<2x2048xf32, #tpu.memory_space<vmem>>, vector<2x2048xf32>
    %c0_1 = arith.constant 0 : index
    %c0_2 = arith.constant 0 : index
    %1 = vector.load %arg2[%c0_1, %c0_2] : memref<2048x128xf32, #tpu.memory_space<vmem>>, vector<2048x128xf32>
    %cst = arith.constant dense<0.000000e+00> : vector<2x128xf32>
    %2 = tpu.matmul %0, %1, %cst {dimension_numbers = #tpu.dot_dimension_numbers<[1], [0], [0], [1], [0, 0, 1, 1], [], []>} : vector<2x2048xf32>, vector<2048x128xf32>, vector<2x128xf32> -> vector<2x128xf32>
    %c0_3 = arith.constant 0 : index
    %c0_4 = arith.constant 0 : index
    %3 = vector.load %arg3[%c0_3, %c0_4] : memref<1x128xf32, #tpu.memory_space<vmem>>, vector<1x128xf32>
    %4 = vector.broadcast %3 : vector<1x128xf32> to vector<2x128xf32>
    %5 = arith.addf %2, %4 : vector<2x128xf32>
    %cst_5 = arith.constant 0.000000e+00 : f32
    %6 = vector.broadcast %cst_5 : f32 to vector<2x128xf32>
    %7 = arith.maximumf %5, %6 : vector<2x128xf32>
    %c0_6 = arith.constant 0 : index
    %c0_7 = arith.constant 0 : index
    %8 = vector.load %arg4[%c0_6, %c0_7] : memref<128x128xf32, #tpu.memory_space<vmem>>, vector<128x128xf32>
    %cst_8 = arith.constant dense<0.000000e+00> : vector<2x128xf32>
    %9 = tpu.matmul %7, %8, %cst_8 {dimension_numbers = #tpu.dot_dimension_numbers<[1], [0], [0], [1], [0, 0, 1, 1], [], []>} : vector<2x128xf32>, vector<128x128xf32>, vector<2x128xf32> -> vector<2x128xf32>
    %c0_9 = arith.constant 0 : index
    %c0_10 = arith.constant 0 : index
    %10 = vector.load %arg5[%c0_9, %c0_10] : memref<1x128xf32, #tpu.memory_space<vmem>>, vector<1x128xf32>
    %11 = vector.broadcast %10 : vector<1x128xf32> to vector<2x128xf32>
    %12 = arith.addf %9, %11 : vector<2x128xf32>
    %cst_11 = arith.constant 0.000000e+00 : f32
    %13 = vector.broadcast %cst_11 : f32 to vector<2x128xf32>
    %14 = arith.maximumf %12, %13 : vector<2x128xf32>
    %c0_12 = arith.constant 0 : index
    %c0_13 = arith.constant 0 : index
    %15 = vector.load %arg6[%c0_12, %c0_13] : memref<128x128xf32, #tpu.memory_space<vmem>>, vector<128x128xf32>
    %cst_14 = arith.constant dense<0.000000e+00> : vector<2x128xf32>
    %16 = tpu.matmul %14, %15, %cst_14 {dimension_numbers = #tpu.dot_dimension_numbers<[1], [0], [0], [1], [0, 0, 1, 1], [], []>} : vector<2x128xf32>, vector<128x128xf32>, vector<2x128xf32> -> vector<2x128xf32>
    %c0_15 = arith.constant 0 : index
    %c0_16 = arith.constant 0 : index
    %17 = vector.load %arg7[%c0_15, %c0_16] : memref<1x128xf32, #tpu.memory_space<vmem>>, vector<1x128xf32>
    %18 = vector.broadcast %17 : vector<1x128xf32> to vector<2x128xf32>
    %19 = arith.addf %16, %18 : vector<2x128xf32>
    %c0_17 = arith.constant 0 : index
    %c0_18 = arith.constant 0 : index
    %20 = vector.load %arg8[%c0_17, %c0_18] : memref<2x128xf32, #tpu.memory_space<vmem>>, vector<2x128xf32>
    tpu.vector_store %arg8[%c0_17, %c0_18], %19 {strides = array<i32>} : memref<2x128xf32, #tpu.memory_space<vmem>>, vector<2x128xf32>,
    return
  }
  func.func @transform_0(%arg0: i32) -> (i32, i32) {
    %c0_i32 = arith.constant 0 : i32
    %c0_i32_0 = arith.constant 0 : i32
    return %arg0, %c0_i32 : i32, i32
  }
  func.func @transform_1(%arg0: i32) -> (i32, i32) {
    %c0_i32 = arith.constant 0 : i32
    %c0_i32_0 = arith.constant 0 : i32
    %c0_i32_1 = arith.constant 0 : i32
    return %c0_i32, %c0_i32_0 : i32, i32
  }
  func.func @transform_2(%arg0: i32) -> (i32, i32) {
    %c0_i32 = arith.constant 0 : i32
    %c0_i32_0 = arith.constant 0 : i32
    %c0_i32_1 = arith.constant 0 : i32
    return %c0_i32, %c0_i32_0 : i32, i32
  }
  func.func @transform_3(%arg0: i32) -> (i32, i32) {
    %c0_i32 = arith.constant 0 : i32
    %c0_i32_0 = arith.constant 0 : i32
    %c0_i32_1 = arith.constant 0 : i32
    return %c0_i32, %c0_i32_0 : i32, i32
  }
  func.func @transform_4(%arg0: i32) -> (i32, i32) {
    %c0_i32 = arith.constant 0 : i32
    %c0_i32_0 = arith.constant 0 : i32
    %c0_i32_1 = arith.constant 0 : i32
    return %c0_i32, %c0_i32_0 : i32, i32
  }
  func.func @transform_5(%arg0: i32) -> (i32, i32) {
    %c0_i32 = arith.constant 0 : i32
    %c0_i32_0 = arith.constant 0 : i32
    %c0_i32_1 = arith.constant 0 : i32
    return %c0_i32, %c0_i32_0 : i32, i32
  }
  func.func @transform_6(%arg0: i32) -> (i32, i32) {
    %c0_i32 = arith.constant 0 : i32
    %c0_i32_0 = arith.constant 0 : i32
    %c0_i32_1 = arith.constant 0 : i32
    return %c0_i32, %c0_i32_0 : i32, i32
  }
  func.func @transform_7(%arg0: i32) -> (i32, i32) {
    %c0_i32 = arith.constant 0 : i32
    %c0_i32_0 = arith.constant 0 : i32
    return %arg0, %c0_i32 : i32, i32
  }
}

</mosaic_0001>

<bundles_post_ra>
// kernel: lenet_forward.3
= control target key start
LH: loop header
LB: loop body
LE: loop exit
PB: predicated region body
PF: predicated region fallthrough
CT: control target
= control target key end

     0   :  { %vm67_vm0 = vcmask 261120   ;;  %s2431_s4 = inlined_call_operand.vmem [shape: f32[32,128], index: 4, kind: input, shape index: {}]   ;;  %s2432_s2 = inlined_call_operand.vmem [shape: f32[288,32], index: 2, kind: input, shape index: {}]   ;;  %s2433_s3 = inlined_call_operand.vmem [shape: f32[288,32], index: 3, kind: input, shape index: {}]   ;;  %s2434_s0 = inlined_call_operand.vmem [shape: f32[288,32], index: 0, kind: input, shape index: {}]   ;;  %s2435_s1 = inlined_call_operand.vmem [shape: f32[288,32], index: 1, kind: input, shape index: {}]   ;;  %s2436_s5 = inlined_call_operand.vmem [shape: f32[1,128], index: 5, kind: input, shape index: {}]   ;;  %s2437_s6 = inlined_call_operand.vmem [shape: f32[288,128], index: 6, kind: output, shape index: {}]  }
   0x1   :  { %v26_v0 = vld [vmem:[%s2431_s4 + $0x18] sm:$0xff]  ;;  %v25_v1 = vld [vmem:[%s2431_s4 + $0x10] sm:$0xff]  ;;  %v24_v2 = vld [vmem:[%s2431_s4 + $0x8] sm:$0xff] }
   0x2   :  { %834 = vmatpush.msra.mxu2 %v26_v0  ;;  %1139 = vmatpush.msra.mxu3 %v26_v0  ;;  %v23_v3 = vld [vmem:[%s2431_s4] sm:$0xff]  ;;  %v679_v8 = vld [vmem:[%s2432_s2 + $0x8] sm:$0xff]  ;;  %v680_v12 = vld [vmem:[%s2432_s2 + $0x10] sm:$0xff] }
   0x3   :  { %188 = vmatpush.msra.mxu0 %v26_v0  ;;  %493 = vmatpush.msra.mxu1 %v26_v0  ;;  %v678_v4 = vld [vmem:[%s2432_s2] sm:$0xff]  ;;  %v984_v9 = vld [vmem:[%s2433_s3 + $0x8] sm:$0xff]  ;;  %v985_v13 = vld [vmem:[%s2433_s3 + $0x10] sm:$0xff] }
   0x4   :  { %835 = vmatpush.msra.mxu2 %v25_v1  ;;  %1140 = vmatpush.msra.mxu3 %v25_v1  ;;  %v983_v5 = vld [vmem:[%s2433_s3] sm:$0xff]  ;;  %v29_v10 = vld [vmem:[%s2434_s0 + $0x8] sm:$0xff]  ;;  %v30_v14 = vld [vmem:[%s2434_s0 + $0x10] sm:$0xff] }
   0x5   :  { %189 = vmatpush.msra.mxu0 %v25_v1  ;;  %494 = vmatpush.msra.mxu1 %v25_v1  ;;  %v28_v6 = vld [vmem:[%s2434_s0] sm:$0xff]  ;;  %v338_v11 = vld [vmem:[%s2435_s1 + $0x8] sm:$0xff]  ;;  %v339_v15 = vld [vmem:[%s2435_s1 + $0x10] sm:$0xff] }
   0x6   :  { %836 = vmatpush.msra.mxu2 %v24_v2  ;;  %1141 = vmatpush.msra.mxu3 %v24_v2  ;;  %v337_v7 = vld [vmem:[%s2435_s1] sm:$0xff]  ;;  %v681_v16 = vld [vmem:[%s2432_s2 + $0x18] sm:$0xff]  ;;  %v683_v24 = vld [vmem:[%s2432_s2 + $0x28] sm:$0xff] }
   0x7   :  { %190 = vmatpush.msra.mxu0 %v24_v2  ;;  %495 = vmatpush.msra.mxu1 %v24_v2  ;;  %v986_v17 = vld [vmem:[%s2433_s3 + $0x18] sm:$0xff]  ;;  %v682_v20 = vld [vmem:[%s2432_s2 + $0x20] sm:$0xff]  ;;  %v988_v25 = vld [vmem:[%s2433_s3 + $0x28] sm:$0xff] }
   0x8   :  { %837 = vmatpush.msra.mxu2 %v23_v3  ;;  %1142 = vmatpush.msra.mxu3 %v23_v3  ;;  %v31_v18 = vld [vmem:[%s2434_s0 + $0x18] sm:$0xff]  ;;  %v987_v21 = vld [vmem:[%s2433_s3 + $0x20] sm:$0xff]  ;;  %v33_v26 = vld [vmem:[%s2434_s0 + $0x28] sm:$0xff] }
   0x9   :  { %1472 = vmatmul.msk.f32.vlgmr.msra.gmra.mxu2 %vm67_vm0, %v678_v4  ;;  %1508 = vmatmul.msk.f32.vlgmr.msra.gmra.mxu3 %vm67_vm0, %v983_v5  ;;  %v340_v19 = vld [vmem:[%s2435_s1 + $0x18] sm:$0xff]  ;;  %v32_v22 = vld [vmem:[%s2434_s0 + $0x20] sm:$0xff]  ;;  %v342_v27 = vld [vmem:[%s2435_s1 + $0x28] sm:$0xff] }
   0xa   :  { %191 = vmatpush.msra.mxu0 %v23_v3  ;;  %496 = vmatpush.msra.mxu1 %v23_v3  ;;  %v341_v23 = vld [vmem:[%s2435_s1 + $0x20] sm:$0xff]  ;;  %v684_v28 = vld [vmem:[%s2432_s2 + $0x30] sm:$0xff]  ;;  %v685_v32 = vld [vmem:[%s2432_s2 + $0x38] sm:$0xff] }
   0xb   :  { %1400 = vmatmul.msk.f32.vlgmr.msra.gmra.mxu0 %vm67_vm0, %v28_v6  ;;  %1436 = vmatmul.msk.f32.vlgmr.msra.gmra.mxu1 %vm67_vm0, %v337_v7  ;;  %v989_v29 = vld [vmem:[%s2433_s3 + $0x30] sm:$0xff]  ;;  %v990_v33 = vld [vmem:[%s2433_s3 + $0x38] sm:$0xff]  ;;  %v686_v36 = vld [vmem:[%s2432_s2 + $0x40] sm:$0xff] }
   0xc   :  { %v34_v30 = vld [vmem:[%s2434_s0 + $0x30] sm:$0xff]  ;;  %v35_v34 = vld [vmem:[%s2434_s0 + $0x38] sm:$0xff]  ;;  %v991_v37 = vld [vmem:[%s2433_s3 + $0x40] sm:$0xff] }
   0xd   :  { %v343_v31 = vld [vmem:[%s2435_s1 + $0x30] sm:$0xff]  ;;  %v344_v35 = vld [vmem:[%s2435_s1 + $0x38] sm:$0xff]  ;;  %v36_v38 = vld [vmem:[%s2434_s0 + $0x40] sm:$0xff] }
   0xe   :  { %v345_v39 = vld [vmem:[%s2435_s1 + $0x40] sm:$0xff]  ;;  %v687_v40 = vld [vmem:[%s2432_s2 + $0x48] sm:$0xff]  ;;  %v688_v44 = vld [vmem:[%s2432_s2 + $0x50] sm:$0xff] }
   0xf   :  { %v992_v41 = vld [vmem:[%s2433_s3 + $0x48] sm:$0xff]  ;;  %v993_v45 = vld [vmem:[%s2433_s3 + $0x50] sm:$0xff]  ;;  %v689_v48 = vld [vmem:[%s2432_s2 + $0x58] sm:$0xff] }
  0x10   :  { %v37_v42 = vld [vmem:[%s2434_s0 + $0x48] sm:$0xff]  ;;  %v38_v46 = vld [vmem:[%s2434_s0 + $0x50] sm:$0xff]  ;;  %v994_v49 = vld [vmem:[%s2433_s3 + $0x58] sm:$0xff] }
  0x11   :  { %1473 = vmatmul.msk.f32.gmra.mxu2 %vm67_vm0, %v679_v8  ;;  %1509 = vmatmul.msk.f32.gmra.mxu3 %vm67_vm0, %v984_v9  ;;  %v346_v43 = vld [vmem:[%s2435_s1 + $0x48] sm:$0xff]  ;;  %v347_v47 = vld [vmem:[%s2435_s1 + $0x50] sm:$0xff]  ;;  %v39_v50 = vld [vmem:[%s2434_s0 + $0x58] sm:$0xff] }
  0x12   :  { %v348_v51 = vld [vmem:[%s2435_s1 + $0x58] sm:$0xff]  ;;  %v690_v52 = vld [vmem:[%s2432_s2 + $0x60] sm:$0xff]  ;;  %v691_v56 = vld [vmem:[%s2432_s2 + $0x68] sm:$0xff] }
  0x13   :  { %1401 = vmatmul.msk.f32.gmra.mxu0 %vm67_vm0, %v29_v10  ;;  %1437 = vmatmul.msk.f32.gmra.mxu1 %vm67_vm0, %v338_v11  ;;  %v995_v53 = vld [vmem:[%s2433_s3 + $0x60] sm:$0xff]  ;;  %v996_v57 = vld [vmem:[%s2433_s3 + $0x68] sm:$0xff]  ;;  %v692_v60 = vld [vmem:[%s2432_s2 + $0x70] sm:$0xff] }
  0x14   :  { %v40_v54 = vld [vmem:[%s2434_s0 + $0x60] sm:$0xff]  ;;  %v41_v58 = vld [vmem:[%s2434_s0 + $0x68] sm:$0xff]  ;;  %v997_v61 = vld [vmem:[%s2433_s3 + $0x70] sm:$0xff] }
  0x15   :  { %v349_v55 = vld [vmem:[%s2435_s1 + $0x60] sm:$0xff]  ;;  %v350_v59 = vld [vmem:[%s2435_s1 + $0x68] sm:$0xff]  ;;  %v42_v62 = vld [vmem:[%s2434_s0 + $0x70] sm:$0xff] }
  0x16   :  { %v351_v63 = vld [vmem:[%s2435_s1 + $0x70] sm:$0xff]  ;;  %v693_v0 = vld [vmem:[%s2432_s2 + $0x78] sm:$0xff]  ;;  %v1852_v4 = vld [vmem:[%s2436_s5] ss:$0 sm:$0xff] }
  0x17   :  { %v998_v1 = vld [vmem:[%s2433_s3 + $0x78] sm:$0xff]  ;;  %v694_v5 = vld [vmem:[%s2432_s2 + $0x80] sm:$0xff] }
  0x18   :  { %v43_v2 = vld [vmem:[%s2434_s0 + $0x78] sm:$0xff]  ;;  %v999_v6 = vld [vmem:[%s2433_s3 + $0x80] sm:$0xff] }
  0x19   :  { %1474 = vmatmul.msk.f32.gmra.mxu2 %vm67_vm0, %v680_v12  ;;  %1510 = vmatmul.msk.f32.gmra.mxu3 %vm67_vm0, %v985_v13  ;;  %v352_v3 = vld [vmem:[%s2435_s1 + $0x78] sm:$0xff]  ;;  %v44_v9 = vld [vmem:[%s2434_s0 + $0x80] sm:$0xff] }
  0x1a   :  { %v353_v10 = vld [vmem:[%s2435_s1 + $0x80] sm:$0xff] }
  0x1b   :  { %1402 = vmatmul.msk.f32.gmra.mxu0 %vm67_vm0, %v30_v14  ;;  %1438 = vmatmul.msk.f32.gmra.mxu1 %vm67_vm0, %v339_v15 }
  0x21   :  { %1475 = vmatmul.msk.f32.gmra.mxu2 %vm67_vm0, %v681_v16  ;;  %1511 = vmatmul.msk.f32.gmra.mxu3 %vm67_vm0, %v986_v17 }
  0x23   :  { %1403 = vmatmul.msk.f32.gmra.mxu0 %vm67_vm0, %v31_v18  ;;  %1439 = vmatmul.msk.f32.gmra.mxu1 %vm67_vm0, %v340_v19  ;;  %v695_v19 = vld [vmem:[%s2432_s2 + $0x88] sm:$0xff] }
  0x29   :  { %1476 = vmatmul.msk.f32.gmra.mxu2 %vm67_vm0, %v682_v20  ;;  %1512 = vmatmul.msk.f32.gmra.mxu3 %vm67_vm0, %v987_v21  ;;  %v1000_v20 = vld [vmem:[%s2433_s3 + $0x88] sm:$0xff] }
  0x2b   :  { %1404 = vmatmul.msk.f32.gmra.mxu0 %vm67_vm0, %v32_v22  ;;  %1440 = vmatmul.msk.f32.gmra.mxu1 %vm67_vm0, %v341_v23 }
  0x31   :  { %1477 = vmatmul.msk.f32.gmra.mxu2 %vm67_vm0, %v683_v24  ;;  %1513 = vmatmul.msk.f32.gmra.mxu3 %vm67_vm0, %v988_v25 }
  0x33   :  { %1405 = vmatmul.msk.f32.gmra.mxu0 %vm67_vm0, %v33_v26  ;;  %1441 = vmatmul.msk.f32.gmra.mxu1 %vm67_vm0, %v342_v27  ;;  %v45_v26 = vld [vmem:[%s2434_s0 + $0x88] sm:$0xff] }
  0x34   :  { %v354_v27 = vld [vmem:[%s2435_s1 + $0x88] sm:$0xff] }
  0x39   :  { %1478 = vmatmul.msk.f32.gmra.mxu2 %vm67_vm0, %v684_v28  ;;  %1514 = vmatmul.msk.f32.gmra.mxu3 %vm67_vm0, %v989_v29 }
  0x3b   :  { %1406 = vmatmul.msk.f32.gmra.mxu0 %vm67_vm0, %v34_v30  ;;  %1442 = vmatmul.msk.f32.gmra.mxu1 %vm67_vm0, %v343_v31 }
  0x41   :  { %1479 = vmatmul.msk.f32.gmra.mxu2 %vm67_vm0, %v685_v32  ;;  %1515 = vmatmul.msk.f32.gmra.mxu3 %vm67_vm0, %v990_v33 }
  0x43   :  { %1407 = vmatmul.msk.f32.gmra.mxu0 %vm67_vm0, %v35_v34  ;;  %1443 = vmatmul.msk.f32.gmra.mxu1 %vm67_vm0, %v344_v35 }
  0x49   :  { %1480 = vmatmul.msk.f32.gmra.mxu2 %vm67_vm0, %v686_v36  ;;  %1516 = vmatmul.msk.f32.gmra.mxu3 %vm67_vm0, %v991_v37 }
  0x4b   :  { %1408 = vmatmul.msk.f32.gmra.mxu0 %vm67_vm0, %v36_v38  ;;  %1444 = vmatmul.msk.f32.gmra.mxu1 %vm67_vm0, %v345_v39  ;;  %v696_v38 = vld [vmem:[%s2432_s2 + $0x90] sm:$0xff] }
  0x4c   :  { %v1001_v39 = vld [vmem:[%s2433_s3 + $0x90] sm:$0xff] }
  0x51   :  { %1481 = vmatmul.msk.f32.gmra.mxu2 %vm67_vm0, %v687_v40  ;;  %1517 = vmatmul.msk.f32.gmra.mxu3 %vm67_vm0, %v992_v41 }
  0x53   :  { %1409 = vmatmul.msk.f32.gmra.mxu0 %vm67_vm0, %v37_v42  ;;  %1445 = vmatmul.msk.f32.gmra.mxu1 %vm67_vm0, %v346_v43 }
  0x59   :  { %1482 = vmatmul.msk.f32.gmra.mxu2 %vm67_vm0, %v688_v44  ;;  %1518 = vmatmul.msk.f32.gmra.mxu3 %vm67_vm0, %v993_v45  ;;  %v46_v45 = vld [vmem:[%s2434_s0 + $0x90] sm:$0xff] }
  0x5b   :  { %1410 = vmatmul.msk.f32.gmra.mxu0 %vm67_vm0, %v38_v46  ;;  %1446 = vmatmul.msk.f32.gmra.mxu1 %vm67_vm0, %v347_v47  ;;  %v355_v46 = vld [vmem:[%s2435_s1 + $0x90] sm:$0xff] }
  0x61   :  { %1483 = vmatmul.msk.f32.gmra.mxu2 %vm67_vm0, %v689_v48  ;;  %1519 = vmatmul.msk.f32.gmra.mxu3 %vm67_vm0, %v994_v49 }
  0x63   :  { %1411 = vmatmul.msk.f32.gmra.mxu0 %vm67_vm0, %v39_v50  ;;  %1447 = vmatmul.msk.f32.gmra.mxu1 %vm67_vm0, %v348_v51 }
  0x69   :  { %1484 = vmatmul.msk.f32.gmra.mxu2 %vm67_vm0, %v690_v52  ;;  %1520 = vmatmul.msk.f32.gmra.mxu3 %vm67_vm0, %v995_v53 }
  0x6b   :  { %1412 = vmatmul.msk.f32.gmra.mxu0 %vm67_vm0, %v40_v54  ;;  %1448 = vmatmul.msk.f32.gmra.mxu1 %vm67_vm0, %v349_v55 }
  0x71   :  { %1485 = vmatmul.msk.f32.gmra.mxu2 %vm67_vm0, %v691_v56  ;;  %1521 = vmatmul.msk.f32.gmra.mxu3 %vm67_vm0, %v996_v57  ;;  %v697_v57 = vld [vmem:[%s2432_s2 + $0x98] sm:$0xff] }
  0x73   :  { %1413 = vmatmul.msk.f32.gmra.mxu0 %vm67_vm0, %v41_v58  ;;  %1449 = vmatmul.msk.f32.gmra.mxu1 %vm67_vm0, %v350_v59  ;;  %v1002_v58 = vld [vmem:[%s2433_s3 + $0x98] sm:$0xff] }
  0x79   :  { %1486 = vmatmul.msk.f32.gmra.mxu2 %vm67_vm0, %v692_v60  ;;  %1522 = vmatmul.msk.f32.gmra.mxu3 %vm67_vm0, %v997_v61 }
  0x7b   :  { %1414 = vmatmul.msk.f32.gmra.mxu0 %vm67_vm0, %v42_v62  ;;  %1450 = vmatmul.msk.f32.gmra.mxu1 %vm67_vm0, %v351_v63 }
  0x81   :  { %1487 = vmatmul.msk.f32.gmra.mxu2 %vm67_vm0, %v693_v0  ;;  %1523 = vmatmul.msk.f32.gmra.mxu3 %vm67_vm0, %v998_v1  ;;  %v47_v0 = vld [vmem:[%s2434_s0 + $0x98] sm:$0xff] }
  0x82   :  { %v356_v1 = vld [vmem:[%s2435_s1 + $0x98] sm:$0xff] }
  0x83   :  { %1415 = vmatmul.msk.f32.gmra.mxu0 %vm67_vm0, %v43_v2  ;;  %1451 = vmatmul.msk.f32.gmra.mxu1 %vm67_vm0, %v352_v3 }
  0x88   :  { %v193_v7 = vpop.f32.mrf.mxu0  ;;  %v498_v8 = vpop.f32.mrf.mxu1 }
  0x89   :  { %1488 = vmatmul.msk.f32.gmra.mxu2 %vm67_vm0, %v694_v5  ;;  %1524 = vmatmul.msk.f32.gmra.mxu3 %vm67_vm0, %v999_v6  ;;  %v194_v11 = vadd.f32 %v1852_v4, %v193_v7  ;;  %v499_v12 = vadd.f32 %v1852_v4, %v498_v8 }
  0x8b   :  { %v301_v13 = vmax.f32 %v194_v11, 0.0  ;;  %v606_v14 = vmax.f32 %v499_v12, 0.0  ;;  %1416 = vmatmul.msk.f32.gmra.mxu0 %vm67_vm0, %v44_v9  ;;  %1452 = vmatmul.msk.f32.gmra.mxu1 %vm67_vm0, %v353_v10 }
  0x8c   :  { %v839_v15 = vpop.f32.mrf.mxu2  ;;  %v1144_v16 = vpop.f32.mrf.mxu3 }
  0x8d   :  { %v840_v17 = vadd.f32 %v1852_v4, %v839_v15  ;;  %v1145_v18 = vadd.f32 %v1852_v4, %v1144_v16  ;;  %v642_v21 = vmax.f32 %v301_v13, %v606_v14  ;;  %v698_v13 = vld [vmem:[%s2432_s2 + $0xa0] sm:$0xff] }
  0x8e   :  { %v1003_v14 = vld [vmem:[%s2433_s3 + $0xa0] sm:$0xff] }
  0x8f   :  { %v947_v22 = vmax.f32 %v840_v17, 0.0  ;;  %v1252_v23 = vmax.f32 %v1145_v18, 0.0 }
  0x90   :  { %v196_v24 = vpop.f32.mrf.mxu0  ;;  %v501_v25 = vpop.f32.mrf.mxu1 }
  0x91   :  { %v1288_v28 = vmax.f32 %v947_v22, %v1252_v23  ;;  %1489 = vmatmul.msk.f32.gmra.mxu2 %vm67_vm0, %v695_v19  ;;  %1525 = vmatmul.msk.f32.gmra.mxu3 %vm67_vm0, %v1000_v20  ;;  %v197_v29 = vadd.f32 %v1852_v4, %v196_v24  ;;  %v502_v30 = vadd.f32 %v1852_v4, %v501_v25  ;;  %v48_v20 = vld [vmem:[%s2434_s0 + $0xa0] sm:$0xff] }
  0x93   :  { %v1324_v31 = vmax.f32 %v642_v21, %v1288_v28  ;;  %v302_v32 = vmax.f32 %v197_v29, 0.0  ;;  %v607_v33 = vmax.f32 %v502_v30, 0.0  ;;  %1417 = vmatmul.msk.f32.gmra.mxu0 %vm67_vm0, %v45_v26  ;;  %1453 = vmatmul.msk.f32.gmra.mxu1 %vm67_vm0, %v354_v27  ;;  %v357_v21 = vld [vmem:[%s2435_s1 + $0xa0] sm:$0xff] }
  0x94   :  { %v842_v34 = vpop.f32.mrf.mxu2  ;;  %v1147_v35 = vpop.f32.mrf.mxu3 }
  0x95   :  { %1360 = vst [vmem:[%s2437_s6] sm:$0xff] %v1324_v31  ;;  %v843_v36 = vadd.f32 %v1852_v4, %v842_v34  ;;  %v1148_v37 = vadd.f32 %v1852_v4, %v1147_v35  ;;  %v643_v40 = vmax.f32 %v302_v32, %v607_v33  ;;  %v699_v32 = vld [vmem:[%s2432_s2 + $0xa8] sm:$0xff] }
  0x96   :  { %v1004_v33 = vld [vmem:[%s2433_s3 + $0xa8] sm:$0xff] }
  0x97   :  { %v948_v41 = vmax.f32 %v843_v36, 0.0  ;;  %v1253_v42 = vmax.f32 %v1148_v37, 0.0 }
  0x98   :  { %v199_v43 = vpop.f32.mrf.mxu0  ;;  %v504_v44 = vpop.f32.mrf.mxu1 }
  0x99   :  { %v1289_v47 = vmax.f32 %v948_v41, %v1253_v42  ;;  %1490 = vmatmul.msk.f32.gmra.mxu2 %vm67_vm0, %v696_v38  ;;  %1526 = vmatmul.msk.f32.gmra.mxu3 %vm67_vm0, %v1001_v39  ;;  %v200_v48 = vadd.f32 %v1852_v4, %v199_v43  ;;  %v505_v49 = vadd.f32 %v1852_v4, %v504_v44  ;;  %v49_v39 = vld [vmem:[%s2434_s0 + $0xa8] sm:$0xff] }
  0x9b   :  { %v1325_v50 = vmax.f32 %v643_v40, %v1289_v47  ;;  %v303_v51 = vmax.f32 %v200_v48, 0.0  ;;  %v608_v52 = vmax.f32 %v505_v49, 0.0  ;;  %1418 = vmatmul.msk.f32.gmra.mxu0 %vm67_vm0, %v46_v45  ;;  %1454 = vmatmul.msk.f32.gmra.mxu1 %vm67_vm0, %v355_v46  ;;  %v358_v40 = vld [vmem:[%s2435_s1 + $0xa8] sm:$0xff] }
  0x9c   :  { %v845_v53 = vpop.f32.mrf.mxu2  ;;  %v1150_v54 = vpop.f32.mrf.mxu3 }
  0x9d   :  { %1361 = vst [vmem:[%s2437_s6 + $0x8] sm:$0xff] %v1325_v50  ;;  %v846_v55 = vadd.f32 %v1852_v4, %v845_v53  ;;  %v1151_v56 = vadd.f32 %v1852_v4, %v1150_v54  ;;  %v644_v59 = vmax.f32 %v303_v51, %v608_v52  ;;  %v700_v51 = vld [vmem:[%s2432_s2 + $0xb0] sm:$0xff] }
  0x9e   :  { %v1005_v52 = vld [vmem:[%s2433_s3 + $0xb0] sm:$0xff] }
  0x9f   :  { %v949_v60 = vmax.f32 %v846_v55, 0.0  ;;  %v1254_v61 = vmax.f32 %v1151_v56, 0.0 }
  0xa0   :  { %v202_v62 = vpop.f32.mrf.mxu0  ;;  %v507_v63 = vpop.f32.mrf.mxu1 }
  0xa1   :  { %v1290_v2 = vmax.f32 %v949_v60, %v1254_v61  ;;  %1491 = vmatmul.msk.f32.gmra.mxu2 %vm67_vm0, %v697_v57  ;;  %1527 = vmatmul.msk.f32.gmra.mxu3 %vm67_vm0, %v1002_v58  ;;  %v203_v3 = vadd.f32 %v1852_v4, %v202_v62  ;;  %v508_v5 = vadd.f32 %v1852_v4, %v507_v63  ;;  %v50_v58 = vld [vmem:[%s2434_s0 + $0xb0] sm:$0xff] }
  0xa3   :  { %v1326_v6 = vmax.f32 %v644_v59, %v1290_v2  ;;  %v304_v7 = vmax.f32 %v203_v3, 0.0  ;;  %v609_v8 = vmax.f32 %v508_v5, 0.0  ;;  %1419 = vmatmul.msk.f32.gmra.mxu0 %vm67_vm0, %v47_v0  ;;  %1455 = vmatmul.msk.f32.gmra.mxu1 %vm67_vm0, %v356_v1  ;;  %v359_v59 = vld [vmem:[%s2435_s1 + $0xb0] sm:$0xff] }
  0xa4   :  { %v848_v9 = vpop.f32.mrf.mxu2  ;;  %v1153_v10 = vpop.f32.mrf.mxu3 }
  0xa5   :  { %1362 = vst [vmem:[%s2437_s6 + $0x10] sm:$0xff] %v1326_v6  ;;  %v849_v11 = vadd.f32 %v1852_v4, %v848_v9  ;;  %v1154_v12 = vadd.f32 %v1852_v4, %v1153_v10  ;;  %v645_v15 = vmax.f32 %v304_v7, %v609_v8  ;;  %v701_v7 = vld [vmem:[%s2432_s2 + $0xb8] sm:$0xff] }
  0xa6   :  { %v1006_v8 = vld [vmem:[%s2433_s3 + $0xb8] sm:$0xff] }
  0xa7   :  { %v950_v16 = vmax.f32 %v849_v11, 0.0  ;;  %v1255_v17 = vmax.f32 %v1154_v12, 0.0 }
  0xa8   :  { %v205_v18 = vpop.f32.mrf.mxu0  ;;  %v510_v19 = vpop.f32.mrf.mxu1 }
  0xa9   :  { %v1291_v22 = vmax.f32 %v950_v16, %v1255_v17  ;;  %1492 = vmatmul.msk.f32.gmra.mxu2 %vm67_vm0, %v698_v13  ;;  %1528 = vmatmul.msk.f32.gmra.mxu3 %vm67_vm0, %v1003_v14  ;;  %v206_v23 = vadd.f32 %v1852_v4, %v205_v18  ;;  %v511_v24 = vadd.f32 %v1852_v4, %v510_v19  ;;  %v51_v14 = vld [vmem:[%s2434_s0 + $0xb8] sm:$0xff] }
  0xab   :  { %v1327_v25 = vmax.f32 %v645_v15, %v1291_v22  ;;  %v305_v26 = vmax.f32 %v206_v23, 0.0  ;;  %v610_v27 = vmax.f32 %v511_v24, 0.0  ;;  %1420 = vmatmul.msk.f32.gmra.mxu0 %vm67_vm0, %v48_v20  ;;  %1456 = vmatmul.msk.f32.gmra.mxu1 %vm67_vm0, %v357_v21  ;;  %v360_v15 = vld [vmem:[%s2435_s1 + $0xb8] sm:$0xff] }
  0xac   :  { %v851_v28 = vpop.f32.mrf.mxu2  ;;  %v1156_v29 = vpop.f32.mrf.mxu3 }
  0xad   :  { %1363 = vst [vmem:[%s2437_s6 + $0x18] sm:$0xff] %v1327_v25  ;;  %v852_v30 = vadd.f32 %v1852_v4, %v851_v28  ;;  %v1157_v31 = vadd.f32 %v1852_v4, %v1156_v29  ;;  %v646_v34 = vmax.f32 %v305_v26, %v610_v27  ;;  %v702_v26 = vld [vmem:[%s2432_s2 + $0xc0] sm:$0xff] }
  0xae   :  { %v1007_v27 = vld [vmem:[%s2433_s3 + $0xc0] sm:$0xff] }
  0xaf   :  { %v951_v35 = vmax.f32 %v852_v30, 0.0  ;;  %v1256_v36 = vmax.f32 %v1157_v31, 0.0 }
  0xb0   :  { %v208_v37 = vpop.f32.mrf.mxu0  ;;  %v513_v38 = vpop.f32.mrf.mxu1 }
  0xb1   :  { %v1292_v41 = vmax.f32 %v951_v35, %v1256_v36  ;;  %1493 = vmatmul.msk.f32.gmra.mxu2 %vm67_vm0, %v699_v32  ;;  %1529 = vmatmul.msk.f32.gmra.mxu3 %vm67_vm0, %v1004_v33  ;;  %v209_v42 = vadd.f32 %v1852_v4, %v208_v37  ;;  %v514_v43 = vadd.f32 %v1852_v4, %v513_v38  ;;  %v52_v33 = vld [vmem:[%s2434_s0 + $0xc0] sm:$0xff] }
  0xb3   :  { %v1328_v44 = vmax.f32 %v646_v34, %v1292_v41  ;;  %v306_v45 = vmax.f32 %v209_v42, 0.0  ;;  %v611_v46 = vmax.f32 %v514_v43, 0.0  ;;  %1421 = vmatmul.msk.f32.gmra.mxu0 %vm67_vm0, %v49_v39  ;;  %1457 = vmatmul.msk.f32.gmra.mxu1 %vm67_vm0, %v358_v40  ;;  %v361_v34 = vld [vmem:[%s2435_s1 + $0xc0] sm:$0xff] }
  0xb4   :  { %v854_v47 = vpop.f32.mrf.mxu2  ;;  %v1159_v48 = vpop.f32.mrf.mxu3 }
  0xb5   :  { %1364 = vst [vmem:[%s2437_s6 + $0x20] sm:$0xff] %v1328_v44  ;;  %v855_v49 = vadd.f32 %v1852_v4, %v854_v47  ;;  %v1160_v50 = vadd.f32 %v1852_v4, %v1159_v48  ;;  %v647_v53 = vmax.f32 %v306_v45, %v611_v46  ;;  %v703_v45 = vld [vmem:[%s2432_s2 + $0xc8] sm:$0xff] }
  0xb6   :  { %v1008_v46 = vld [vmem:[%s2433_s3 + $0xc8] sm:$0xff] }
  0xb7   :  { %v952_v54 = vmax.f32 %v855_v49, 0.0  ;;  %v1257_v55 = vmax.f32 %v1160_v50, 0.0 }
  0xb8   :  { %v211_v56 = vpop.f32.mrf.mxu0  ;;  %v516_v57 = vpop.f32.mrf.mxu1 }
  0xb9   :  { %v1293_v60 = vmax.f32 %v952_v54, %v1257_v55  ;;  %1494 = vmatmul.msk.f32.gmra.mxu2 %vm67_vm0, %v700_v51  ;;  %1530 = vmatmul.msk.f32.gmra.mxu3 %vm67_vm0, %v1005_v52  ;;  %v212_v61 = vadd.f32 %v1852_v4, %v211_v56  ;;  %v517_v62 = vadd.f32 %v1852_v4, %v516_v57  ;;  %v53_v52 = vld [vmem:[%s2434_s0 + $0xc8] sm:$0xff] }
  0xbb   :  { %v1329_v63 = vmax.f32 %v647_v53, %v1293_v60  ;;  %v307_v0 = vmax.f32 %v212_v61, 0.0  ;;  %v612_v1 = vmax.f32 %v517_v62, 0.0  ;;  %1422 = vmatmul.msk.f32.gmra.mxu0 %vm67_vm0, %v50_v58  ;;  %1458 = vmatmul.msk.f32.gmra.mxu1 %vm67_vm0, %v359_v59  ;;  %v362_v53 = vld [vmem:[%s2435_s1 + $0xc8] sm:$0xff] }
  0xbc   :  { %v857_v2 = vpop.f32.mrf.mxu2  ;;  %v1162_v3 = vpop.f32.mrf.mxu3 }
  0xbd   :  { %1365 = vst [vmem:[%s2437_s6 + $0x28] sm:$0xff] %v1329_v63  ;;  %v858_v5 = vadd.f32 %v1852_v4, %v857_v2  ;;  %v1163_v6 = vadd.f32 %v1852_v4, %v1162_v3  ;;  %v648_v9 = vmax.f32 %v307_v0, %v612_v1  ;;  %v704_v0 = vld [vmem:[%s2432_s2 + $0xd0] sm:$0xff] }
  0xbe   :  { %v1009_v1 = vld [vmem:[%s2433_s3 + $0xd0] sm:$0xff] }
  0xbf   :  { %v953_v10 = vmax.f32 %v858_v5, 0.0  ;;  %v1258_v11 = vmax.f32 %v1163_v6, 0.0 }
  0xc0   :  { %v214_v12 = vpop.f32.mrf.mxu0  ;;  %v519_v13 = vpop.f32.mrf.mxu1 }
  0xc1   :  { %v1294_v16 = vmax.f32 %v953_v10, %v1258_v11  ;;  %1495 = vmatmul.msk.f32.gmra.mxu2 %vm67_vm0, %v701_v7  ;;  %1531 = vmatmul.msk.f32.gmra.mxu3 %vm67_vm0, %v1006_v8  ;;  %v215_v17 = vadd.f32 %v1852_v4, %v214_v12  ;;  %v520_v18 = vadd.f32 %v1852_v4, %v519_v13  ;;  %v54_v8 = vld [vmem:[%s2434_s0 + $0xd0] sm:$0xff] }
  0xc3   :  { %v1330_v19 = vmax.f32 %v648_v9, %v1294_v16  ;;  %v308_v20 = vmax.f32 %v215_v17, 0.0  ;;  %v613_v21 = vmax.f32 %v520_v18, 0.0  ;;  %1423 = vmatmul.msk.f32.gmra.mxu0 %vm67_vm0, %v51_v14  ;;  %1459 = vmatmul.msk.f32.gmra.mxu1 %vm67_vm0, %v360_v15  ;;  %v363_v9 = vld [vmem:[%s2435_s1 + $0xd0] sm:$0xff] }
  0xc4   :  { %v860_v22 = vpop.f32.mrf.mxu2  ;;  %v1165_v23 = vpop.f32.mrf.mxu3 }
  0xc5   :  { %1366 = vst [vmem:[%s2437_s6 + $0x30] sm:$0xff] %v1330_v19  ;;  %v861_v24 = vadd.f32 %v1852_v4, %v860_v22  ;;  %v1166_v25 = vadd.f32 %v1852_v4, %v1165_v23  ;;  %v649_v28 = vmax.f32 %v308_v20, %v613_v21  ;;  %v705_v20 = vld [vmem:[%s2432_s2 + $0xd8] sm:$0xff] }
  0xc6   :  { %v1010_v21 = vld [vmem:[%s2433_s3 + $0xd8] sm:$0xff] }
  0xc7   :  { %v954_v29 = vmax.f32 %v861_v24, 0.0  ;;  %v1259_v30 = vmax.f32 %v1166_v25, 0.0 }
  0xc8   :  { %v217_v31 = vpop.f32.mrf.mxu0  ;;  %v522_v32 = vpop.f32.mrf.mxu1 }
  0xc9   :  { %v1295_v35 = vmax.f32 %v954_v29, %v1259_v30  ;;  %1496 = vmatmul.msk.f32.gmra.mxu2 %vm67_vm0, %v702_v26  ;;  %1532 = vmatmul.msk.f32.gmra.mxu3 %vm67_vm0, %v1007_v27  ;;  %v218_v36 = vadd.f32 %v1852_v4, %v217_v31  ;;  %v523_v37 = vadd.f32 %v1852_v4, %v522_v32  ;;  %v55_v27 = vld [vmem:[%s2434_s0 + $0xd8] sm:$0xff] }
  0xcb   :  { %v1331_v38 = vmax.f32 %v649_v28, %v1295_v35  ;;  %v309_v39 = vmax.f32 %v218_v36, 0.0  ;;  %v614_v40 = vmax.f32 %v523_v37, 0.0  ;;  %1424 = vmatmul.msk.f32.gmra.mxu0 %vm67_vm0, %v52_v33  ;;  %1460 = vmatmul.msk.f32.gmra.mxu1 %vm67_vm0, %v361_v34  ;;  %v364_v28 = vld [vmem:[%s2435_s1 + $0xd8] sm:$0xff] }
  0xcc   :  { %v863_v41 = vpop.f32.mrf.mxu2  ;;  %v1168_v42 = vpop.f32.mrf.mxu3 }
  0xcd   :  { %1367 = vst [vmem:[%s2437_s6 + $0x38] sm:$0xff] %v1331_v38  ;;  %v864_v43 = vadd.f32 %v1852_v4, %v863_v41  ;;  %v1169_v44 = vadd.f32 %v1852_v4, %v1168_v42  ;;  %v650_v47 = vmax.f32 %v309_v39, %v614_v40  ;;  %v706_v39 = vld [vmem:[%s2432_s2 + $0xe0] sm:$0xff] }
  0xce   :  { %v1011_v40 = vld [vmem:[%s2433_s3 + $0xe0] sm:$0xff] }
  0xcf   :  { %v955_v48 = vmax.f32 %v864_v43, 0.0  ;;  %v1260_v49 = vmax.f32 %v1169_v44, 0.0 }
  0xd0   :  { %v220_v50 = vpop.f32.mrf.mxu0  ;;  %v525_v51 = vpop.f32.mrf.mxu1 }
  0xd1   :  { %v1296_v54 = vmax.f32 %v955_v48, %v1260_v49  ;;  %1497 = vmatmul.msk.f32.gmra.mxu2 %vm67_vm0, %v703_v45  ;;  %1533 = vmatmul.msk.f32.gmra.mxu3 %vm67_vm0, %v1008_v46  ;;  %v221_v55 = vadd.f32 %v1852_v4, %v220_v50  ;;  %v526_v56 = vadd.f32 %v1852_v4, %v525_v51  ;;  %v56_v46 = vld [vmem:[%s2434_s0 + $0xe0] sm:$0xff] }
  0xd3   :  { %v1332_v57 = vmax.f32 %v650_v47, %v1296_v54  ;;  %v310_v58 = vmax.f32 %v221_v55, 0.0  ;;  %v615_v59 = vmax.f32 %v526_v56, 0.0  ;;  %1425 = vmatmul.msk.f32.gmra.mxu0 %vm67_vm0, %v53_v52  ;;  %1461 = vmatmul.msk.f32.gmra.mxu1 %vm67_vm0, %v362_v53  ;;  %v365_v47 = vld [vmem:[%s2435_s1 + $0xe0] sm:$0xff] }
  0xd4   :  { %v866_v60 = vpop.f32.mrf.mxu2  ;;  %v1171_v61 = vpop.f32.mrf.mxu3 }
  0xd5   :  { %1368 = vst [vmem:[%s2437_s6 + $0x40] sm:$0xff] %v1332_v57  ;;  %v867_v62 = vadd.f32 %v1852_v4, %v866_v60  ;;  %v1172_v63 = vadd.f32 %v1852_v4, %v1171_v61  ;;  %v651_v2 = vmax.f32 %v310_v58, %v615_v59  ;;  %v707_v58 = vld [vmem:[%s2432_s2 + $0xe8] sm:$0xff] }
  0xd6   :  { %v1012_v59 = vld [vmem:[%s2433_s3 + $0xe8] sm:$0xff] }
  0xd7   :  { %v956_v3 = vmax.f32 %v867_v62, 0.0  ;;  %v1261_v5 = vmax.f32 %v1172_v63, 0.0 }
  0xd8   :  { %v223_v6 = vpop.f32.mrf.mxu0  ;;  %v528_v7 = vpop.f32.mrf.mxu1 }
  0xd9   :  { %v1297_v10 = vmax.f32 %v956_v3, %v1261_v5  ;;  %1498 = vmatmul.msk.f32.gmra.mxu2 %vm67_vm0, %v704_v0  ;;  %1534 = vmatmul.msk.f32.gmra.mxu3 %vm67_vm0, %v1009_v1  ;;  %v224_v11 = vadd.f32 %v1852_v4, %v223_v6  ;;  %v529_v12 = vadd.f32 %v1852_v4, %v528_v7  ;;  %v57_v1 = vld [vmem:[%s2434_s0 + $0xe8] sm:$0xff] }
  0xdb   :  { %v1333_v13 = vmax.f32 %v651_v2, %v1297_v10  ;;  %v311_v14 = vmax.f32 %v224_v11, 0.0  ;;  %v616_v15 = vmax.f32 %v529_v12, 0.0  ;;  %1426 = vmatmul.msk.f32.gmra.mxu0 %vm67_vm0, %v54_v8  ;;  %1462 = vmatmul.msk.f32.gmra.mxu1 %vm67_vm0, %v363_v9  ;;  %v366_v2 = vld [vmem:[%s2435_s1 + $0xe8] sm:$0xff] }
  0xdc   :  { %v869_v16 = vpop.f32.mrf.mxu2  ;;  %v1174_v17 = vpop.f32.mrf.mxu3 }
  0xdd   :  { %1369 = vst [vmem:[%s2437_s6 + $0x48] sm:$0xff] %v1333_v13  ;;  %v870_v18 = vadd.f32 %v1852_v4, %v869_v16  ;;  %v1175_v19 = vadd.f32 %v1852_v4, %v1174_v17  ;;  %v652_v22 = vmax.f32 %v311_v14, %v616_v15  ;;  %v708_v14 = vld [vmem:[%s2432_s2 + $0xf0] sm:$0xff] }
  0xde   :  { %v1013_v15 = vld [vmem:[%s2433_s3 + $0xf0] sm:$0xff] }
  0xdf   :  { %v957_v23 = vmax.f32 %v870_v18, 0.0  ;;  %v1262_v24 = vmax.f32 %v1175_v19, 0.0 }
  0xe0   :  { %v226_v25 = vpop.f32.mrf.mxu0  ;;  %v531_v26 = vpop.f32.mrf.mxu1 }
  0xe1   :  { %v1298_v29 = vmax.f32 %v957_v23, %v1262_v24  ;;  %1499 = vmatmul.msk.f32.gmra.mxu2 %vm67_vm0, %v705_v20  ;;  %1535 = vmatmul.msk.f32.gmra.mxu3 %vm67_vm0, %v1010_v21  ;;  %v227_v30 = vadd.f32 %v1852_v4, %v226_v25  ;;  %v532_v31 = vadd.f32 %v1852_v4, %v531_v26  ;;  %v58_v21 = vld [vmem:[%s2434_s0 + $0xf0] sm:$0xff] }
  0xe3   :  { %v1334_v32 = vmax.f32 %v652_v22, %v1298_v29  ;;  %v312_v33 = vmax.f32 %v227_v30, 0.0  ;;  %v617_v34 = vmax.f32 %v532_v31, 0.0  ;;  %1427 = vmatmul.msk.f32.gmra.mxu0 %vm67_vm0, %v55_v27  ;;  %1463 = vmatmul.msk.f32.gmra.mxu1 %vm67_vm0, %v364_v28  ;;  %v367_v22 = vld [vmem:[%s2435_s1 + $0xf0] sm:$0xff] }
  0xe4   :  { %v872_v35 = vpop.f32.mrf.mxu2  ;;  %v1177_v36 = vpop.f32.mrf.mxu3 }
  0xe5   :  { %1370 = vst [vmem:[%s2437_s6 + $0x50] sm:$0xff] %v1334_v32  ;;  %v873_v37 = vadd.f32 %v1852_v4, %v872_v35  ;;  %v1178_v38 = vadd.f32 %v1852_v4, %v1177_v36  ;;  %v653_v41 = vmax.f32 %v312_v33, %v617_v34  ;;  %v709_v33 = vld [vmem:[%s2432_s2 + $0xf8] sm:$0xff] }
  0xe6   :  { %v1014_v34 = vld [vmem:[%s2433_s3 + $0xf8] sm:$0xff] }
  0xe7   :  { %v958_v42 = vmax.f32 %v873_v37, 0.0  ;;  %v1263_v43 = vmax.f32 %v1178_v38, 0.0 }
  0xe8   :  { %v229_v44 = vpop.f32.mrf.mxu0  ;;  %v534_v45 = vpop.f32.mrf.mxu1 }
  0xe9   :  { %v1299_v48 = vmax.f32 %v958_v42, %v1263_v43  ;;  %1500 = vmatmul.msk.f32.gmra.mxu2 %vm67_vm0, %v706_v39  ;;  %1536 = vmatmul.msk.f32.gmra.mxu3 %vm67_vm0, %v1011_v40  ;;  %v230_v49 = vadd.f32 %v1852_v4, %v229_v44  ;;  %v535_v50 = vadd.f32 %v1852_v4, %v534_v45  ;;  %v59_v40 = vld [vmem:[%s2434_s0 + $0xf8] sm:$0xff] }
  0xeb   :  { %v1335_v51 = vmax.f32 %v653_v41, %v1299_v48  ;;  %v313_v52 = vmax.f32 %v230_v49, 0.0  ;;  %v618_v53 = vmax.f32 %v535_v50, 0.0  ;;  %1428 = vmatmul.msk.f32.gmra.mxu0 %vm67_vm0, %v56_v46  ;;  %1464 = vmatmul.msk.f32.gmra.mxu1 %vm67_vm0, %v365_v47  ;;  %v368_v41 = vld [vmem:[%s2435_s1 + $0xf8] sm:$0xff] }
  0xec   :  { %v875_v54 = vpop.f32.mrf.mxu2  ;;  %v1180_v55 = vpop.f32.mrf.mxu3 }
  0xed   :  { %1371 = vst [vmem:[%s2437_s6 + $0x58] sm:$0xff] %v1335_v51  ;;  %v876_v56 = vadd.f32 %v1852_v4, %v875_v54  ;;  %v1181_v57 = vadd.f32 %v1852_v4, %v1180_v55  ;;  %v654_v60 = vmax.f32 %v313_v52, %v618_v53  ;;  %v710_v52 = vld [vmem:[%s2432_s2 + $0x100] sm:$0xff] }
  0xee   :  { %v1015_v53 = vld [vmem:[%s2433_s3 + $0x100] sm:$0xff] }
  0xef   :  { %v959_v61 = vmax.f32 %v876_v56, 0.0  ;;  %v1264_v62 = vmax.f32 %v1181_v57, 0.0 }
  0xf0   :  { %v232_v63 = vpop.f32.mrf.mxu0  ;;  %v537_v0 = vpop.f32.mrf.mxu1 }
  0xf1   :  { %v1300_v3 = vmax.f32 %v959_v61, %v1264_v62  ;;  %1501 = vmatmul.msk.f32.gmra.mxu2 %vm67_vm0, %v707_v58  ;;  %1537 = vmatmul.msk.f32.gmra.mxu3 %vm67_vm0, %v1012_v59  ;;  %v233_v5 = vadd.f32 %v1852_v4, %v232_v63  ;;  %v538_v6 = vadd.f32 %v1852_v4, %v537_v0  ;;  %v60_v59 = vld [vmem:[%s2434_s0 + $0x100] sm:$0xff] }
  0xf3   :  { %v1336_v7 = vmax.f32 %v654_v60, %v1300_v3  ;;  %v314_v8 = vmax.f32 %v233_v5, 0.0  ;;  %v619_v9 = vmax.f32 %v538_v6, 0.0  ;;  %1429 = vmatmul.msk.f32.gmra.mxu0 %vm67_vm0, %v57_v1  ;;  %1465 = vmatmul.msk.f32.gmra.mxu1 %vm67_vm0, %v366_v2  ;;  %v369_v60 = vld [vmem:[%s2435_s1 + $0x100] sm:$0xff] }
  0xf4   :  { %v878_v10 = vpop.f32.mrf.mxu2  ;;  %v1183_v11 = vpop.f32.mrf.mxu3 }
  0xf5   :  { %1372 = vst [vmem:[%s2437_s6 + $0x60] sm:$0xff] %v1336_v7  ;;  %v879_v12 = vadd.f32 %v1852_v4, %v878_v10  ;;  %v1184_v13 = vadd.f32 %v1852_v4, %v1183_v11  ;;  %v655_v16 = vmax.f32 %v314_v8, %v619_v9  ;;  %v711_v8 = vld [vmem:[%s2432_s2 + $0x108] sm:$0xff] }
  0xf6   :  { %v1016_v9 = vld [vmem:[%s2433_s3 + $0x108] sm:$0xff] }
  0xf7   :  { %v960_v17 = vmax.f32 %v879_v12, 0.0  ;;  %v1265_v18 = vmax.f32 %v1184_v13, 0.0 }
  0xf8   :  { %v235_v19 = vpop.f32.mrf.mxu0  ;;  %v540_v20 = vpop.f32.mrf.mxu1 }
  0xf9   :  { %v1301_v23 = vmax.f32 %v960_v17, %v1265_v18  ;;  %1502 = vmatmul.msk.f32.gmra.mxu2 %vm67_vm0, %v708_v14  ;;  %1538 = vmatmul.msk.f32.gmra.mxu3 %vm67_vm0, %v1013_v15  ;;  %v236_v24 = vadd.f32 %v1852_v4, %v235_v19  ;;  %v541_v25 = vadd.f32 %v1852_v4, %v540_v20  ;;  %v61_v15 = vld [vmem:[%s2434_s0 + $0x108] sm:$0xff] }
  0xfb   :  { %v1337_v26 = vmax.f32 %v655_v16, %v1301_v23  ;;  %v315_v27 = vmax.f32 %v236_v24, 0.0  ;;  %v620_v28 = vmax.f32 %v541_v25, 0.0  ;;  %1430 = vmatmul.msk.f32.gmra.mxu0 %vm67_vm0, %v58_v21  ;;  %1466 = vmatmul.msk.f32.gmra.mxu1 %vm67_vm0, %v367_v22  ;;  %v370_v16 = vld [vmem:[%s2435_s1 + $0x108] sm:$0xff] }
  0xfc   :  { %v881_v29 = vpop.f32.mrf.mxu2  ;;  %v1186_v30 = vpop.f32.mrf.mxu3 }
  0xfd   :  { %1373 = vst [vmem:[%s2437_s6 + $0x68] sm:$0xff] %v1337_v26  ;;  %v882_v31 = vadd.f32 %v1852_v4, %v881_v29  ;;  %v1187_v32 = vadd.f32 %v1852_v4, %v1186_v30  ;;  %v656_v35 = vmax.f32 %v315_v27, %v620_v28  ;;  %v712_v27 = vld [vmem:[%s2432_s2 + $0x110] sm:$0xff] }
  0xfe   :  { %v1017_v28 = vld [vmem:[%s2433_s3 + $0x110] sm:$0xff] }
  0xff   :  { %v961_v36 = vmax.f32 %v882_v31, 0.0  ;;  %v1266_v37 = vmax.f32 %v1187_v32, 0.0 }
 0x100   :  { %v238_v38 = vpop.f32.mrf.mxu0  ;;  %v543_v39 = vpop.f32.mrf.mxu1 }
 0x101   :  { %v1302_v42 = vmax.f32 %v961_v36, %v1266_v37  ;;  %1503 = vmatmul.msk.f32.gmra.mxu2 %vm67_vm0, %v709_v33  ;;  %1539 = vmatmul.msk.f32.gmra.mxu3 %vm67_vm0, %v1014_v34  ;;  %v239_v43 = vadd.f32 %v1852_v4, %v238_v38  ;;  %v544_v44 = vadd.f32 %v1852_v4, %v543_v39  ;;  %v62_v34 = vld [vmem:[%s2434_s0 + $0x110] sm:$0xff] }
 0x103   :  { %v1338_v45 = vmax.f32 %v656_v35, %v1302_v42  ;;  %v316_v46 = vmax.f32 %v239_v43, 0.0  ;;  %v621_v47 = vmax.f32 %v544_v44, 0.0  ;;  %1431 = vmatmul.msk.f32.gmra.mxu0 %vm67_vm0, %v59_v40  ;;  %1467 = vmatmul.msk.f32.gmra.mxu1 %vm67_vm0, %v368_v41  ;;  %v371_v35 = vld [vmem:[%s2435_s1 + $0x110] sm:$0xff] }
 0x104   :  { %v884_v48 = vpop.f32.mrf.mxu2  ;;  %v1189_v49 = vpop.f32.mrf.mxu3 }
 0x105   :  { %1374 = vst [vmem:[%s2437_s6 + $0x70] sm:$0xff] %v1338_v45  ;;  %v885_v50 = vadd.f32 %v1852_v4, %v884_v48  ;;  %v1190_v51 = vadd.f32 %v1852_v4, %v1189_v49  ;;  %v657_v54 = vmax.f32 %v316_v46, %v621_v47  ;;  %v713_v46 = vld [vmem:[%s2432_s2 + $0x118] sm:$0xff] }
 0x106   :  { %v1018_v47 = vld [vmem:[%s2433_s3 + $0x118] sm:$0xff] }
 0x107   :  { %v962_v55 = vmax.f32 %v885_v50, 0.0  ;;  %v1267_v56 = vmax.f32 %v1190_v51, 0.0 }
 0x108   :  { %v241_v57 = vpop.f32.mrf.mxu0  ;;  %v546_v58 = vpop.f32.mrf.mxu1 }
 0x109   :  { %v1303_v61 = vmax.f32 %v962_v55, %v1267_v56  ;;  %1504 = vmatmul.msk.f32.gmra.mxu2 %vm67_vm0, %v710_v52  ;;  %1540 = vmatmul.msk.f32.gmra.mxu3 %vm67_vm0, %v1015_v53  ;;  %v242_v62 = vadd.f32 %v1852_v4, %v241_v57  ;;  %v547_v63 = vadd.f32 %v1852_v4, %v546_v58  ;;  %v63_v53 = vld [vmem:[%s2434_s0 + $0x118] sm:$0xff] }
 0x10b   :  { %v1339_v0 = vmax.f32 %v657_v54, %v1303_v61  ;;  %v317_v1 = vmax.f32 %v242_v62, 0.0  ;;  %v622_v2 = vmax.f32 %v547_v63, 0.0  ;;  %1432 = vmatmul.msk.f32.gmra.mxu0 %vm67_vm0, %v60_v59  ;;  %1468 = vmatmul.msk.f32.gmra.mxu1 %vm67_vm0, %v369_v60  ;;  %v372_v54 = vld [vmem:[%s2435_s1 + $0x118] sm:$0xff] }
 0x10c   :  { %v887_v3 = vpop.f32.mrf.mxu2  ;;  %v1192_v5 = vpop.f32.mrf.mxu3 }
 0x10d   :  { %1375 = vst [vmem:[%s2437_s6 + $0x78] sm:$0xff] %v1339_v0  ;;  %v888_v6 = vadd.f32 %v1852_v4, %v887_v3  ;;  %v1193_v7 = vadd.f32 %v1852_v4, %v1192_v5  ;;  %v658_v10 = vmax.f32 %v317_v1, %v622_v2 }
 0x10f   :  { %v963_v11 = vmax.f32 %v888_v6, 0.0  ;;  %v1268_v12 = vmax.f32 %v1193_v7, 0.0 }
 0x110   :  { %v244_v13 = vpop.f32.mrf.mxu0  ;;  %v549_v14 = vpop.f32.mrf.mxu1 }
 0x111   :  { %v1304_v17 = vmax.f32 %v963_v11, %v1268_v12  ;;  %1505 = vmatmul.msk.f32.gmra.mxu2 %vm67_vm0, %v711_v8  ;;  %1541 = vmatmul.msk.f32.gmra.mxu3 %vm67_vm0, %v1016_v9  ;;  %v245_v18 = vadd.f32 %v1852_v4, %v244_v13  ;;  %v550_v19 = vadd.f32 %v1852_v4, %v549_v14 }
 0x113   :  { %v1340_v20 = vmax.f32 %v658_v10, %v1304_v17  ;;  %v318_v21 = vmax.f32 %v245_v18, 0.0  ;;  %v623_v22 = vmax.f32 %v550_v19, 0.0  ;;  %1433 = vmatmul.msk.f32.gmra.mxu0 %vm67_vm0, %v61_v15  ;;  %1469 = vmatmul.msk.f32.gmra.mxu1 %vm67_vm0, %v370_v16 }
 0x114   :  { %v890_v23 = vpop.f32.mrf.mxu2  ;;  %v1195_v24 = vpop.f32.mrf.mxu3 }
 0x115   :  { %1376 = vst [vmem:[%s2437_s6 + $0x80] sm:$0xff] %v1340_v20  ;;  %v891_v25 = vadd.f32 %v1852_v4, %v890_v23  ;;  %v1196_v26 = vadd.f32 %v1852_v4, %v1195_v24  ;;  %v659_v29 = vmax.f32 %v318_v21, %v623_v22 }
 0x117   :  { %v964_v30 = vmax.f32 %v891_v25, 0.0  ;;  %v1269_v31 = vmax.f32 %v1196_v26, 0.0 }
 0x118   :  { %v247_v32 = vpop.f32.mrf.mxu0  ;;  %v552_v33 = vpop.f32.mrf.mxu1 }
 0x119   :  { %v1305_v36 = vmax.f32 %v964_v30, %v1269_v31  ;;  %1506 = vmatmul.msk.f32.gmra.mxu2 %vm67_vm0, %v712_v27  ;;  %1542 = vmatmul.msk.f32.gmra.mxu3 %vm67_vm0, %v1017_v28  ;;  %v248_v37 = vadd.f32 %v1852_v4, %v247_v32  ;;  %v553_v38 = vadd.f32 %v1852_v4, %v552_v33 }
 0x11b   :  { %v1341_v39 = vmax.f32 %v659_v29, %v1305_v36  ;;  %v319_v40 = vmax.f32 %v248_v37, 0.0  ;;  %v624_v41 = vmax.f32 %v553_v38, 0.0  ;;  %1434 = vmatmul.msk.f32.gmra.mxu0 %vm67_vm0, %v62_v34  ;;  %1470 = vmatmul.msk.f32.gmra.mxu1 %vm67_vm0, %v371_v35  ;;  %v2328_v38 = vld [vmem:[%s2436_s5] ss:$0 sm:$0xff] }
 0x11c   :  { %v893_v42 = vpop.f32.mrf.mxu2  ;;  %v1198_v43 = vpop.f32.mrf.mxu3 }
 0x11d   :  { %1377 = vst [vmem:[%s2437_s6 + $0x88] sm:$0xff] %v1341_v39  ;;  %v894_v44 = vadd.f32 %v1852_v4, %v893_v42  ;;  %v1199_v45 = vadd.f32 %v1852_v4, %v1198_v43  ;;  %v660_v48 = vmax.f32 %v319_v40, %v624_v41 }
 0x11f   :  { %v965_v49 = vmax.f32 %v894_v44, 0.0  ;;  %v1270_v50 = vmax.f32 %v1199_v45, 0.0 }
 0x120   :  { %v250_v51 = vpop.f32.mrf.mxu0  ;;  %v555_v52 = vpop.f32.mrf.mxu1 }
 0x121   :  { %v1306_v55 = vmax.f32 %v965_v49, %v1270_v50  ;;  %1507 = vmatmul.msk.f32.gmra.mxu2 %vm67_vm0, %v713_v46  ;;  %1543 = vmatmul.msk.f32.gmra.mxu3 %vm67_vm0, %v1018_v47  ;;  %v251_v56 = vadd.f32 %v1852_v4, %v250_v51  ;;  %v556_v57 = vadd.f32 %v1852_v4, %v555_v52 }
 0x123   :  { %v1342_v58 = vmax.f32 %v660_v48, %v1306_v55  ;;  %v320_v59 = vmax.f32 %v251_v56, 0.0  ;;  %v625_v60 = vmax.f32 %v556_v57, 0.0  ;;  %1435 = vmatmul.msk.f32.gmra.mxu0 %vm67_vm0, %v63_v53  ;;  %1471 = vmatmul.msk.f32.gmra.mxu1 %vm67_vm0, %v372_v54 }
 0x124   :  { %v896_v61 = vpop.f32.mrf.mxu2  ;;  %v1201_v62 = vpop.f32.mrf.mxu3 }
 0x125   :  { %1378 = vst [vmem:[%s2437_s6 + $0x90] sm:$0xff] %v1342_v58  ;;  %v897_v63 = vadd.f32 %v1852_v4, %v896_v61  ;;  %v1202_v0 = vadd.f32 %v1852_v4, %v1201_v62  ;;  %v661_v1 = vmax.f32 %v320_v59, %v625_v60 }
 0x127   :  { %v966_v2 = vmax.f32 %v897_v63, 0.0  ;;  %v1271_v3 = vmax.f32 %v1202_v0, 0.0 }
 0x128   :  { %v253_v5 = vpop.f32.mrf.mxu0  ;;  %v558_v6 = vpop.f32.mrf.mxu1 }
 0x129   :  { %v1307_v7 = vmax.f32 %v966_v2, %v1271_v3  ;;  %v254_v8 = vadd.f32 %v1852_v4, %v253_v5  ;;  %v559_v9 = vadd.f32 %v1852_v4, %v558_v6 }
 0x12b   :  { %v1343_v10 = vmax.f32 %v661_v1, %v1307_v7  ;;  %v321_v11 = vmax.f32 %v254_v8, 0.0  ;;  %v626_v12 = vmax.f32 %v559_v9, 0.0 }
 0x12c   :  { %v899_v13 = vpop.f32.mrf.mxu2  ;;  %v1204_v14 = vpop.f32.mrf.mxu3 }
 0x12d   :  { %1379 = vst [vmem:[%s2437_s6 + $0x98] sm:$0xff] %v1343_v10  ;;  %v900_v15 = vadd.f32 %v1852_v4, %v899_v13  ;;  %v1205_v16 = vadd.f32 %v1852_v4, %v1204_v14  ;;  %v662_v17 = vmax.f32 %v321_v11, %v626_v12 }
 0x12f   :  { %v967_v18 = vmax.f32 %v900_v15, 0.0  ;;  %v1272_v19 = vmax.f32 %v1205_v16, 0.0 }
 0x130   :  { %v256_v20 = vpop.f32.mrf.mxu0  ;;  %v561_v21 = vpop.f32.mrf.mxu1 }
 0x131   :  { %v1308_v22 = vmax.f32 %v967_v18, %v1272_v19  ;;  %v257_v23 = vadd.f32 %v1852_v4, %v256_v20  ;;  %v562_v24 = vadd.f32 %v1852_v4, %v561_v21 }
 0x133   :  { %v1344_v25 = vmax.f32 %v662_v17, %v1308_v22  ;;  %v322_v26 = vmax.f32 %v257_v23, 0.0  ;;  %v627_v27 = vmax.f32 %v562_v24, 0.0 }
 0x134   :  { %v902_v28 = vpop.f32.mrf.mxu2  ;;  %v1207_v29 = vpop.f32.mrf.mxu3 }
 0x135   :  { %1380 = vst [vmem:[%s2437_s6 + $0xa0] sm:$0xff] %v1344_v25  ;;  %v903_v30 = vadd.f32 %v1852_v4, %v902_v28  ;;  %v1208_v31 = vadd.f32 %v1852_v4, %v1207_v29  ;;  %v663_v32 = vmax.f32 %v322_v26, %v627_v27 }
 0x137   :  { %v968_v33 = vmax.f32 %v903_v30, 0.0  ;;  %v1273_v34 = vmax.f32 %v1208_v31, 0.0 }
 0x138   :  { %v259_v35 = vpop.f32.mrf.mxu0  ;;  %v564_v36 = vpop.f32.mrf.mxu1 }
 0x139   :  { %v1309_v37 = vmax.f32 %v968_v33, %v1273_v34  ;;  %v260_v39 = vadd.f32 %v2328_v38, %v259_v35  ;;  %v565_v40 = vadd.f32 %v2328_v38, %v564_v36 }
 0x13b   :  { %v1345_v41 = vmax.f32 %v663_v32, %v1309_v37  ;;  %v323_v42 = vmax.f32 %v260_v39, 0.0  ;;  %v628_v43 = vmax.f32 %v565_v40, 0.0 }
 0x13c   :  { %v905_v44 = vpop.f32.mrf.mxu2  ;;  %v1210_v4 = vpop.f32.mrf.mxu3 }
 0x13d   :  { %1381 = vst [vmem:[%s2437_s6 + $0xa8] sm:$0xff] %v1345_v41  ;;  %v906_v45 = vadd.f32 %v2328_v38, %v905_v44  ;;  %v1211_v46 = vadd.f32 %v2328_v38, %v1210_v4  ;;  %v664_v47 = vmax.f32 %v323_v42, %v628_v43 }
 0x13f   :  { %v969_v48 = vmax.f32 %v906_v45, 0.0  ;;  %v1274_v49 = vmax.f32 %v1211_v46, 0.0 }
 0x140   :  { %v262_v50 = vpop.f32.mrf.mxu0  ;;  %v567_v51 = vpop.f32.mrf.mxu1 }
 0x141   :  { %v1310_v52 = vmax.f32 %v969_v48, %v1274_v49  ;;  %v263_v53 = vadd.f32 %v2328_v38, %v262_v50  ;;  %v568_v54 = vadd.f32 %v2328_v38, %v567_v51 }
 0x143   :  { %v1346_v55 = vmax.f32 %v664_v47, %v1310_v52  ;;  %v324_v56 = vmax.f32 %v263_v53, 0.0  ;;  %v629_v57 = vmax.f32 %v568_v54, 0.0 }
 0x144   :  { %v908_v58 = vpop.f32.mrf.mxu2  ;;  %v1213_v59 = vpop.f32.mrf.mxu3 }
 0x145   :  { %1382 = vst [vmem:[%s2437_s6 + $0xb0] sm:$0xff] %v1346_v55  ;;  %v909_v60 = vadd.f32 %v2328_v38, %v908_v58  ;;  %v1214_v61 = vadd.f32 %v2328_v38, %v1213_v59  ;;  %v665_v62 = vmax.f32 %v324_v56, %v629_v57 }
 0x147   :  { %v970_v63 = vmax.f32 %v909_v60, 0.0  ;;  %v1275_v0 = vmax.f32 %v1214_v61, 0.0 }
 0x148   :  { %v265_v1 = vpop.f32.mrf.mxu0  ;;  %v570_v2 = vpop.f32.mrf.mxu1 }
 0x149   :  { %v1311_v3 = vmax.f32 %v970_v63, %v1275_v0  ;;  %v266_v5 = vadd.f32 %v2328_v38, %v265_v1  ;;  %v571_v6 = vadd.f32 %v2328_v38, %v570_v2 }
 0x14b   :  { %v1347_v7 = vmax.f32 %v665_v62, %v1311_v3  ;;  %v325_v8 = vmax.f32 %v266_v5, 0.0  ;;  %v630_v9 = vmax.f32 %v571_v6, 0.0 }
 0x14c   :  { %v911_v10 = vpop.f32.mrf.mxu2  ;;  %v1216_v11 = vpop.f32.mrf.mxu3 }
 0x14d   :  { %1383 = vst [vmem:[%s2437_s6 + $0xb8] sm:$0xff] %v1347_v7  ;;  %v912_v12 = vadd.f32 %v2328_v38, %v911_v10  ;;  %v1217_v13 = vadd.f32 %v2328_v38, %v1216_v11  ;;  %v666_v14 = vmax.f32 %v325_v8, %v630_v9 }
 0x14f   :  { %v971_v15 = vmax.f32 %v912_v12, 0.0  ;;  %v1276_v16 = vmax.f32 %v1217_v13, 0.0 }
 0x150   :  { %v268_v17 = vpop.f32.mrf.mxu0  ;;  %v573_v18 = vpop.f32.mrf.mxu1 }
 0x151   :  { %v1312_v19 = vmax.f32 %v971_v15, %v1276_v16  ;;  %v269_v20 = vadd.f32 %v2328_v38, %v268_v17  ;;  %v574_v21 = vadd.f32 %v2328_v38, %v573_v18 }
 0x153   :  { %v1348_v22 = vmax.f32 %v666_v14, %v1312_v19  ;;  %v326_v23 = vmax.f32 %v269_v20, 0.0  ;;  %v631_v24 = vmax.f32 %v574_v21, 0.0 }
 0x154   :  { %v914_v25 = vpop.f32.mrf.mxu2  ;;  %v1219_v26 = vpop.f32.mrf.mxu3 }
 0x155   :  { %1384 = vst [vmem:[%s2437_s6 + $0xc0] sm:$0xff] %v1348_v22  ;;  %v915_v27 = vadd.f32 %v2328_v38, %v914_v25  ;;  %v1220_v28 = vadd.f32 %v2328_v38, %v1219_v26  ;;  %v667_v29 = vmax.f32 %v326_v23, %v631_v24 }
 0x157   :  { %v972_v30 = vmax.f32 %v915_v27, 0.0  ;;  %v1277_v31 = vmax.f32 %v1220_v28, 0.0 }
 0x158   :  { %v271_v32 = vpop.f32.mrf.mxu0  ;;  %v576_v33 = vpop.f32.mrf.mxu1 }
 0x159   :  { %v1313_v34 = vmax.f32 %v972_v30, %v1277_v31  ;;  %v272_v35 = vadd.f32 %v2328_v38, %v271_v32  ;;  %v577_v36 = vadd.f32 %v2328_v38, %v576_v33 }
 0x15b   :  { %v1349_v37 = vmax.f32 %v667_v29, %v1313_v34  ;;  %v327_v39 = vmax.f32 %v272_v35, 0.0  ;;  %v632_v40 = vmax.f32 %v577_v36, 0.0 }
 0x15c   :  { %v917_v41 = vpop.f32.mrf.mxu2  ;;  %v1222_v42 = vpop.f32.mrf.mxu3 }
 0x15d   :  { %1385 = vst [vmem:[%s2437_s6 + $0xc8] sm:$0xff] %v1349_v37  ;;  %v918_v43 = vadd.f32 %v2328_v38, %v917_v41  ;;  %v1223_v44 = vadd.f32 %v2328_v38, %v1222_v42  ;;  %v668_v4 = vmax.f32 %v327_v39, %v632_v40 }
 0x15f   :  { %v973_v45 = vmax.f32 %v918_v43, 0.0  ;;  %v1278_v46 = vmax.f32 %v1223_v44, 0.0 }
 0x160   :  { %v274_v47 = vpop.f32.mrf.mxu0  ;;  %v579_v48 = vpop.f32.mrf.mxu1 }
 0x161   :  { %v1314_v49 = vmax.f32 %v973_v45, %v1278_v46  ;;  %v275_v50 = vadd.f32 %v2328_v38, %v274_v47  ;;  %v580_v51 = vadd.f32 %v2328_v38, %v579_v48 }
 0x163   :  { %v1350_v52 = vmax.f32 %v668_v4, %v1314_v49  ;;  %v328_v53 = vmax.f32 %v275_v50, 0.0  ;;  %v633_v54 = vmax.f32 %v580_v51, 0.0 }
 0x164   :  { %v920_v55 = vpop.f32.mrf.mxu2  ;;  %v1225_v56 = vpop.f32.mrf.mxu3 }
 0x165   :  { %1386 = vst [vmem:[%s2437_s6 + $0xd0] sm:$0xff] %v1350_v52  ;;  %v921_v57 = vadd.f32 %v2328_v38, %v920_v55  ;;  %v1226_v58 = vadd.f32 %v2328_v38, %v1225_v56  ;;  %v669_v59 = vmax.f32 %v328_v53, %v633_v54 }
 0x167   :  { %v974_v60 = vmax.f32 %v921_v57, 0.0  ;;  %v1279_v61 = vmax.f32 %v1226_v58, 0.0 }
 0x168   :  { %v277_v62 = vpop.f32.mrf.mxu0  ;;  %v582_v63 = vpop.f32.mrf.mxu1 }
 0x169   :  { %v1315_v0 = vmax.f32 %v974_v60, %v1279_v61  ;;  %v278_v1 = vadd.f32 %v2328_v38, %v277_v62  ;;  %v583_v2 = vadd.f32 %v2328_v38, %v582_v63 }
 0x16b   :  { %v1351_v3 = vmax.f32 %v669_v59, %v1315_v0  ;;  %v329_v5 = vmax.f32 %v278_v1, 0.0  ;;  %v634_v6 = vmax.f32 %v583_v2, 0.0 }
 0x16c   :  { %v923_v7 = vpop.f32.mrf.mxu2  ;;  %v1228_v8 = vpop.f32.mrf.mxu3 }
 0x16d   :  { %1387 = vst [vmem:[%s2437_s6 + $0xd8] sm:$0xff] %v1351_v3  ;;  %v924_v9 = vadd.f32 %v2328_v38, %v923_v7  ;;  %v1229_v10 = vadd.f32 %v2328_v38, %v1228_v8  ;;  %v670_v11 = vmax.f32 %v329_v5, %v634_v6 }
 0x16f   :  { %v975_v12 = vmax.f32 %v924_v9, 0.0  ;;  %v1280_v13 = vmax.f32 %v1229_v10, 0.0 }
 0x170   :  { %v280_v14 = vpop.f32.mrf.mxu0  ;;  %v585_v15 = vpop.f32.mrf.mxu1 }
 0x171   :  { %v1316_v16 = vmax.f32 %v975_v12, %v1280_v13  ;;  %v281_v17 = vadd.f32 %v2328_v38, %v280_v14  ;;  %v586_v18 = vadd.f32 %v2328_v38, %v585_v15 }
 0x173   :  { %v1352_v19 = vmax.f32 %v670_v11, %v1316_v16  ;;  %v330_v20 = vmax.f32 %v281_v17, 0.0  ;;  %v635_v21 = vmax.f32 %v586_v18, 0.0 }
 0x174   :  { %v926_v22 = vpop.f32.mrf.mxu2  ;;  %v1231_v23 = vpop.f32.mrf.mxu3 }
 0x175   :  { %1388 = vst [vmem:[%s2437_s6 + $0xe0] sm:$0xff] %v1352_v19  ;;  %v927_v24 = vadd.f32 %v2328_v38, %v926_v22  ;;  %v1232_v25 = vadd.f32 %v2328_v38, %v1231_v23  ;;  %v671_v26 = vmax.f32 %v330_v20, %v635_v21 }
 0x177   :  { %v976_v27 = vmax.f32 %v927_v24, 0.0  ;;  %v1281_v28 = vmax.f32 %v1232_v25, 0.0 }
 0x178   :  { %v283_v29 = vpop.f32.mrf.mxu0  ;;  %v588_v30 = vpop.f32.mrf.mxu1 }
 0x179   :  { %v1317_v31 = vmax.f32 %v976_v27, %v1281_v28  ;;  %v284_v32 = vadd.f32 %v2328_v38, %v283_v29  ;;  %v589_v33 = vadd.f32 %v2328_v38, %v588_v30 }
 0x17b   :  { %v1353_v34 = vmax.f32 %v671_v26, %v1317_v31  ;;  %v331_v35 = vmax.f32 %v284_v32, 0.0  ;;  %v636_v36 = vmax.f32 %v589_v33, 0.0 }
 0x17c   :  { %v929_v37 = vpop.f32.mrf.mxu2  ;;  %v1234_v39 = vpop.f32.mrf.mxu3 }
 0x17d   :  { %1389 = vst [vmem:[%s2437_s6 + $0xe8] sm:$0xff] %v1353_v34  ;;  %v930_v40 = vadd.f32 %v2328_v38, %v929_v37  ;;  %v1235_v41 = vadd.f32 %v2328_v38, %v1234_v39  ;;  %v672_v42 = vmax.f32 %v331_v35, %v636_v36 }
 0x17f   :  { %v977_v43 = vmax.f32 %v930_v40, 0.0  ;;  %v1282_v44 = vmax.f32 %v1235_v41, 0.0 }
 0x180   :  { %v286_v4 = vpop.f32.mrf.mxu0  ;;  %v591_v45 = vpop.f32.mrf.mxu1 }
 0x181   :  { %v1318_v46 = vmax.f32 %v977_v43, %v1282_v44  ;;  %v287_v47 = vadd.f32 %v2328_v38, %v286_v4  ;;  %v592_v48 = vadd.f32 %v2328_v38, %v591_v45 }
 0x183   :  { %v1354_v49 = vmax.f32 %v672_v42, %v1318_v46  ;;  %v332_v50 = vmax.f32 %v287_v47, 0.0  ;;  %v637_v51 = vmax.f32 %v592_v48, 0.0 }
 0x184   :  { %v932_v52 = vpop.f32.mrf.mxu2  ;;  %v1237_v53 = vpop.f32.mrf.mxu3 }
 0x185   :  { %1390 = vst [vmem:[%s2437_s6 + $0xf0] sm:$0xff] %v1354_v49  ;;  %v933_v54 = vadd.f32 %v2328_v38, %v932_v52  ;;  %v1238_v55 = vadd.f32 %v2328_v38, %v1237_v53  ;;  %v673_v56 = vmax.f32 %v332_v50, %v637_v51 }
 0x187   :  { %v978_v57 = vmax.f32 %v933_v54, 0.0  ;;  %v1283_v58 = vmax.f32 %v1238_v55, 0.0 }
 0x188   :  { %v289_v59 = vpop.f32.mrf.mxu0  ;;  %v594_v60 = vpop.f32.mrf.mxu1 }
 0x189   :  { %v1319_v61 = vmax.f32 %v978_v57, %v1283_v58  ;;  %v290_v62 = vadd.f32 %v2328_v38, %v289_v59  ;;  %v595_v63 = vadd.f32 %v2328_v38, %v594_v60 }
 0x18b   :  { %v1355_v0 = vmax.f32 %v673_v56, %v1319_v61  ;;  %v333_v1 = vmax.f32 %v290_v62, 0.0  ;;  %v638_v2 = vmax.f32 %v595_v63, 0.0 }
 0x18c   :  { %v935_v3 = vpop.f32.mrf.mxu2  ;;  %v1240_v5 = vpop.f32.mrf.mxu3 }
 0x18d   :  { %1391 = vst [vmem:[%s2437_s6 + $0xf8] sm:$0xff] %v1355_v0  ;;  %v936_v6 = vadd.f32 %v2328_v38, %v935_v3  ;;  %v1241_v7 = vadd.f32 %v2328_v38, %v1240_v5  ;;  %v674_v8 = vmax.f32 %v333_v1, %v638_v2 }
 0x18f   :  { %v979_v9 = vmax.f32 %v936_v6, 0.0  ;;  %v1284_v10 = vmax.f32 %v1241_v7, 0.0 }
 0x190   :  { %v292_v11 = vpop.f32.mrf.mxu0  ;;  %v597_v12 = vpop.f32.mrf.mxu1 }
 0x191   :  { %v1320_v13 = vmax.f32 %v979_v9, %v1284_v10  ;;  %v293_v14 = vadd.f32 %v2328_v38, %v292_v11  ;;  %v598_v15 = vadd.f32 %v2328_v38, %v597_v12 }
 0x193   :  { %v1356_v16 = vmax.f32 %v674_v8, %v1320_v13  ;;  %v334_v17 = vmax.f32 %v293_v14, 0.0  ;;  %v639_v18 = vmax.f32 %v598_v15, 0.0 }
 0x194   :  { %v938_v19 = vpop.f32.mrf.mxu2  ;;  %v1243_v20 = vpop.f32.mrf.mxu3 }
 0x195   :  { %1392 = vst [vmem:[%s2437_s6 + $0x100] sm:$0xff] %v1356_v16  ;;  %v939_v21 = vadd.f32 %v2328_v38, %v938_v19  ;;  %v1244_v22 = vadd.f32 %v2328_v38, %v1243_v20  ;;  %v675_v23 = vmax.f32 %v334_v17, %v639_v18 }
 0x197   :  { %v980_v24 = vmax.f32 %v939_v21, 0.0  ;;  %v1285_v25 = vmax.f32 %v1244_v22, 0.0 }
 0x198   :  { %v295_v26 = vpop.f32.mrf.mxu0  ;;  %v600_v27 = vpop.f32.mrf.mxu1 }
 0x199   :  { %v1321_v28 = vmax.f32 %v980_v24, %v1285_v25  ;;  %v296_v29 = vadd.f32 %v2328_v38, %v295_v26  ;;  %v601_v30 = vadd.f32 %v2328_v38, %v600_v27 }
 0x19b   :  { %v1357_v31 = vmax.f32 %v675_v23, %v1321_v28  ;;  %v335_v32 = vmax.f32 %v296_v29, 0.0  ;;  %v640_v33 = vmax.f32 %v601_v30, 0.0 }
 0x19c   :  { %v941_v34 = vpop.f32.mrf.mxu2  ;;  %v1246_v35 = vpop.f32.mrf.mxu3 }
 0x19d   :  { %1393 = vst [vmem:[%s2437_s6 + $0x108] sm:$0xff] %v1357_v31  ;;  %v942_v36 = vadd.f32 %v2328_v38, %v941_v34  ;;  %v1247_v37 = vadd.f32 %v2328_v38, %v1246_v35  ;;  %v676_v39 = vmax.f32 %v335_v32, %v640_v33 }
 0x19f   :  { %v981_v40 = vmax.f32 %v942_v36, 0.0  ;;  %v1286_v41 = vmax.f32 %v1247_v37, 0.0 }
 0x1a0   :  { %v298_v42 = vpop.f32.mrf.mxu0  ;;  %v603_v43 = vpop.f32.mrf.mxu1 }
 0x1a1   :  { %v1322_v44 = vmax.f32 %v981_v40, %v1286_v41  ;;  %v299_v4 = vadd.f32 %v2328_v38, %v298_v42  ;;  %v604_v45 = vadd.f32 %v2328_v38, %v603_v43 }
 0x1a3   :  { %v1358_v46 = vmax.f32 %v676_v39, %v1322_v44  ;;  %v336_v47 = vmax.f32 %v299_v4, 0.0  ;;  %v641_v48 = vmax.f32 %v604_v45, 0.0 }
 0x1a4   :  { %v944_v49 = vpop.f32.mrf.mxu2  ;;  %v1249_v50 = vpop.f32.mrf.mxu3 }
 0x1a5   :  { %1394 = vst [vmem:[%s2437_s6 + $0x110] sm:$0xff] %v1358_v46  ;;  %v945_v51 = vadd.f32 %v2328_v38, %v944_v49  ;;  %v1250_v52 = vadd.f32 %v2328_v38, %v1249_v50  ;;  %v677_v53 = vmax.f32 %v336_v47, %v641_v48 }
 0x1a7   :  { %v982_v54 = vmax.f32 %v945_v51, 0.0  ;;  %v1287_v55 = vmax.f32 %v1250_v52, 0.0 }
 0x1a9   :  { %v1323_v56 = vmax.f32 %v982_v54, %v1287_v55 }
 0x1ab   :  { %v1359_v57 = vmax.f32 %v677_v53, %v1323_v56 }
 0x1ad   :  { %1395 = vst [vmem:[%s2437_s6 + $0x118] sm:$0xff] %v1359_v57 }

// kernel: lenet_forward.4
= control target key start
LH: loop header
LB: loop body
LE: loop exit
PB: predicated region body
PF: predicated region fallthrough
CT: control target
= control target key end

     0   :  { %vm54_vm0 = vcmask 195584   ;;  %s792_s4 = inlined_call_operand.vmem [shape: f32[152,128], index: 4, kind: input, shape index: {}]   ;;  %s793_s1 = inlined_call_operand.vmem [shape: f32[32,152], index: 1, kind: input, shape index: {}]   ;;  %s794_s0 = inlined_call_operand.vmem [shape: f32[32,152], index: 0, kind: input, shape index: {}]   ;;  %s795_s5 = inlined_call_operand.vmem [shape: f32[1,128], index: 5, kind: input, shape index: {}]   ;;  %s796_s2 = inlined_call_operand.vmem [shape: f32[32,152], index: 2, kind: input, shape index: {}]   ;;  %s797_s3 = inlined_call_operand.vmem [shape: f32[32,152], index: 3, kind: input, shape index: {}]   ;;  %s798_s6 = inlined_call_operand.vmem [shape: f32[32,128], index: 6, kind: output, shape index: {}]  }
   0x1   :  { %v469_v0 = vld [vmem:[%s792_s4 + $0x78] sm:$0xff]  ;;  %v474_v1 = vld [vmem:[%s792_s4 + $0x90] sm:$0xff]  ;;  %v486_v3 = vld [vmem:[%s792_s4 + $0x88] sm:$0xff] }
   0x2   :  { %v479_v2 = vld [vmem:[%s792_s4 + $0x70] sm:$0xff]  ;;  %67 = vmatpush.msra.mxu0 %v469_v0  ;;  %149 = vmatpush.msra.mxu2 %v469_v0  ;;  %v492_v4 = vld [vmem:[%s792_s4 + $0x68] sm:$0xff]  ;;  %v500_v5 = vld [vmem:[%s792_s4 + $0x80] sm:$0xff] }
   0x3   :  { %191 = vmatpush.msra.mxu3 %v474_v1  ;;  %109 = vmatpush.msra.mxu1 %v474_v1  ;;  %v130_v6 = vld [vmem:[%s793_s1 + $0x8] sm:$0xff]  ;;  %v509_v7 = vld [vmem:[%s792_s4 + $0x60] sm:$0xff]  ;;  %v521_v9 = vld [vmem:[%s792_s4 + $0x58] sm:$0xff] }
   0x4   :  { %68 = vmatpush.msra.mxu0 %v479_v2  ;;  %150 = vmatpush.msra.mxu2 %v479_v2  ;;  %v44_v8 = vld [vmem:[%s794_s0 + $0x8] sm:$0xff]  ;;  %v531_v10 = vld [vmem:[%s792_s4 + $0x50] sm:$0xff]  ;;  %v132_v12 = vld [vmem:[%s793_s1 + $0x18] sm:$0xff] }
   0x5   :  { %192 = vmatpush.msra.mxu3 %v486_v3  ;;  %110 = vmatpush.msra.mxu1 %v486_v3  ;;  %v539_v11 = vld [vmem:[%s792_s4 + $0x48] sm:$0xff]  ;;  %v551_v13 = vld [vmem:[%s792_s4 + $0x40] sm:$0xff]  ;;  %v560_v14 = vld [vmem:[%s792_s4 + $0x38] sm:$0xff] }
   0x6   :  { %69 = vmatpush.msra.mxu0 %v492_v4  ;;  %151 = vmatpush.msra.mxu2 %v492_v4  ;;  %v46_v15 = vld [vmem:[%s794_s0 + $0x18] sm:$0xff]  ;;  %v573_v16 = vld [vmem:[%s792_s4 + $0x30] sm:$0xff]  ;;  %v582_v17 = vld [vmem:[%s792_s4 + $0x28] sm:$0xff] }
   0x7   :  { %193 = vmatpush.msra.mxu3 %v500_v5  ;;  %111 = vmatpush.msra.mxu1 %v500_v5  ;;  %v134_v18 = vld [vmem:[%s793_s1 + $0x28] sm:$0xff]  ;;  %v594_v19 = vld [vmem:[%s792_s4 + $0x20] sm:$0xff]  ;;  %v603_v20 = vld [vmem:[%s792_s4 + $0x18] sm:$0xff] }
   0x8   :  { %399 = vmatmul.msk.f32.vlgmr.msra.gmra.mxu3 %vm54_vm0, %v130_v6  ;;  %70 = vmatpush.msra.mxu0 %v509_v7  ;;  %v48_v21 = vld [vmem:[%s794_s0 + $0x28] sm:$0xff]  ;;  %v615_v22 = vld [vmem:[%s792_s4 + $0x10] sm:$0xff]  ;;  %v136_v24 = vld [vmem:[%s793_s1 + $0x38] sm:$0xff] }
   0x9   :  { %152 = vmatpush.msra.mxu2 %v509_v7  ;;  %395 = vmatmul.msk.f32.vlgmr.msra.gmra.mxu1 %vm54_vm0, %v44_v8  ;;  %v624_v23 = vld [vmem:[%s792_s4 + $0x8] sm:$0xff]  ;;  %v636_v25 = vld [vmem:[%s792_s4] sm:$0xff]  ;;  %v50_v28 = vld [vmem:[%s794_s0 + $0x38] sm:$0xff] }
   0xa   :  { %71 = vmatpush.msra.mxu0 %v521_v9  ;;  %235 = vmatpush.msrb.mxu1 %v469_v0  ;;  %v43_v26 = vld [vmem:[%s794_s0] sm:$0xff]  ;;  %v216_v29 = vld [vmem:[%s796_s2 + $0x8] sm:$0xff]  ;;  %v45_v30 = vld [vmem:[%s794_s0 + $0x10] sm:$0xff] }
   0xb   :  { %153 = vmatpush.msra.mxu2 %v521_v9  ;;  %277 = vmatpush.msrb.mxu3 %v474_v1  ;;  %v129_v27 = vld [vmem:[%s793_s1] sm:$0xff]  ;;  %v131_v31 = vld [vmem:[%s793_s1 + $0x10] sm:$0xff]  ;;  %v218_v33 = vld [vmem:[%s796_s2 + $0x18] sm:$0xff] }
   0xc   :  { %72 = vmatpush.msra.mxu0 %v531_v10  ;;  %236 = vmatpush.msrb.mxu1 %v479_v2  ;;  %v215_v32 = vld [vmem:[%s796_s2] sm:$0xff]  ;;  %v217_v36 = vld [vmem:[%s796_s2 + $0x10] sm:$0xff]  ;;  %v220_v37 = vld [vmem:[%s796_s2 + $0x28] sm:$0xff] }
   0xd   :  { %154 = vmatpush.msra.mxu2 %v531_v10  ;;  %278 = vmatpush.msrb.mxu3 %v486_v3  ;;  %v47_v34 = vld [vmem:[%s794_s0 + $0x20] sm:$0xff]  ;;  %v49_v38 = vld [vmem:[%s794_s0 + $0x30] sm:$0xff]  ;;  %v222_v41 = vld [vmem:[%s796_s2 + $0x38] sm:$0xff] }
   0xe   :  { %73 = vmatpush.msra.mxu0 %v539_v11  ;;  %237 = vmatpush.msrb.mxu1 %v492_v4  ;;  %v133_v35 = vld [vmem:[%s793_s1 + $0x20] sm:$0xff]  ;;  %v135_v39 = vld [vmem:[%s793_s1 + $0x30] sm:$0xff]  ;;  %v298_v42 = vld [vmem:[%s797_s3 + $0x8] sm:$0xff] }
   0xf   :  { %155 = vmatpush.msra.mxu2 %v539_v11  ;;  %279 = vmatpush.msrb.mxu3 %v500_v5  ;;  %v219_v40 = vld [vmem:[%s796_s2 + $0x20] sm:$0xff]  ;;  %v221_v43 = vld [vmem:[%s796_s2 + $0x30] sm:$0xff]  ;;  %v304_v45 = vld [vmem:[%s797_s3 + $0x38] sm:$0xff] }
  0x10   :  { %400 = vmatmul.msk.f32.gmra.mxu3 %vm54_vm0, %v132_v12  ;;  %74 = vmatpush.msra.mxu0 %v551_v13  ;;  %v297_v44 = vld [vmem:[%s797_s3] sm:$0xff]  ;;  %v300_v46 = vld [vmem:[%s797_s3 + $0x18] sm:$0xff]  ;;  %v303_v47 = vld [vmem:[%s797_s3 + $0x30] sm:$0xff] }
  0x11   :  { %156 = vmatpush.msra.mxu2 %v551_v13  ;;  %238 = vmatpush.msrb.mxu1 %v509_v7  ;;  %v299_v48 = vld [vmem:[%s797_s3 + $0x10] sm:$0xff]  ;;  %v302_v49 = vld [vmem:[%s797_s3 + $0x28] sm:$0xff]  ;;  %v301_v50 = vld [vmem:[%s797_s3 + $0x20] sm:$0xff] }
  0x12   :  { %75 = vmatpush.msra.mxu0 %v560_v14  ;;  %396 = vmatmul.msk.f32.gmra.mxu1 %vm54_vm0, %v46_v15 }
  0x13   :  { %157 = vmatpush.msra.mxu2 %v560_v14  ;;  %239 = vmatpush.msrb.mxu1 %v521_v9 }
  0x14   :  { %76 = vmatpush.msra.mxu0 %v573_v16  ;;  %427 = vmatpush.msra.mxu3 %v474_v1 }
  0x15   :  { %158 = vmatpush.msra.mxu2 %v573_v16  ;;  %240 = vmatpush.msrb.mxu1 %v531_v10 }
  0x16   :  { %77 = vmatpush.msra.mxu0 %v582_v17  ;;  %428 = vmatpush.msra.mxu3 %v486_v3 }
  0x17   :  { %159 = vmatpush.msra.mxu2 %v582_v17  ;;  %241 = vmatpush.msrb.mxu1 %v539_v11 }
  0x18   :  { %401 = vmatmul.msk.f32.gmra.mxu3 %vm54_vm0, %v134_v18  ;;  %78 = vmatpush.msra.mxu0 %v594_v19 }
  0x19   :  { %160 = vmatpush.msra.mxu2 %v594_v19  ;;  %242 = vmatpush.msrb.mxu1 %v551_v13 }
  0x1a   :  { %79 = vmatpush.msra.mxu0 %v603_v20  ;;  %397 = vmatmul.msk.f32.gmra.mxu1 %vm54_vm0, %v48_v21 }
  0x1b   :  { %161 = vmatpush.msra.mxu2 %v603_v20  ;;  %243 = vmatpush.msrb.mxu1 %v560_v14 }
  0x1c   :  { %80 = vmatpush.msra.mxu0 %v615_v22  ;;  %429 = vmatpush.msra.mxu3 %v500_v5 }
  0x1d   :  { %162 = vmatpush.msra.mxu2 %v615_v22  ;;  %244 = vmatpush.msrb.mxu1 %v573_v16 }
  0x1e   :  { %81 = vmatpush.msra.mxu0 %v624_v23 }
  0x1f   :  { %163 = vmatpush.msra.mxu2 %v624_v23  ;;  %245 = vmatpush.msrb.mxu1 %v582_v17 }
  0x20   :  { %402 = vmatmul.msk.f32.gmra.mxu3 %vm54_vm0, %v136_v24  ;;  %82 = vmatpush.msra.mxu0 %v636_v25 }
  0x21   :  { %164 = vmatpush.msra.mxu2 %v636_v25  ;;  %83 = vmatmul.f32.vlgmr.msra.gmra.mxu0 %v43_v26 }
  0x22   :  { %165 = vmatmul.f32.vlgmr.msra.gmra.mxu2 %v129_v27  ;;  %246 = vmatpush.msrb.mxu1 %v594_v19 }
  0x23   :  { %359 = vmatpush.msrb.mxu2 %v474_v1  ;;  %398 = vmatmul.msk.f32.gmra.mxu1 %vm54_vm0, %v50_v28 }
  0x24   :  { %247 = vmatpush.msrb.mxu1 %v603_v20  ;;  %317 = vmatpush.msrb.mxu0 %v469_v0 }
  0x25   :  { %360 = vmatpush.msrb.mxu2 %v486_v3 }
  0x26   :  { %248 = vmatpush.msrb.mxu1 %v615_v22  ;;  %318 = vmatpush.msrb.mxu0 %v479_v2 }
  0x27   :  { %361 = vmatpush.msrb.mxu2 %v500_v5 }
  0x28   :  { %403 = vmatmul.msk.f32.vlgmr.msrb.gmra.mxu3 %vm54_vm0, %v216_v29  ;;  %249 = vmatpush.msrb.mxu1 %v624_v23 }
  0x29   :  { %86 = vmatmul.f32.gmra.mxu0 %v45_v30 }
  0x2a   :  { %168 = vmatmul.f32.gmra.mxu2 %v131_v31  ;;  %319 = vmatpush.msrb.mxu0 %v492_v4 }
  0x2b   :  { %250 = vmatpush.msrb.mxu1 %v636_v25 }
  0x2c   :  { %251 = vmatmul.f32.vlgmr.msrb.gmra.mxu1 %v215_v32  ;;  %320 = vmatpush.msrb.mxu0 %v509_v7 }
  0x2d   :  { %411 = vmatpush.msra.mxu1 %v469_v0 }
  0x2e   :  { %321 = vmatpush.msrb.mxu0 %v521_v9 }
  0x2f   :  { %412 = vmatpush.msra.mxu1 %v479_v2 }
  0x30   :  { %404 = vmatmul.msk.f32.gmra.mxu3 %vm54_vm0, %v218_v33  ;;  %322 = vmatpush.msrb.mxu0 %v531_v10 }
  0x31   :  { %413 = vmatpush.msra.mxu1 %v492_v4  ;;  %89 = vmatmul.f32.gmra.mxu0 %v47_v34 }
  0x32   :  { %171 = vmatmul.f32.gmra.mxu2 %v133_v35  ;;  %323 = vmatpush.msrb.mxu0 %v539_v11 }
  0x33   :  { %414 = vmatpush.msra.mxu1 %v509_v7  ;;  %v430_v7 = vld [vmem:[%s795_s5] ss:$0 sm:$0xff] }
  0x34   :  { %254 = vmatmul.f32.gmra.mxu1 %v217_v36  ;;  %324 = vmatpush.msrb.mxu0 %v551_v13 }
  0x35   :  { %415 = vmatpush.msra.mxu1 %v521_v9 }
  0x36   :  { %325 = vmatpush.msrb.mxu0 %v560_v14 }
  0x37   :  { %416 = vmatpush.msra.mxu1 %v531_v10 }
  0x38   :  { %405 = vmatmul.msk.f32.gmra.mxu3 %vm54_vm0, %v220_v37  ;;  %326 = vmatpush.msrb.mxu0 %v573_v16 }
  0x39   :  { %417 = vmatpush.msra.mxu1 %v539_v11  ;;  %92 = vmatmul.f32.gmra.mxu0 %v49_v38 }
  0x3a   :  { %174 = vmatmul.f32.gmra.mxu2 %v135_v39  ;;  %327 = vmatpush.msrb.mxu0 %v582_v17 }
  0x3b   :  { %418 = vmatpush.msra.mxu1 %v551_v13 }
  0x3c   :  { %257 = vmatmul.f32.gmra.mxu1 %v219_v40  ;;  %328 = vmatpush.msrb.mxu0 %v594_v19 }
  0x3d   :  { %419 = vmatpush.msra.mxu1 %v560_v14 }
  0x3e   :  { %329 = vmatpush.msrb.mxu0 %v603_v20 }
  0x3f   :  { %420 = vmatpush.msra.mxu1 %v573_v16 }
  0x40   :  { %406 = vmatmul.msk.f32.gmra.mxu3 %vm54_vm0, %v222_v41  ;;  %330 = vmatpush.msrb.mxu0 %v615_v22 }
  0x41   :  { %421 = vmatpush.msra.mxu1 %v582_v17 }
  0x42   :  { %331 = vmatpush.msrb.mxu0 %v624_v23  ;;  %407 = vmatmul.msk.f32.vlgmr.msrb.gmra.mxu2 %vm54_vm0, %v298_v42 }
  0x43   :  { %422 = vmatpush.msra.mxu1 %v594_v19 }
  0x44   :  { %260 = vmatmul.f32.gmra.mxu1 %v221_v43  ;;  %332 = vmatpush.msrb.mxu0 %v636_v25 }
  0x45   :  { %423 = vmatpush.msra.mxu1 %v603_v20  ;;  %333 = vmatmul.f32.vlgmr.msrb.gmra.mxu0 %v297_v44 }
  0x47   :  { %424 = vmatpush.msra.mxu1 %v615_v22 }
  0x48   :  { %410 = vmatmul.msk.f32.vlgmr.msra.gmra.mxu3 %vm54_vm0, %v304_v45 }
  0x49   :  { %425 = vmatpush.msra.mxu1 %v624_v23 }
  0x4a   :  { %408 = vmatmul.msk.f32.gmra.mxu2 %vm54_vm0, %v300_v46 }
  0x4b   :  { %426 = vmatpush.msra.mxu1 %v636_v25 }
  0x4c   :  { %342 = vmatmul.f32.vlgmr.msra.gmra.mxu1 %v303_v47 }
  0x4d   :  { %336 = vmatmul.f32.gmra.mxu0 %v299_v48 }
  0x52   :  { %409 = vmatmul.msk.f32.gmra.mxu2 %vm54_vm0, %v302_v49 }
  0x55   :  { %339 = vmatmul.f32.gmra.mxu0 %v301_v50 }
  0x86   :  { %v113_v51 = vpop.f32.mrf.mxu1 }
  0x8b   :  { %v195_v52 = vpop.f32.mrf.mxu3 }
  0x8f   :  { %v116_v53 = vpop.f32.mrf.mxu1 }
  0x93   :  { %v198_v54 = vpop.f32.mrf.mxu3 }
  0x97   :  { %v768_v55 = vpop.f32.mrf.mxu1 }
  0x9b   :  { %v770_v56 = vpop.f32.mrf.mxu3 }
  0x9e   :  { %v84_v57 = vpop.f32.mrf.mxu0 }
  0x9f   :  { %v85_v11 = vadd.f32 %v430_v7, %v84_v57 }
  0xa0   :  { %v122_v58 = vpop.f32.mrf.mxu1 }
  0xa1   :  { %v114_v16 = vadd.f32 %v113_v51, %v85_v11 }
  0xa3   :  { %v204_v59 = vpop.f32.mrf.mxu3  ;;  %v125_v27 = vmax.f32 %v114_v16, 0.0 }
  0xa5   :  { %v166_v60 = vpop.f32.mrf.mxu2 }
  0xa6   :  { %v87_v61 = vpop.f32.mrf.mxu0  ;;  %v167_v10 = vadd.f32 %v430_v7, %v166_v60 }
  0xa7   :  { %v88_v28 = vadd.f32 %v430_v7, %v87_v61 }
  0xa8   :  { %v196_v14 = vadd.f32 %v195_v52, %v167_v10 }
  0xa9   :  { %v252_v62 = vpop.f32.mrf.mxu1  ;;  %v117_v41 = vadd.f32 %v116_v53, %v88_v28 }
  0xaa   :  { %v253_v12 = vadd.f32 %v430_v7, %v252_v62  ;;  %v207_v24 = vmax.f32 %v196_v14, 0.0 }
  0xab   :  { %v281_v63 = vpop.f32.mrf.mxu3 }
  0xac   :  { %v282_v19 = vadd.f32 %v281_v63, %v253_v12  ;;  %v211_v36 = vmax.f32 %v125_v27, %v207_v24 }
  0xad   :  { %v169_v0 = vpop.f32.mrf.mxu2 }
  0xae   :  { %v90_v1 = vpop.f32.mrf.mxu0  ;;  %v170_v22 = vadd.f32 %v430_v7, %v169_v0  ;;  %v293_v30 = vmax.f32 %v282_v19, 0.0 }
  0xb0   :  { %v199_v34 = vadd.f32 %v198_v54, %v170_v22 }
  0xb1   :  { %v255_v2 = vpop.f32.mrf.mxu1 }
  0xb2   :  { %v256_v29 = vadd.f32 %v430_v7, %v255_v2  ;;  %v208_v49 = vmax.f32 %v199_v34, 0.0 }
  0xb3   :  { %v284_v3 = vpop.f32.mrf.mxu3 }
  0xb4   :  { %v285_v42 = vadd.f32 %v284_v3, %v256_v29 }
  0xb5   :  { %v172_v4 = vpop.f32.mrf.mxu2 }
  0xb6   :  { %v93_v6 = vpop.f32.mrf.mxu0  ;;  %v173_v51 = vadd.f32 %v430_v7, %v172_v4  ;;  %v294_v53 = vmax.f32 %v285_v42, 0.0 }
  0xb7   :  { %v94_v25 = vadd.f32 %v430_v7, %v93_v6 }
  0xb8   :  { %v202_v2 = vadd.f32 %v770_v56, %v173_v51 }
  0xb9   :  { %v258_v5 = vpop.f32.mrf.mxu1  ;;  %v123_v37 = vadd.f32 %v122_v58, %v94_v25  ;;  %v126_v58 = vmax.f32 %v117_v41, 0.0 }
  0xba   :  { %v259_v60 = vadd.f32 %v430_v7, %v258_v5  ;;  %v209_v12 = vmax.f32 %v202_v2, 0.0 }
  0xbb   :  { %v775_v8 = vpop.f32.mrf.mxu3  ;;  %v128_v52 = vmax.f32 %v123_v37, 0.0  ;;  %v212_v0 = vmax.f32 %v126_v58, %v208_v49 }
  0xbc   :  { %v288_v11 = vadd.f32 %v775_v8, %v259_v60 }
  0xbd   :  { %v175_v9 = vpop.f32.mrf.mxu2 }
  0xbe   :  { %v176_v20 = vadd.f32 %v430_v7, %v175_v9  ;;  %v295_v14 = vmax.f32 %v288_v11, 0.0 }
  0xc0   :  { %v205_v31 = vadd.f32 %v204_v59, %v176_v20  ;;  %v91_v59 = vadd.f32 %v430_v7, %v90_v1 }
  0xc1   :  { %v261_v13 = vpop.f32.mrf.mxu1 }
  0xc2   :  { %v334_v15 = vpop.f32.mrf.mxu0  ;;  %v262_v21 = vadd.f32 %v430_v7, %v261_v13  ;;  %v210_v45 = vmax.f32 %v205_v31, 0.0  ;;  %v120_v10 = vadd.f32 %v768_v55, %v91_v59 }
  0xc3   :  { %v290_v17 = vpop.f32.mrf.mxu3  ;;  %v335_v18 = vadd.f32 %v430_v7, %v334_v15 }
  0xc4   :  { %v291_v32 = vadd.f32 %v290_v17, %v262_v21  ;;  %v214_v61 = vmax.f32 %v128_v52, %v210_v45  ;;  %v127_v13 = vmax.f32 %v120_v10, 0.0 }
  0xc5   :  { %v363_v23 = vpop.f32.mrf.mxu2 }
  0xc6   :  { %v364_v26 = vadd.f32 %v363_v23, %v335_v18  ;;  %v296_v46 = vmax.f32 %v291_v32, 0.0 }
  0xc8   :  { %v375_v33 = vmax.f32 %v364_v26, 0.0 }
  0xc9   :  { %v343_v35 = vpop.f32.mrf.mxu1 }
  0xca   :  { %v379_v38 = vmax.f32 %v293_v30, %v375_v33  ;;  %v344_v39 = vadd.f32 %v430_v7, %v343_v35  ;;  %v337_v40 = vpop.f32.mrf.mxu0 }
  0xcb   :  { %v338_v43 = vadd.f32 %v430_v7, %v337_v40  ;;  %v372_v44 = vpop.f32.mrf.mxu3 }
  0xcc   :  { %v383_v47 = vmax.f32 %v211_v36, %v379_v38  ;;  %v373_v48 = vadd.f32 %v372_v44, %v344_v39 }
  0xcd   :  { %v366_v50 = vpop.f32.mrf.mxu2 }
  0xce   :  { %387 = vst [vmem:[%s798_s6] sm:$0xff] %v383_v47  ;;  %v378_v54 = vmax.f32 %v373_v48, 0.0  ;;  %v367_v57 = vadd.f32 %v366_v50, %v338_v43 }
  0xd0   :  { %v382_v62 = vmax.f32 %v296_v46, %v378_v54  ;;  %v376_v63 = vmax.f32 %v367_v57, 0.0 }
  0xd2   :  { %v386_v3 = vmax.f32 %v214_v61, %v382_v62  ;;  %v380_v6 = vmax.f32 %v294_v53, %v376_v63  ;;  %v340_v4 = vpop.f32.mrf.mxu0 }
  0xd3   :  { %v341_v9 = vadd.f32 %v430_v7, %v340_v4  ;;  %v213_v7 = vmax.f32 %v127_v13, %v209_v12 }
  0xd4   :  { %390 = vst [vmem:[%s798_s6 + $0x18] sm:$0xff] %v386_v3  ;;  %v384_v1 = vmax.f32 %v212_v0, %v380_v6 }
  0xd5   :  { %v369_v5 = vpop.f32.mrf.mxu2 }
  0xd6   :  { %388 = vst [vmem:[%s798_s6 + $0x8] sm:$0xff] %v384_v1  ;;  %v370_v56 = vadd.f32 %v369_v5, %v341_v9 }
  0xd8   :  { %v377_v15 = vmax.f32 %v370_v56, 0.0 }
  0xda   :  { %v381_v16 = vmax.f32 %v295_v14, %v377_v15 }
  0xdc   :  { %v385_v55 = vmax.f32 %v213_v7, %v381_v16 }
  0xde   :  { %389 = vst [vmem:[%s798_s6 + $0x10] sm:$0xff] %v385_v55 }

// kernel: lenet_forward.5
= control target key start
LH: loop header
LB: loop body
LE: loop exit
PB: predicated region body
PF: predicated region fallthrough
CT: control target
= control target key end

     0   :  { %s1728_s0 = inlined_call_operand.vmem [shape: f32[2,2048], index: 0, kind: input, shape index: {}]   ;;  %s1729_s1 = inlined_call_operand.vmem [shape: f32[2048,128], index: 1, kind: input, shape index: {}]   ;;  %s1730_s2 = inlined_call_operand.vmem [shape: f32[1,128], index: 2, kind: input, shape index: {}]   ;;  %s1731_s3 = inlined_call_operand.vmem [shape: f32[128,128], index: 3, kind: input, shape index: {}]   ;;  %s1732_s4 = inlined_call_operand.vmem [shape: f32[1,128], index: 4, kind: input, shape index: {}]   ;;  %s1733_s5 = inlined_call_operand.vmem [shape: f32[128,128], index: 5, kind: input, shape index: {}]   ;;  %s1734_s6 = inlined_call_operand.vmem [shape: f32[1,128], index: 6, kind: input, shape index: {}]   ;;  %s1735_s7 = inlined_call_operand.hbm [shape: f32[2,128], index: 7, kind: output, shape index: {}]  }
   0x1   :  { %v46_v0 = vld [vmem:[%s1729_s1 + $0x78] sm:$0xff]  ;;  %v45_v2 = vld [vmem:[%s1729_s1 + $0x70] sm:$0xff]  ;;  %v44_v6 = vld [vmem:[%s1729_s1 + $0x68] sm:$0xff] }
   0x2   :  { %v78_v1 = vld [vmem:[%s1729_s1 + $0x178] sm:$0xff]  ;;  %332 = vmatpush.msra.mxu0 %v46_v0  ;;  %v77_v4 = vld [vmem:[%s1729_s1 + $0x170] sm:$0xff]  ;;  %v76_v8 = vld [vmem:[%s1729_s1 + $0x168] sm:$0xff] }
   0x3   :  { %372 = vmatpush.msra.mxu2 %v78_v1  ;;  %v62_v3 = vld [vmem:[%s1729_s1 + $0xf8] sm:$0xff]  ;;  %v61_v7 = vld [vmem:[%s1729_s1 + $0xf0] sm:$0xff]  ;;  %v60_v10 = vld [vmem:[%s1729_s1 + $0xe8] sm:$0xff] }
   0x4   :  { %v94_v5 = vld [vmem:[%s1729_s1 + $0x1f8] sm:$0xff]  ;;  %352 = vmatpush.msra.mxu1 %v62_v3  ;;  %333 = vmatpush.msra.mxu0 %v45_v2  ;;  %v93_v9 = vld [vmem:[%s1729_s1 + $0x1f0] sm:$0xff]  ;;  %v43_v11 = vld [vmem:[%s1729_s1 + $0x60] sm:$0xff] }
   0x5   :  { %392 = vmatpush.msra.mxu3 %v94_v5  ;;  %373 = vmatpush.msra.mxu2 %v77_v4  ;;  %v75_v12 = vld [vmem:[%s1729_s1 + $0x160] sm:$0xff]  ;;  %v92_v13 = vld [vmem:[%s1729_s1 + $0x1e8] sm:$0xff]  ;;  %v42_v16 = vld [vmem:[%s1729_s1 + $0x58] sm:$0xff] }
   0x6   :  { %353 = vmatpush.msra.mxu1 %v61_v7  ;;  %334 = vmatpush.msra.mxu0 %v44_v6  ;;  %v59_v14 = vld [vmem:[%s1729_s1 + $0xe0] sm:$0xff]  ;;  %v74_v17 = vld [vmem:[%s1729_s1 + $0x158] sm:$0xff]  ;;  %v41_v20 = vld [vmem:[%s1729_s1 + $0x50] sm:$0xff] }
   0x7   :  { %393 = vmatpush.msra.mxu3 %v93_v9  ;;  %374 = vmatpush.msra.mxu2 %v76_v8  ;;  %v91_v15 = vld [vmem:[%s1729_s1 + $0x1e0] sm:$0xff]  ;;  %v58_v18 = vld [vmem:[%s1729_s1 + $0xd8] sm:$0xff]  ;;  %v73_v21 = vld [vmem:[%s1729_s1 + $0x150] sm:$0xff] }
   0x8   :  { %354 = vmatpush.msra.mxu1 %v60_v10  ;;  %335 = vmatpush.msra.mxu0 %v43_v11  ;;  %v90_v19 = vld [vmem:[%s1729_s1 + $0x1d8] sm:$0xff]  ;;  %v57_v22 = vld [vmem:[%s1729_s1 + $0xd0] sm:$0xff]  ;;  %v40_v24 = vld [vmem:[%s1729_s1 + $0x48] sm:$0xff] }
   0x9   :  { %394 = vmatpush.msra.mxu3 %v92_v13  ;;  %375 = vmatpush.msra.mxu2 %v75_v12  ;;  %v89_v23 = vld [vmem:[%s1729_s1 + $0x1d0] sm:$0xff]  ;;  %v72_v25 = vld [vmem:[%s1729_s1 + $0x148] sm:$0xff]  ;;  %v39_v28 = vld [vmem:[%s1729_s1 + $0x40] sm:$0xff] }
   0xa   :  { %355 = vmatpush.msra.mxu1 %v59_v14  ;;  %336 = vmatpush.msra.mxu0 %v42_v16  ;;  %v56_v26 = vld [vmem:[%s1729_s1 + $0xc8] sm:$0xff]  ;;  %v71_v29 = vld [vmem:[%s1729_s1 + $0x140] sm:$0xff]  ;;  %v38_v32 = vld [vmem:[%s1729_s1 + $0x38] sm:$0xff] }
   0xb   :  { %395 = vmatpush.msra.mxu3 %v91_v15  ;;  %376 = vmatpush.msra.mxu2 %v74_v17  ;;  %v88_v27 = vld [vmem:[%s1729_s1 + $0x1c8] sm:$0xff]  ;;  %v55_v30 = vld [vmem:[%s1729_s1 + $0xc0] sm:$0xff]  ;;  %v70_v33 = vld [vmem:[%s1729_s1 + $0x138] sm:$0xff] }
   0xc   :  { %356 = vmatpush.msra.mxu1 %v58_v18  ;;  %337 = vmatpush.msra.mxu0 %v41_v20  ;;  %v87_v31 = vld [vmem:[%s1729_s1 + $0x1c0] sm:$0xff]  ;;  %v54_v34 = vld [vmem:[%s1729_s1 + $0xb8] sm:$0xff]  ;;  %v37_v36 = vld [vmem:[%s1729_s1 + $0x30] sm:$0xff] }
   0xd   :  { %396 = vmatpush.msra.mxu3 %v90_v19  ;;  %377 = vmatpush.msra.mxu2 %v73_v21  ;;  %v86_v35 = vld [vmem:[%s1729_s1 + $0x1b8] sm:$0xff]  ;;  %v69_v37 = vld [vmem:[%s1729_s1 + $0x130] sm:$0xff]  ;;  %v36_v40 = vld [vmem:[%s1729_s1 + $0x28] sm:$0xff] }
   0xe   :  { %357 = vmatpush.msra.mxu1 %v57_v22  ;;  %338 = vmatpush.msra.mxu0 %v40_v24  ;;  %v53_v38 = vld [vmem:[%s1729_s1 + $0xb0] sm:$0xff]  ;;  %v68_v41 = vld [vmem:[%s1729_s1 + $0x128] sm:$0xff]  ;;  %v35_v44 = vld [vmem:[%s1729_s1 + $0x20] sm:$0xff] }
   0xf   :  { %397 = vmatpush.msra.mxu3 %v89_v23  ;;  %378 = vmatpush.msra.mxu2 %v72_v25  ;;  %v85_v39 = vld [vmem:[%s1729_s1 + $0x1b0] sm:$0xff]  ;;  %v52_v42 = vld [vmem:[%s1729_s1 + $0xa8] sm:$0xff]  ;;  %v67_v45 = vld [vmem:[%s1729_s1 + $0x120] sm:$0xff] }
  0x10   :  { %358 = vmatpush.msra.mxu1 %v56_v26  ;;  %339 = vmatpush.msra.mxu0 %v39_v28  ;;  %v84_v43 = vld [vmem:[%s1729_s1 + $0x1a8] sm:$0xff]  ;;  %v51_v46 = vld [vmem:[%s1729_s1 + $0xa0] sm:$0xff]  ;;  %v34_v48 = vld [vmem:[%s1729_s1 + $0x18] sm:$0xff] }
  0x11   :  { %398 = vmatpush.msra.mxu3 %v88_v27  ;;  %379 = vmatpush.msra.mxu2 %v71_v29  ;;  %v83_v47 = vld [vmem:[%s1729_s1 + $0x1a0] sm:$0xff]  ;;  %v66_v49 = vld [vmem:[%s1729_s1 + $0x118] sm:$0xff]  ;;  %v33_v52 = vld [vmem:[%s1729_s1 + $0x10] sm:$0xff] }
  0x12   :  { %359 = vmatpush.msra.mxu1 %v55_v30  ;;  %340 = vmatpush.msra.mxu0 %v38_v32  ;;  %v50_v50 = vld [vmem:[%s1729_s1 + $0x98] sm:$0xff]  ;;  %v65_v53 = vld [vmem:[%s1729_s1 + $0x110] sm:$0xff]  ;;  %v32_v56 = vld [vmem:[%s1729_s1 + $0x8] sm:$0xff] }
  0x13   :  { %399 = vmatpush.msra.mxu3 %v87_v31  ;;  %380 = vmatpush.msra.mxu2 %v70_v33  ;;  %v82_v51 = vld [vmem:[%s1729_s1 + $0x198] sm:$0xff]  ;;  %v49_v54 = vld [vmem:[%s1729_s1 + $0x90] sm:$0xff]  ;;  %v64_v57 = vld [vmem:[%s1729_s1 + $0x108] sm:$0xff] }
  0x14   :  { %360 = vmatpush.msra.mxu1 %v54_v34  ;;  %341 = vmatpush.msra.mxu0 %v37_v36  ;;  %v81_v55 = vld [vmem:[%s1729_s1 + $0x190] sm:$0xff]  ;;  %v48_v58 = vld [vmem:[%s1729_s1 + $0x88] sm:$0xff]  ;;  %v31_v60 = vld [vmem:[%s1729_s1] sm:$0xff] }
  0x15   :  { %400 = vmatpush.msra.mxu3 %v86_v35  ;;  %381 = vmatpush.msra.mxu2 %v69_v37  ;;  %v80_v59 = vld [vmem:[%s1729_s1 + $0x188] sm:$0xff]  ;;  %v63_v61 = vld [vmem:[%s1729_s1 + $0x100] sm:$0xff]  ;;  %v110_v62 = vld [vmem:[%s1729_s1 + $0x278] sm:$0xff] }
  0x16   :  { %361 = vmatpush.msra.mxu1 %v53_v38  ;;  %342 = vmatpush.msra.mxu0 %v36_v40  ;;  %v142_v63 = vld [vmem:[%s1729_s1 + $0x378] sm:$0xff]  ;;  %v47_v0 = vld [vmem:[%s1729_s1 + $0x80] sm:$0xff]  ;;  %v109_v2 = vld [vmem:[%s1729_s1 + $0x270] sm:$0xff] }
  0x17   :  { %401 = vmatpush.msra.mxu3 %v85_v39  ;;  %382 = vmatpush.msra.mxu2 %v68_v41  ;;  %v79_v1 = vld [vmem:[%s1729_s1 + $0x180] sm:$0xff]  ;;  %v126_v3 = vld [vmem:[%s1729_s1 + $0x2f8] sm:$0xff]  ;;  %v141_v4 = vld [vmem:[%s1729_s1 + $0x370] sm:$0xff] }
  0x18   :  { %362 = vmatpush.msra.mxu1 %v52_v42  ;;  %343 = vmatpush.msra.mxu0 %v35_v44  ;;  %v158_v5 = vld [vmem:[%s1729_s1 + $0x3f8] sm:$0xff]  ;;  %v108_v6 = vld [vmem:[%s1729_s1 + $0x268] sm:$0xff]  ;;  %v125_v7 = vld [vmem:[%s1729_s1 + $0x2f0] sm:$0xff] }
  0x19   :  { %402 = vmatpush.msra.mxu3 %v84_v43  ;;  %383 = vmatpush.msra.mxu2 %v67_v45  ;;  %v140_v8 = vld [vmem:[%s1729_s1 + $0x368] sm:$0xff]  ;;  %v157_v9 = vld [vmem:[%s1729_s1 + $0x3f0] sm:$0xff]  ;;  %v107_v10 = vld [vmem:[%s1729_s1 + $0x260] sm:$0xff] }
  0x1a   :  { %363 = vmatpush.msra.mxu1 %v51_v46  ;;  %344 = vmatpush.msra.mxu0 %v34_v48  ;;  %v124_v11 = vld [vmem:[%s1729_s1 + $0x2e8] sm:$0xff]  ;;  %v139_v12 = vld [vmem:[%s1729_s1 + $0x360] sm:$0xff]  ;;  %v106_v14 = vld [vmem:[%s1729_s1 + $0x258] sm:$0xff] }
  0x1b   :  { %403 = vmatpush.msra.mxu3 %v83_v47  ;;  %384 = vmatpush.msra.mxu2 %v66_v49  ;;  %v156_v13 = vld [vmem:[%s1729_s1 + $0x3e8] sm:$0xff]  ;;  %v123_v15 = vld [vmem:[%s1729_s1 + $0x2e0] sm:$0xff]  ;;  %v138_v16 = vld [vmem:[%s1729_s1 + $0x358] sm:$0xff] }
  0x1c   :  { %364 = vmatpush.msra.mxu1 %v50_v50  ;;  %345 = vmatpush.msra.mxu0 %v33_v52  ;;  %v155_v17 = vld [vmem:[%s1729_s1 + $0x3e0] sm:$0xff]  ;;  %v105_v18 = vld [vmem:[%s1729_s1 + $0x250] sm:$0xff]  ;;  %v122_v19 = vld [vmem:[%s1729_s1 + $0x2d8] sm:$0xff] }
  0x1d   :  { %404 = vmatpush.msra.mxu3 %v82_v51  ;;  %385 = vmatpush.msra.mxu2 %v65_v53  ;;  %v137_v20 = vld [vmem:[%s1729_s1 + $0x350] sm:$0xff]  ;;  %v154_v21 = vld [vmem:[%s1729_s1 + $0x3d8] sm:$0xff]  ;;  %v104_v22 = vld [vmem:[%s1729_s1 + $0x248] sm:$0xff] }
  0x1e   :  { %365 = vmatpush.msra.mxu1 %v49_v54  ;;  %346 = vmatpush.msra.mxu0 %v32_v56  ;;  %v121_v23 = vld [vmem:[%s1729_s1 + $0x2d0] sm:$0xff]  ;;  %v136_v24 = vld [vmem:[%s1729_s1 + $0x348] sm:$0xff]  ;;  %v27_v26 = vld [vmem:[%s1728_s0] sm:$0xff] }
  0x1f   :  { %405 = vmatpush.msra.mxu3 %v81_v55  ;;  %386 = vmatpush.msra.mxu2 %v64_v57  ;;  %v153_v25 = vld [vmem:[%s1729_s1 + $0x3d0] sm:$0xff]  ;;  %v103_v27 = vld [vmem:[%s1729_s1 + $0x240] sm:$0xff]  ;;  %v120_v28 = vld [vmem:[%s1729_s1 + $0x2c8] sm:$0xff]  ;;  %295 = vst [vmem:[#allocation1] ss:$4 sm:$0xff] %v27_v26 }
  0x20   :  { %366 = vmatpush.msra.mxu1 %v48_v58  ;;  %347 = vmatpush.msra.mxu0 %v31_v60  ;;  %v135_v29 = vld [vmem:[%s1729_s1 + $0x340] sm:$0xff]  ;;  %v152_v30 = vld [vmem:[%s1729_s1 + $0x3c8] sm:$0xff]  ;;  %v102_v31 = vld [vmem:[%s1729_s1 + $0x238] sm:$0xff] }
  0x21   :  { %406 = vmatpush.msra.mxu3 %v80_v59  ;;  %387 = vmatpush.msra.mxu2 %v63_v61  ;;  %v119_v32 = vld [vmem:[%s1729_s1 + $0x2c0] sm:$0xff]  ;;  %v134_v33 = vld [vmem:[%s1729_s1 + $0x338] sm:$0xff]  ;;  %v101_v35 = vld [vmem:[%s1729_s1 + $0x230] sm:$0xff] }
  0x22   :  { %412 = vmatpush.msrb.mxu0 %v110_v62  ;;  %367 = vmatpush.msra.mxu1 %v47_v0  ;;  %v151_v34 = vld [vmem:[%s1729_s1 + $0x3c0] sm:$0xff]  ;;  %v118_v36 = vld [vmem:[%s1729_s1 + $0x2b8] sm:$0xff]  ;;  %v133_v37 = vld [vmem:[%s1729_s1 + $0x330] sm:$0xff] }
  0x23   :  { %452 = vmatpush.msrb.mxu2 %v142_v63  ;;  %407 = vmatpush.msra.mxu3 %v79_v1  ;;  %v150_v38 = vld [vmem:[%s1729_s1 + $0x3b8] sm:$0xff]  ;;  %v100_v39 = vld [vmem:[%s1729_s1 + $0x228] sm:$0xff]  ;;  %v117_v40 = vld [vmem:[%s1729_s1 + $0x2b0] sm:$0xff] }
  0x24   :  { %413 = vmatpush.msrb.mxu0 %v109_v2  ;;  %432 = vmatpush.msrb.mxu1 %v126_v3  ;;  %v132_v41 = vld [vmem:[%s1729_s1 + $0x328] sm:$0xff]  ;;  %v149_v42 = vld [vmem:[%s1729_s1 + $0x3b0] sm:$0xff]  ;;  %v99_v44 = vld [vmem:[%s1729_s1 + $0x220] sm:$0xff] }
  0x25   :  { %453 = vmatpush.msrb.mxu2 %v141_v4  ;;  %472 = vmatpush.msrb.mxu3 %v158_v5  ;;  %v28_v43 = vld [vmem:[%s1728_s0 + $0x8] sm:$0xff]  ;;  %v29_v46 = vld [vmem:[%s1728_s0 + $0x10] sm:$0xff]  ;;  %v131_v47 = vld [vmem:[%s1729_s1 + $0x320] sm:$0xff] }
  0x26   :  { %414 = vmatpush.msrb.mxu0 %v108_v6  ;;  %433 = vmatpush.msrb.mxu1 %v125_v7  ;;  %v116_v45 = vld [vmem:[%s1729_s1 + $0x2a8] sm:$0xff]  ;;  %297 = vst [vmem:[#allocation1 + $0x20] ss:$4 sm:$0xff] %v28_v43  ;;  %v298_v48 = vld.sshfl [vmem:[#allocation1] sm:$0xff pattern:$0x73625140] }
  0x27   :  { %454 = vmatpush.msrb.mxu2 %v140_v8  ;;  %473 = vmatpush.msrb.mxu3 %v157_v9  ;;  %v300_v49 = vld.sshfl [vmem:[#allocation1 + $0x10] sm:$0xff pattern:$0x73625140]  ;;  %v1158_v50 = vld.sshfl [vmem:[#allocation1 + $0x8] sm:$0xff pattern:$0x73625140] }
  0x28   :  { %415 = vmatpush.msrb.mxu0 %v107_v10  ;;  %434 = vmatpush.msrb.mxu1 %v124_v11  ;;  %v1160_v51 = vld.sshfl [vmem:[#allocation1 + $0x18] sm:$0xff pattern:$0x73625140]  ;;  %v148_v52 = vld [vmem:[%s1729_s1 + $0x3a8] sm:$0xff]  ;;  %v115_v54 = vld [vmem:[%s1729_s1 + $0x2a0] sm:$0xff] }
  0x29   :  { %455 = vmatpush.msrb.mxu2 %v139_v12  ;;  %474 = vmatpush.msrb.mxu3 %v156_v13  ;;  %v98_v53 = vld [vmem:[%s1729_s1 + $0x218] sm:$0xff]  ;;  %306 = vst [vmem:[#allocation1] ss:$4 sm:$0xff] %v29_v46  ;;  %v147_v56 = vld [vmem:[%s1729_s1 + $0x3a0] sm:$0xff]  ;;  %v97_v57 = vld [vmem:[%s1729_s1 + $0x210] sm:$0xff] }
  0x2a   :  { %416 = vmatpush.msrb.mxu0 %v106_v14  ;;  %435 = vmatpush.msrb.mxu1 %v123_v15  ;;  %v130_v55 = vld [vmem:[%s1729_s1 + $0x318] sm:$0xff]  ;;  %v129_v59 = vld [vmem:[%s1729_s1 + $0x310] sm:$0xff]  ;;  %v96_v61 = vld [vmem:[%s1729_s1 + $0x208] sm:$0xff] }
  0x2b   :  { %456 = vmatpush.msrb.mxu2 %v138_v16  ;;  %475 = vmatpush.msrb.mxu3 %v155_v17  ;;  %v114_v58 = vld [vmem:[%s1729_s1 + $0x298] sm:$0xff]  ;;  %v113_v62 = vld [vmem:[%s1729_s1 + $0x290] sm:$0xff]  ;;  %v128_v4 = vld [vmem:[%s1729_s1 + $0x308] sm:$0xff] }
  0x2c   :  { %417 = vmatpush.msrb.mxu0 %v105_v18  ;;  %436 = vmatpush.msrb.mxu1 %v122_v19  ;;  %v146_v60 = vld [vmem:[%s1729_s1 + $0x398] sm:$0xff]  ;;  %v145_v5 = vld [vmem:[%s1729_s1 + $0x390] sm:$0xff]  ;;  %v95_v6 = vld [vmem:[%s1729_s1 + $0x200] sm:$0xff] }
  0x2d   :  { %457 = vmatpush.msrb.mxu2 %v137_v20  ;;  %476 = vmatpush.msrb.mxu3 %v154_v21  ;;  %v30_v63 = vld [vmem:[%s1728_s0 + $0x18] sm:$0xff]  ;;  %v1198_v0 = vld.sshfl [vmem:[#allocation1 + $0x30] sm:$0xff pattern:$0x73625140]  ;;  %v112_v7 = vld [vmem:[%s1729_s1 + $0x288] sm:$0xff] }
  0x2e   :  { %418 = vmatpush.msrb.mxu0 %v104_v22  ;;  %437 = vmatpush.msrb.mxu1 %v121_v23  ;;  %v1200_v1 = vld.sshfl [vmem:[#allocation1 + $0x20] sm:$0xff pattern:$0x73625140]  ;;  %v1202_v2 = vld.sshfl [vmem:[#allocation1 + $0x38] sm:$0xff pattern:$0x73625140] }
  0x2f   :  { %458 = vmatpush.msrb.mxu2 %v136_v24  ;;  %477 = vmatpush.msrb.mxu3 %v153_v25  ;;  %v1204_v3 = vld.sshfl [vmem:[#allocation1 + $0x28] sm:$0xff pattern:$0x73625140]  ;;  %v127_v8 = vld [vmem:[%s1729_s1 + $0x300] sm:$0xff]  ;;  %v174_v10 = vld [vmem:[%s1729_s1 + $0x478] sm:$0xff] }
  0x30   :  { %419 = vmatpush.msrb.mxu0 %v103_v27  ;;  %438 = vmatpush.msrb.mxu1 %v120_v28  ;;  %307 = vst [vmem:[#allocation1 + $0x20] ss:$4 sm:$0xff] %v30_v63  ;;  %v144_v9 = vld [vmem:[%s1729_s1 + $0x388] sm:$0xff]  ;;  %v206_v11 = vld [vmem:[%s1729_s1 + $0x578] sm:$0xff]  ;;  %v111_v12 = vld [vmem:[%s1729_s1 + $0x280] sm:$0xff] }
  0x31   :  { %459 = vmatpush.msrb.mxu2 %v135_v29  ;;  %478 = vmatpush.msrb.mxu3 %v152_v30  ;;  %v143_v13 = vld [vmem:[%s1729_s1 + $0x380] sm:$0xff]  ;;  %v173_v14 = vld [vmem:[%s1729_s1 + $0x470] sm:$0xff]  ;;  %v190_v15 = vld [vmem:[%s1729_s1 + $0x4f8] sm:$0xff] }
  0x32   :  { %420 = vmatpush.msrb.mxu0 %v102_v31  ;;  %439 = vmatpush.msrb.mxu1 %v119_v32  ;;  %v205_v16 = vld [vmem:[%s1729_s1 + $0x570] sm:$0xff]  ;;  %v222_v17 = vld [vmem:[%s1729_s1 + $0x5f8] sm:$0xff]  ;;  %v172_v18 = vld [vmem:[%s1729_s1 + $0x468] sm:$0xff] }
  0x33   :  { %460 = vmatpush.msrb.mxu2 %v134_v33  ;;  %479 = vmatpush.msrb.mxu3 %v151_v34  ;;  %v189_v19 = vld [vmem:[%s1729_s1 + $0x4f0] sm:$0xff]  ;;  %v204_v20 = vld [vmem:[%s1729_s1 + $0x568] sm:$0xff]  ;;  %v171_v22 = vld [vmem:[%s1729_s1 + $0x460] sm:$0xff] }
  0x34   :  { %421 = vmatpush.msrb.mxu0 %v101_v35  ;;  %440 = vmatpush.msrb.mxu1 %v118_v36  ;;  %v221_v21 = vld [vmem:[%s1729_s1 + $0x5f0] sm:$0xff]  ;;  %v188_v23 = vld [vmem:[%s1729_s1 + $0x4e8] sm:$0xff]  ;;  %v203_v24 = vld [vmem:[%s1729_s1 + $0x560] sm:$0xff] }
  0x35   :  { %461 = vmatpush.msrb.mxu2 %v133_v37  ;;  %480 = vmatpush.msrb.mxu3 %v150_v38  ;;  %v220_v25 = vld [vmem:[%s1729_s1 + $0x5e8] sm:$0xff]  ;;  %v170_v26 = vld [vmem:[%s1729_s1 + $0x458] sm:$0xff]  ;;  %v187_v27 = vld [vmem:[%s1729_s1 + $0x4e0] sm:$0xff] }
  0x36   :  { %422 = vmatpush.msrb.mxu0 %v100_v39  ;;  %441 = vmatpush.msrb.mxu1 %v117_v40  ;;  %v202_v28 = vld [vmem:[%s1729_s1 + $0x558] sm:$0xff]  ;;  %v219_v29 = vld [vmem:[%s1729_s1 + $0x5e0] sm:$0xff]  ;;  %v169_v30 = vld [vmem:[%s1729_s1 + $0x450] sm:$0xff] }
  0x37   :  { %462 = vmatpush.msrb.mxu2 %v132_v41  ;;  %481 = vmatpush.msrb.mxu3 %v149_v42  ;;  %v186_v31 = vld [vmem:[%s1729_s1 + $0x4d8] sm:$0xff]  ;;  %v201_v32 = vld [vmem:[%s1729_s1 + $0x550] sm:$0xff] }
  0x38   :  { %423 = vmatpush.msrb.mxu0 %v99_v44  ;;  %442 = vmatpush.msrb.mxu1 %v116_v45 }
  0x39   :  { %463 = vmatpush.msrb.mxu2 %v131_v47  ;;  %482 = vmatpush.msrb.mxu3 %v148_v52 }
  0x3a   :  { %424 = vmatpush.msrb.mxu0 %v98_v53  ;;  %443 = vmatpush.msrb.mxu1 %v115_v54 }
  0x3b   :  { %464 = vmatpush.msrb.mxu2 %v130_v55  ;;  %483 = vmatpush.msrb.mxu3 %v147_v56 }
  0x3c   :  { %425 = vmatpush.msrb.mxu0 %v97_v57  ;;  %444 = vmatpush.msrb.mxu1 %v114_v58 }
  0x3d   :  { %465 = vmatpush.msrb.mxu2 %v129_v59  ;;  %484 = vmatpush.msrb.mxu3 %v146_v60 }
  0x3e   :  { %426 = vmatpush.msrb.mxu0 %v96_v61  ;;  %445 = vmatpush.msrb.mxu1 %v113_v62 }
  0x3f   :  { %466 = vmatpush.msrb.mxu2 %v128_v4  ;;  %485 = vmatpush.msrb.mxu3 %v145_v5 }
  0x40   :  { %427 = vmatpush.msrb.mxu0 %v95_v6  ;;  %446 = vmatpush.msrb.mxu1 %v112_v7 }
  0x41   :  { %467 = vmatpush.msrb.mxu2 %v127_v8  ;;  %486 = vmatpush.msrb.mxu3 %v144_v9 }
  0x42   :  { %348 = vmatmul.f32.vlgmr.msra.gmra.mxu0 %v298_v48  ;;  %388 = vmatmul.f32.vlgmr.msra.gmra.mxu2 %v300_v49 }
  0x43   :  { %492 = vmatpush.msra.mxu0 %v174_v10  ;;  %532 = vmatpush.msra.mxu2 %v206_v11 }
  0x44   :  { %447 = vmatpush.msrb.mxu1 %v111_v12  ;;  %487 = vmatpush.msrb.mxu3 %v143_v13 }
  0x45   :  { %368 = vmatmul.f32.vlgmr.msra.gmra.mxu1 %v1158_v50  ;;  %408 = vmatmul.f32.vlgmr.msra.gmra.mxu3 %v1160_v51 }
  0x46   :  { %493 = vmatpush.msra.mxu0 %v173_v14  ;;  %512 = vmatpush.msra.mxu1 %v190_v15 }
  0x47   :  { %533 = vmatpush.msra.mxu2 %v205_v16  ;;  %552 = vmatpush.msra.mxu3 %v222_v17 }
  0x48   :  { %494 = vmatpush.msra.mxu0 %v172_v18  ;;  %513 = vmatpush.msra.mxu1 %v189_v19 }
  0x49   :  { %534 = vmatpush.msra.mxu2 %v204_v20  ;;  %553 = vmatpush.msra.mxu3 %v221_v21 }
  0x4a   :  { %495 = vmatpush.msra.mxu0 %v171_v22  ;;  %514 = vmatpush.msra.mxu1 %v188_v23 }
  0x4b   :  { %535 = vmatpush.msra.mxu2 %v203_v24  ;;  %554 = vmatpush.msra.mxu3 %v220_v25 }
  0x4c   :  { %468 = vmatmul.f32.vlgmr.msrb.gmra.mxu2 %v1198_v0  ;;  %496 = vmatpush.msra.mxu0 %v170_v26 }
  0x4d   :  { %515 = vmatpush.msra.mxu1 %v187_v27  ;;  %536 = vmatpush.msra.mxu2 %v202_v28 }
  0x4e   :  { %12 = vsyncpa [#allocation3], 0  ;;  %555 = vmatpush.msra.mxu3 %v219_v29  ;;  %428 = vmatmul.f32.vlgmr.msrb.gmra.mxu0 %v1200_v1  ;;  %v218_v33 = vld [vmem:[%s1729_s1 + $0x5d8] sm:$0xff]  ;;  %v168_v34 = vld [vmem:[%s1729_s1 + $0x448] sm:$0xff]  ;;  %s781_s18 = smov [#allocation2]   ;;  %s742_s0 = sshll.u32 %s1735_s7, 4  ;;  %s743_s0 = int_to_ptr.hbm [resolvable:$true] %s742_s0 }
  0x4f   :  { %488 = vmatmul.f32.vlgmr.msrb.gmra.mxu3 %v1202_v2  ;;  %497 = vmatpush.msra.mxu0 %v169_v30  ;;  %v185_v35 = vld [vmem:[%s1729_s1 + $0x4d0] sm:$0xff]  ;;  %v200_v36 = vld [vmem:[%s1729_s1 + $0x548] sm:$0xff]  ;;  %v167_v38 = vld [vmem:[%s1729_s1 + $0x440] sm:$0xff]  ;;  %s740_s19 = sshll.u32 %s781_s18, 4  ;;  %s741_s19 = int_to_ptr.vmem [resolvable:$true] %s740_s19 }
  0x50   :  { %516 = vmatpush.msra.mxu1 %v186_v31  ;;  %537 = vmatpush.msra.mxu2 %v201_v32  ;;  %v217_v37 = vld [vmem:[%s1729_s1 + $0x5d0] sm:$0xff]  ;;  %v184_v39 = vld [vmem:[%s1729_s1 + $0x4c8] sm:$0xff]  ;;  %v199_v40 = vld [vmem:[%s1729_s1 + $0x540] sm:$0xff] }
  0x51   :  { %556 = vmatpush.msra.mxu3 %v218_v33  ;;  %448 = vmatmul.f32.vlgmr.msrb.gmra.mxu1 %v1204_v3  ;;  %v216_v41 = vld [vmem:[%s1729_s1 + $0x5c8] sm:$0xff]  ;;  %v166_v42 = vld [vmem:[%s1729_s1 + $0x438] sm:$0xff]  ;;  %v183_v43 = vld [vmem:[%s1729_s1 + $0x4c0] sm:$0xff] }
  0x52   :  { %498 = vmatpush.msra.mxu0 %v168_v34  ;;  %517 = vmatpush.msra.mxu1 %v185_v35  ;;  %v198_v44 = vld [vmem:[%s1729_s1 + $0x538] sm:$0xff]  ;;  %v215_v45 = vld [vmem:[%s1729_s1 + $0x5c0] sm:$0xff]  ;;  %v165_v46 = vld [vmem:[%s1729_s1 + $0x430] sm:$0xff] }
  0x53   :  { %538 = vmatpush.msra.mxu2 %v200_v36  ;;  %557 = vmatpush.msra.mxu3 %v217_v37  ;;  %v182_v47 = vld [vmem:[%s1729_s1 + $0x4b8] sm:$0xff]  ;;  %v197_v48 = vld [vmem:[%s1729_s1 + $0x530] sm:$0xff]  ;;  %v164_v50 = vld [vmem:[%s1729_s1 + $0x428] sm:$0xff] }
  0x54   :  { %499 = vmatpush.msra.mxu0 %v167_v38  ;;  %518 = vmatpush.msra.mxu1 %v184_v39  ;;  %v214_v49 = vld [vmem:[%s1729_s1 + $0x5b8] sm:$0xff]  ;;  %v181_v51 = vld [vmem:[%s1729_s1 + $0x4b0] sm:$0xff]  ;;  %v196_v52 = vld [vmem:[%s1729_s1 + $0x528] sm:$0xff] }
  0x55   :  { %539 = vmatpush.msra.mxu2 %v199_v40  ;;  %558 = vmatpush.msra.mxu3 %v216_v41  ;;  %v213_v53 = vld [vmem:[%s1729_s1 + $0x5b0] sm:$0xff]  ;;  %v163_v54 = vld [vmem:[%s1729_s1 + $0x420] sm:$0xff]  ;;  %v180_v55 = vld [vmem:[%s1729_s1 + $0x4a8] sm:$0xff] }
  0x56   :  { %500 = vmatpush.msra.mxu0 %v166_v42  ;;  %519 = vmatpush.msra.mxu1 %v183_v43  ;;  %v195_v56 = vld [vmem:[%s1729_s1 + $0x520] sm:$0xff]  ;;  %v212_v57 = vld [vmem:[%s1729_s1 + $0x5a8] sm:$0xff]  ;;  %v162_v58 = vld [vmem:[%s1729_s1 + $0x418] sm:$0xff] }
  0x57   :  { %540 = vmatpush.msra.mxu2 %v198_v44  ;;  %559 = vmatpush.msra.mxu3 %v215_v45  ;;  %v179_v59 = vld [vmem:[%s1729_s1 + $0x4a0] sm:$0xff]  ;;  %v194_v60 = vld [vmem:[%s1729_s1 + $0x518] sm:$0xff]  ;;  %v161_v62 = vld [vmem:[%s1729_s1 + $0x410] sm:$0xff] }
  0x58   :  { %501 = vmatpush.msra.mxu0 %v165_v46  ;;  %520 = vmatpush.msra.mxu1 %v182_v47  ;;  %v211_v61 = vld [vmem:[%s1729_s1 + $0x5a0] sm:$0xff]  ;;  %v178_v63 = vld [vmem:[%s1729_s1 + $0x498] sm:$0xff]  ;;  %v193_v0 = vld [vmem:[%s1729_s1 + $0x510] sm:$0xff] }
  0x59   :  { %541 = vmatpush.msra.mxu2 %v197_v48  ;;  %560 = vmatpush.msra.mxu3 %v214_v49  ;;  %v210_v1 = vld [vmem:[%s1729_s1 + $0x598] sm:$0xff]  ;;  %v160_v2 = vld [vmem:[%s1729_s1 + $0x408] sm:$0xff]  ;;  %v177_v3 = vld [vmem:[%s1729_s1 + $0x490] sm:$0xff] }
  0x5a   :  { %502 = vmatpush.msra.mxu0 %v164_v50  ;;  %521 = vmatpush.msra.mxu1 %v181_v51  ;;  %v192_v4 = vld [vmem:[%s1729_s1 + $0x508] sm:$0xff]  ;;  %v209_v5 = vld [vmem:[%s1729_s1 + $0x590] sm:$0xff]  ;;  %v159_v6 = vld [vmem:[%s1729_s1 + $0x400] sm:$0xff] }
  0x5b   :  { %542 = vmatpush.msra.mxu2 %v196_v52  ;;  %561 = vmatpush.msra.mxu3 %v213_v53  ;;  %v176_v7 = vld [vmem:[%s1729_s1 + $0x488] sm:$0xff]  ;;  %v191_v8 = vld [vmem:[%s1729_s1 + $0x500] sm:$0xff]  ;;  %v310_v11 = vld.sshfl [vmem:[#allocation1 + $0x10] sm:$0xff pattern:$0x73625140] }
  0x5c   :  { %503 = vmatpush.msra.mxu0 %v163_v54  ;;  %522 = vmatpush.msra.mxu1 %v180_v55  ;;  %v208_v9 = vld [vmem:[%s1729_s1 + $0x588] sm:$0xff]  ;;  %v308_v10 = vld.sshfl [vmem:[#allocation1] sm:$0xff pattern:$0x73625140]  ;;  %v238_v12 = vld [vmem:[%s1729_s1 + $0x678] sm:$0xff] }
  0x5d   :  { %543 = vmatpush.msra.mxu2 %v195_v56  ;;  %562 = vmatpush.msra.mxu3 %v212_v57  ;;  %v270_v13 = vld [vmem:[%s1729_s1 + $0x778] sm:$0xff]  ;;  %v175_v14 = vld [vmem:[%s1729_s1 + $0x480] sm:$0xff]  ;;  %v309_v16 = vld.sshfl [vmem:[#allocation1 + $0x8] sm:$0xff pattern:$0x73625140] }
  0x5e   :  { %504 = vmatpush.msra.mxu0 %v162_v58  ;;  %523 = vmatpush.msra.mxu1 %v179_v59  ;;  %v207_v15 = vld [vmem:[%s1729_s1 + $0x580] sm:$0xff]  ;;  %v311_v17 = vld.sshfl [vmem:[#allocation1 + $0x18] sm:$0xff pattern:$0x73625140]  ;;  %v237_v18 = vld [vmem:[%s1729_s1 + $0x670] sm:$0xff] }
  0x5f   :  { %544 = vmatpush.msra.mxu2 %v194_v60  ;;  %563 = vmatpush.msra.mxu3 %v211_v61  ;;  %v254_v19 = vld [vmem:[%s1729_s1 + $0x6f8] sm:$0xff]  ;;  %v269_v20 = vld [vmem:[%s1729_s1 + $0x770] sm:$0xff]  ;;  %v236_v22 = vld [vmem:[%s1729_s1 + $0x668] sm:$0xff] }
  0x60   :  { %505 = vmatpush.msra.mxu0 %v161_v62  ;;  %524 = vmatpush.msra.mxu1 %v178_v63  ;;  %v286_v21 = vld [vmem:[%s1729_s1 + $0x7f8] sm:$0xff]  ;;  %v253_v23 = vld [vmem:[%s1729_s1 + $0x6f0] sm:$0xff]  ;;  %v268_v24 = vld [vmem:[%s1729_s1 + $0x768] sm:$0xff] }
  0x61   :  { %545 = vmatpush.msra.mxu2 %v193_v0  ;;  %564 = vmatpush.msra.mxu3 %v210_v1  ;;  %v285_v25 = vld [vmem:[%s1729_s1 + $0x7f0] sm:$0xff]  ;;  %v235_v26 = vld [vmem:[%s1729_s1 + $0x660] sm:$0xff]  ;;  %v252_v27 = vld [vmem:[%s1729_s1 + $0x6e8] sm:$0xff] }
  0x62   :  { %506 = vmatpush.msra.mxu0 %v160_v2  ;;  %525 = vmatpush.msra.mxu1 %v177_v3  ;;  %v267_v28 = vld [vmem:[%s1729_s1 + $0x760] sm:$0xff]  ;;  %v284_v29 = vld [vmem:[%s1729_s1 + $0x7e8] sm:$0xff]  ;;  %v234_v30 = vld [vmem:[%s1729_s1 + $0x658] sm:$0xff] }
  0x63   :  { %546 = vmatpush.msra.mxu2 %v192_v4  ;;  %565 = vmatpush.msra.mxu3 %v209_v5  ;;  %v251_v31 = vld [vmem:[%s1729_s1 + $0x6e0] sm:$0xff]  ;;  %v266_v32 = vld [vmem:[%s1729_s1 + $0x758] sm:$0xff]  ;;  %v233_v34 = vld [vmem:[%s1729_s1 + $0x650] sm:$0xff] }
  0x64   :  { %507 = vmatpush.msra.mxu0 %v159_v6  ;;  %526 = vmatpush.msra.mxu1 %v176_v7  ;;  %v283_v33 = vld [vmem:[%s1729_s1 + $0x7e0] sm:$0xff]  ;;  %v250_v35 = vld [vmem:[%s1729_s1 + $0x6d8] sm:$0xff]  ;;  %v265_v36 = vld [vmem:[%s1729_s1 + $0x750] sm:$0xff] }
  0x65   :  { %547 = vmatpush.msra.mxu2 %v191_v8  ;;  %566 = vmatpush.msra.mxu3 %v208_v9  ;;  %v282_v37 = vld [vmem:[%s1729_s1 + $0x7d8] sm:$0xff]  ;;  %v232_v38 = vld [vmem:[%s1729_s1 + $0x648] sm:$0xff]  ;;  %v249_v39 = vld [vmem:[%s1729_s1 + $0x6d0] sm:$0xff] }
  0x66   :  { %508 = vmatmul.f32.vlgmr.msra.gmra.mxu0 %v308_v10  ;;  %548 = vmatmul.f32.vlgmr.msra.gmra.mxu2 %v310_v11  ;;  %v264_v40 = vld [vmem:[%s1729_s1 + $0x748] sm:$0xff]  ;;  %v281_v41 = vld [vmem:[%s1729_s1 + $0x7d0] sm:$0xff]  ;;  %v231_v42 = vld [vmem:[%s1729_s1 + $0x640] sm:$0xff] }
  0x67   :  { %572 = vmatpush.msrb.mxu0 %v238_v12  ;;  %612 = vmatpush.msrb.mxu2 %v270_v13  ;;  %v248_v43 = vld [vmem:[%s1729_s1 + $0x6c8] sm:$0xff]  ;;  %v263_v44 = vld [vmem:[%s1729_s1 + $0x740] sm:$0xff]  ;;  %v230_v46 = vld [vmem:[%s1729_s1 + $0x638] sm:$0xff] }
  0x68   :  { %527 = vmatpush.msra.mxu1 %v175_v14  ;;  %567 = vmatpush.msra.mxu3 %v207_v15  ;;  %v280_v45 = vld [vmem:[%s1729_s1 + $0x7c8] sm:$0xff]  ;;  %v247_v47 = vld [vmem:[%s1729_s1 + $0x6c0] sm:$0xff]  ;;  %v262_v48 = vld [vmem:[%s1729_s1 + $0x738] sm:$0xff] }
  0x69   :  { %528 = vmatmul.f32.vlgmr.msra.gmra.mxu1 %v309_v16  ;;  %568 = vmatmul.f32.vlgmr.msra.gmra.mxu3 %v311_v17  ;;  %v279_v49 = vld [vmem:[%s1729_s1 + $0x7c0] sm:$0xff]  ;;  %v229_v50 = vld [vmem:[%s1729_s1 + $0x630] sm:$0xff]  ;;  %v246_v51 = vld [vmem:[%s1729_s1 + $0x6b8] sm:$0xff] }
  0x6a   :  { %573 = vmatpush.msrb.mxu0 %v237_v18  ;;  %592 = vmatpush.msrb.mxu1 %v254_v19  ;;  %v261_v52 = vld [vmem:[%s1729_s1 + $0x730] sm:$0xff]  ;;  %v278_v53 = vld [vmem:[%s1729_s1 + $0x7b8] sm:$0xff]  ;;  %v228_v54 = vld [vmem:[%s1729_s1 + $0x628] sm:$0xff] }
  0x6b   :  { %613 = vmatpush.msrb.mxu2 %v269_v20  ;;  %632 = vmatpush.msrb.mxu3 %v286_v21  ;;  %v245_v55 = vld [vmem:[%s1729_s1 + $0x6b0] sm:$0xff]  ;;  %v260_v56 = vld [vmem:[%s1729_s1 + $0x728] sm:$0xff]  ;;  %v227_v58 = vld [vmem:[%s1729_s1 + $0x620] sm:$0xff] }
  0x6c   :  { %574 = vmatpush.msrb.mxu0 %v236_v22  ;;  %593 = vmatpush.msrb.mxu1 %v253_v23  ;;  %v277_v57 = vld [vmem:[%s1729_s1 + $0x7b0] sm:$0xff]  ;;  %v244_v59 = vld [vmem:[%s1729_s1 + $0x6a8] sm:$0xff]  ;;  %v259_v60 = vld [vmem:[%s1729_s1 + $0x720] sm:$0xff] }
  0x6d   :  { %614 = vmatpush.msrb.mxu2 %v268_v24  ;;  %633 = vmatpush.msrb.mxu3 %v285_v25  ;;  %v276_v61 = vld [vmem:[%s1729_s1 + $0x7a8] sm:$0xff]  ;;  %v226_v62 = vld [vmem:[%s1729_s1 + $0x618] sm:$0xff]  ;;  %v243_v63 = vld [vmem:[%s1729_s1 + $0x6a0] sm:$0xff] }
  0x6e   :  { %575 = vmatpush.msrb.mxu0 %v235_v26  ;;  %594 = vmatpush.msrb.mxu1 %v252_v27  ;;  %v258_v0 = vld [vmem:[%s1729_s1 + $0x718] sm:$0xff]  ;;  %v275_v1 = vld [vmem:[%s1729_s1 + $0x7a0] sm:$0xff]  ;;  %v225_v2 = vld [vmem:[%s1729_s1 + $0x610] sm:$0xff] }
  0x6f   :  { %615 = vmatpush.msrb.mxu2 %v267_v28  ;;  %634 = vmatpush.msrb.mxu3 %v284_v29  ;;  %v242_v3 = vld [vmem:[%s1729_s1 + $0x698] sm:$0xff]  ;;  %v257_v4 = vld [vmem:[%s1729_s1 + $0x710] sm:$0xff]  ;;  %v224_v6 = vld [vmem:[%s1729_s1 + $0x608] sm:$0xff] }
  0x70   :  { %576 = vmatpush.msrb.mxu0 %v234_v30  ;;  %595 = vmatpush.msrb.mxu1 %v251_v31  ;;  %v274_v5 = vld [vmem:[%s1729_s1 + $0x798] sm:$0xff]  ;;  %v241_v7 = vld [vmem:[%s1729_s1 + $0x690] sm:$0xff]  ;;  %v256_v8 = vld [vmem:[%s1729_s1 + $0x708] sm:$0xff] }
  0x71   :  { %616 = vmatpush.msrb.mxu2 %v266_v32  ;;  %635 = vmatpush.msrb.mxu3 %v283_v33  ;;  %v273_v9 = vld [vmem:[%s1729_s1 + $0x790] sm:$0xff]  ;;  %v223_v10 = vld [vmem:[%s1729_s1 + $0x600] sm:$0xff]  ;;  %v240_v11 = vld [vmem:[%s1729_s1 + $0x688] sm:$0xff] }
  0x72   :  { %577 = vmatpush.msrb.mxu0 %v233_v34  ;;  %596 = vmatpush.msrb.mxu1 %v250_v35  ;;  %v255_v12 = vld [vmem:[%s1729_s1 + $0x700] sm:$0xff]  ;;  %v272_v13 = vld [vmem:[%s1729_s1 + $0x788] sm:$0xff]  ;;  %v314_v15 = vld.sshfl [vmem:[#allocation1 + $0x30] sm:$0xff pattern:$0x73625140] }
  0x73   :  { %617 = vmatpush.msrb.mxu2 %v265_v36  ;;  %636 = vmatpush.msrb.mxu3 %v282_v37  ;;  %v312_v14 = vld.sshfl [vmem:[#allocation1 + $0x20] sm:$0xff pattern:$0x73625140]  ;;  %v313_v18 = vld.sshfl [vmem:[#allocation1 + $0x28] sm:$0xff pattern:$0x73625140] }
  0x74   :  { %578 = vmatpush.msrb.mxu0 %v232_v38  ;;  %597 = vmatpush.msrb.mxu1 %v249_v39  ;;  %v239_v16 = vld [vmem:[%s1729_s1 + $0x680] sm:$0xff]  ;;  %v315_v19 = vld.sshfl [vmem:[#allocation1 + $0x38] sm:$0xff pattern:$0x73625140]  ;;  %v667_v21 = vld [vmem:[%s1731_s3 + $0x70] sm:$0xff] }
  0x75   :  { %618 = vmatpush.msrb.mxu2 %v264_v40  ;;  %637 = vmatpush.msrb.mxu3 %v281_v41  ;;  %v271_v17 = vld [vmem:[%s1729_s1 + $0x780] sm:$0xff]  ;;  %v668_v20 = vld [vmem:[%s1731_s3 + $0x78] sm:$0xff]  ;;  %v666_v22 = vld [vmem:[%s1731_s3 + $0x68] sm:$0xff] }
  0x76   :  { %579 = vmatpush.msrb.mxu0 %v231_v42  ;;  %598 = vmatpush.msrb.mxu1 %v248_v43  ;;  %v665_v23 = vld [vmem:[%s1731_s3 + $0x60] sm:$0xff]  ;;  %v664_v24 = vld [vmem:[%s1731_s3 + $0x58] sm:$0xff]  ;;  %v663_v25 = vld [vmem:[%s1731_s3 + $0x50] sm:$0xff] }
  0x77   :  { %619 = vmatpush.msrb.mxu2 %v263_v44  ;;  %638 = vmatpush.msrb.mxu3 %v280_v45  ;;  %v662_v26 = vld [vmem:[%s1731_s3 + $0x48] sm:$0xff]  ;;  %v752_v27 = vld [vmem:[%s1730_s2] ss:$0 sm:$0xff]  ;;  %v660_v30 = vld [vmem:[%s1731_s3 + $0x38] sm:$0xff] }
  0x78   :  { %580 = vmatpush.msrb.mxu0 %v230_v46  ;;  %599 = vmatpush.msrb.mxu1 %v247_v47  ;;  %v661_v29 = vld [vmem:[%s1731_s3 + $0x40] sm:$0xff]  ;;  %v659_v36 = vld [vmem:[%s1731_s3 + $0x30] sm:$0xff]  ;;  %v658_v38 = vld [vmem:[%s1731_s3 + $0x28] sm:$0xff] }
  0x79   :  { %620 = vmatpush.msrb.mxu2 %v262_v48  ;;  %639 = vmatpush.msrb.mxu3 %v279_v49  ;;  %v657_v40 = vld [vmem:[%s1731_s3 + $0x20] sm:$0xff]  ;;  %v656_v42 = vld [vmem:[%s1731_s3 + $0x18] sm:$0xff]  ;;  %v655_v44 = vld [vmem:[%s1731_s3 + $0x10] sm:$0xff] }
  0x7a   :  { %581 = vmatpush.msrb.mxu0 %v229_v50  ;;  %600 = vmatpush.msrb.mxu1 %v246_v51  ;;  %v654_v46 = vld [vmem:[%s1731_s3 + $0x8] sm:$0xff]  ;;  %v653_v48 = vld [vmem:[%s1731_s3] sm:$0xff]  ;;  %v709_v50 = vld [vmem:[%s1733_s5 + $0x78] sm:$0xff] }
  0x7b   :  { %621 = vmatpush.msrb.mxu2 %v261_v52  ;;  %640 = vmatpush.msrb.mxu3 %v278_v53  ;;  %v708_v51 = vld [vmem:[%s1733_s5 + $0x70] sm:$0xff]  ;;  %v707_v53 = vld [vmem:[%s1733_s5 + $0x68] sm:$0xff] }
  0x7c   :  { %582 = vmatpush.msrb.mxu0 %v228_v54  ;;  %601 = vmatpush.msrb.mxu1 %v245_v55  ;;  %v706_v55 = vld [vmem:[%s1733_s5 + $0x60] sm:$0xff] }
  0x7d   :  { %622 = vmatpush.msrb.mxu2 %v260_v56  ;;  %641 = vmatpush.msrb.mxu3 %v277_v57 }
  0x7e   :  { %583 = vmatpush.msrb.mxu0 %v227_v58  ;;  %602 = vmatpush.msrb.mxu1 %v244_v59  ;;  %v705_v58 = vld [vmem:[%s1733_s5 + $0x58] sm:$0xff] }
  0x7f   :  { %623 = vmatpush.msrb.mxu2 %v259_v60  ;;  %642 = vmatpush.msrb.mxu3 %v276_v61  ;;  %v704_v60 = vld [vmem:[%s1733_s5 + $0x50] sm:$0xff] }
  0x80   :  { %584 = vmatpush.msrb.mxu0 %v226_v62  ;;  %603 = vmatpush.msrb.mxu1 %v243_v63  ;;  %v703_v62 = vld [vmem:[%s1733_s5 + $0x48] sm:$0xff] }
  0x81   :  { %624 = vmatpush.msrb.mxu2 %v258_v0  ;;  %643 = vmatpush.msrb.mxu3 %v275_v1  ;;  %v702_v1 = vld [vmem:[%s1733_s5 + $0x40] sm:$0xff] }
  0x82   :  { %585 = vmatpush.msrb.mxu0 %v225_v2  ;;  %604 = vmatpush.msrb.mxu1 %v242_v3  ;;  %v701_v3 = vld [vmem:[%s1733_s5 + $0x38] sm:$0xff] }
  0x83   :  { %625 = vmatpush.msrb.mxu2 %v257_v4  ;;  %644 = vmatpush.msrb.mxu3 %v274_v5  ;;  %v700_v5 = vld [vmem:[%s1733_s5 + $0x30] sm:$0xff] }
  0x84   :  { %586 = vmatpush.msrb.mxu0 %v224_v6  ;;  %605 = vmatpush.msrb.mxu1 %v241_v7  ;;  %v699_v7 = vld [vmem:[%s1733_s5 + $0x28] sm:$0xff] }
  0x85   :  { %626 = vmatpush.msrb.mxu2 %v256_v8  ;;  %645 = vmatpush.msrb.mxu3 %v273_v9 }
  0x86   :  { %587 = vmatpush.msrb.mxu0 %v223_v10  ;;  %606 = vmatpush.msrb.mxu1 %v240_v11  ;;  %v698_v10 = vld [vmem:[%s1733_s5 + $0x20] sm:$0xff] }
  0x87   :  { %627 = vmatpush.msrb.mxu2 %v255_v12  ;;  %646 = vmatpush.msrb.mxu3 %v272_v13  ;;  %v697_v12 = vld [vmem:[%s1733_s5 + $0x18] sm:$0xff] }
  0x88   :  { %588 = vmatmul.f32.vlgmr.msrb.gmra.mxu0 %v312_v14  ;;  %628 = vmatmul.f32.vlgmr.msrb.gmra.mxu2 %v314_v15 }
  0x89   :  { %607 = vmatpush.msrb.mxu1 %v239_v16  ;;  %647 = vmatpush.msrb.mxu3 %v271_v17 }
  0x8a   :  { %608 = vmatmul.f32.vlgmr.msrb.gmra.mxu1 %v313_v18  ;;  %648 = vmatmul.f32.vlgmr.msrb.gmra.mxu3 %v315_v19  ;;  %v696_v19 = vld [vmem:[%s1733_s5 + $0x10] sm:$0xff] }
  0x8b   :  { %673 = vmatpush.msra.mxu0 %v668_v20  ;;  %714 = vmatpush.msra.mxu1 %v709_v50  ;;  %v695_v20 = vld [vmem:[%s1733_s5 + $0x8] sm:$0xff] }
  0x8d   :  { %674 = vmatpush.msra.mxu0 %v667_v21  ;;  %715 = vmatpush.msra.mxu1 %v708_v51  ;;  %v694_v21 = vld [vmem:[%s1733_s5] sm:$0xff] }
  0x8f   :  { %675 = vmatpush.msra.mxu0 %v666_v22  ;;  %716 = vmatpush.msra.mxu1 %v707_v53  ;;  %v753_v22 = vld [vmem:[%s1732_s4] ss:$0 sm:$0xff] }
  0x91   :  { %676 = vmatpush.msra.mxu0 %v665_v23  ;;  %717 = vmatpush.msra.mxu1 %v706_v55 }
  0x93   :  { %677 = vmatpush.msra.mxu0 %v664_v24  ;;  %718 = vmatpush.msra.mxu1 %v705_v58 }
  0x95   :  { %678 = vmatpush.msra.mxu0 %v663_v25  ;;  %719 = vmatpush.msra.mxu1 %v704_v60 }
  0x97   :  { %679 = vmatpush.msra.mxu0 %v662_v26  ;;  %720 = vmatpush.msra.mxu1 %v703_v62  ;;  %v754_v26 = vld [vmem:[%s1734_s6] ss:$0 sm:$0xff] }
  0x99   :  { %680 = vmatpush.msra.mxu0 %v661_v29  ;;  %721 = vmatpush.msra.mxu1 %v702_v1 }
  0x9b   :  { %681 = vmatpush.msra.mxu0 %v660_v30  ;;  %722 = vmatpush.msra.mxu1 %v701_v3 }
  0x9d   :  { %682 = vmatpush.msra.mxu0 %v659_v36  ;;  %723 = vmatpush.msra.mxu1 %v700_v5 }
  0x9f   :  { %683 = vmatpush.msra.mxu0 %v658_v38  ;;  %724 = vmatpush.msra.mxu1 %v699_v7 }
  0xa1   :  { %684 = vmatpush.msra.mxu0 %v657_v40  ;;  %725 = vmatpush.msra.mxu1 %v698_v10 }
  0xa3   :  { %685 = vmatpush.msra.mxu0 %v656_v42  ;;  %726 = vmatpush.msra.mxu1 %v697_v12 }
  0xa5   :  { %686 = vmatpush.msra.mxu0 %v655_v44  ;;  %727 = vmatpush.msra.mxu1 %v696_v19 }
  0xa7   :  { %687 = vmatpush.msra.mxu0 %v654_v46  ;;  %728 = vmatpush.msra.mxu1 %v695_v20 }
  0xa9   :  { %688 = vmatpush.msra.mxu0 %v653_v48  ;;  %729 = vmatpush.msra.mxu1 %v694_v21 }
  0xbf   :  { %v349_v28 = vpop.f32.mrf.mxu0 }
  0xc0   :  { %v350_v31 = vadd.f32 %v752_v27, %v349_v28 }
  0xc2   :  { %v369_v32 = vpop.f32.mrf.mxu1 }
  0xc3   :  { %v370_v33 = vadd.f32 %v369_v32, %v350_v31 }
  0xc5   :  { %v389_v34 = vpop.f32.mrf.mxu2 }
  0xc6   :  { %v390_v35 = vadd.f32 %v389_v34, %v370_v33 }
  0xc8   :  { %v409_v37 = vpop.f32.mrf.mxu3 }
  0xc9   :  { %v410_v39 = vadd.f32 %v409_v37, %v390_v35 }
  0xcb   :  { %v429_v41 = vpop.f32.mrf.mxu0 }
  0xcc   :  { %v430_v43 = vadd.f32 %v429_v41, %v410_v39 }
  0xce   :  { %v449_v45 = vpop.f32.mrf.mxu1 }
  0xcf   :  { %v450_v47 = vadd.f32 %v449_v45, %v430_v43  ;;  %v469_v49 = vpop.f32.mrf.mxu2 }
  0xd1   :  { %v470_v52 = vadd.f32 %v469_v49, %v450_v47 }
  0xd2   :  { %v489_v54 = vpop.f32.mrf.mxu3 }
  0xd3   :  { %v490_v57 = vadd.f32 %v489_v54, %v470_v52 }
  0xe3   :  { %v509_v56 = vpop.f32.mrf.mxu0 }
  0xe4   :  { %v510_v59 = vadd.f32 %v509_v56, %v490_v57 }
  0xe6   :  { %v529_v61 = vpop.f32.mrf.mxu1 }
  0xe7   :  { %v530_v0 = vadd.f32 %v529_v61, %v510_v59 }
  0xe9   :  { %v549_v63 = vpop.f32.mrf.mxu2 }
  0xea   :  { %v550_v2 = vadd.f32 %v549_v63, %v530_v0 }
  0xec   :  { %v569_v4 = vpop.f32.mrf.mxu3 }
  0xed   :  { %v570_v6 = vadd.f32 %v569_v4, %v550_v2 }
 0x105   :  { %v589_v8 = vpop.f32.mrf.mxu0 }
 0x106   :  { %v590_v9 = vadd.f32 %v589_v8, %v570_v6 }
 0x107   :  { %v609_v11 = vpop.f32.mrf.mxu1 }
 0x108   :  { %v610_v13 = vadd.f32 %v609_v11, %v590_v9 }
 0x10b   :  { %v629_v14 = vpop.f32.mrf.mxu2 }
 0x10c   :  { %v630_v15 = vadd.f32 %v629_v14, %v610_v13 }
 0x10d   :  { %v649_v16 = vpop.f32.mrf.mxu3 }
 0x10e   :  { %v650_v17 = vadd.f32 %v649_v16, %v630_v15 }
 0x110   :  { %v652_v18 = vmax.f32 %v650_v17, 0.0 }
 0x112   :  { %689 = vmatmul.f32.vlgmr.msra.gmra.mxu0 %v652_v18 }
 0x18f   :  { %v690_v23 = vpop.f32.mrf.mxu0 }
 0x190   :  { %v691_v24 = vadd.f32 %v753_v22, %v690_v23 }
 0x192   :  { %v693_v25 = vmax.f32 %v691_v24, 0.0 }
 0x194   :  { %730 = vmatmul.f32.vlgmr.msra.gmra.mxu1 %v693_v25 }
 0x211   :  { %v731_v27 = vpop.f32.mrf.mxu1 }
 0x212   :  { %v732_v28 = vadd.f32 %v754_v26, %v731_v27 }
 0x214   :  { %734 = vst [vmem:[#allocation2] sm:$0x3] %v732_v28 }
 0x215   :  { %745 = dma.vmem_to_hbm [thread:$0]  %s741_s19, 32, %s743_s0, [#allocation3]  }
 0x216   :  { %779 = dma.done.wait [#allocation3], 32  }
 0x217   :  { %780 = vsyncadd [#allocation3], 4294967264 }
 0x218   :  { %750 = vsyncpa [#allocation3], 1 }

</bundles_post_ra>
